<compile_context>
chip_gen: v7x
topology: tpu7x:2x2x1
jax: 0.10.0
libtpu: 0.0.40
codegen_flags: <defaults>
</compile_context>

<pallas_src>
import functools

import jax
import jax.numpy as jnp
import numpy as np
from jax import lax
from jax.experimental import pallas as pl
from jax.experimental.pallas import tpu as pltpu

TEMPERATURE = 1.0   # Attn temperature (module default)
INIT_SCALE = 1.0    # LayerScaler init scale (module default)
BN_EPS = 1e-5


# ----------------------------- in-kernel math ------------------------------
def _gelu(x):
    # tanh-form GELU (EUP-only: one tanh, no divides)
    c = 0.7978845608028654  # sqrt(2/pi)
    return 0.5 * x * (1.0 + jnp.tanh(c * (x + 0.044715 * x * x * x)))


# ------------------------------ fused kernel --------------------------------
def _layer_kernel(xs_ref, prev_ref, gamma_ref, wdw_ref, bdw_ref,
                  bn1s_ref, bn1b_ref, wpw_ref, bpw_ref, bn2s_ref, bn2b_ref,
                  yt_ref, sq_ref, pad_ref, *,
                  depth, depth_prev, H, W, C, ksz, inv_temperature):
    # Per grid step: one block of the batch.
    # xs_ref  : (D, Bblk, HW, C)      prev_ref: (Bblk, Dprev, C)
    # yt_ref  : (C, Bblk*HW)  (lane-dense)     sq_ref: (Bblk, C)
    b_blk = sq_ref.shape[0]
    p = (ksz - 1) // 2
    Wp = W + 2 * p

    # ---- AttnLayer: squeeze (global avg pool * LayerScaler) of xs[-1] ----
    x_last = xs_ref[depth - 1]                               # (Bblk, HW, C)
    sq = jnp.mean(x_last, axis=1) * gamma_ref[...]           # (Bblk, C)
    sq_ref[...] = sq                                         # new squeezed row

    # ---- attention over depth: softmax(<query, keys> / T), query = sq ----
    prev = prev_ref[...]                                     # (Bblk, Dprev, C)
    s_prev = jnp.sum(prev * sq[:, None, :], axis=-1) * inv_temperature
    s_self = jnp.sum(sq * sq, axis=-1, keepdims=True) * inv_temperature
    m = jnp.maximum(jnp.max(s_prev, axis=-1, keepdims=True), s_self)
    e_prev = jnp.exp(s_prev - m)                             # (Bblk, Dprev)
    e_self = jnp.exp(s_self - m)                             # (Bblk, 1)
    denom = jnp.sum(e_prev, axis=-1, keepdims=True) + e_self
    inv_denom = pl.reciprocal(denom, approx=True)            # EUP
    a_prev = e_prev * inv_denom                              # (Bblk, Dprev)
    a_self = e_self * inv_denom                              # (Bblk, 1)

    # ---- depth-weighted mix: x_new[b] = sum_d attn[d,b] * xs[d,b] ----
    x_mix = a_self[:, :, None] * x_last                      # (Bblk, HW, C)
    for d in range(depth_prev):
        x_mix = x_mix + a_prev[:, d:d + 1, None] * xs_ref[d]

    # ---- ConvMixer block: depthwise kxk conv ("same", zero padding) ----
    x_sp = x_mix.reshape(b_blk, H, W, C)                     # (Bblk, H, W, C)
    if p > 0:
        # zero only the halo; the interior is fully overwritten each step
        pad_ref[:, 0:p, :, :] = jnp.zeros((b_blk, p, Wp, C), jnp.float32)
        pad_ref[:, p + H:p + H + p, :, :] = jnp.zeros((b_blk, p, Wp, C),
                                                      jnp.float32)
        pad_ref[:, p:p + H, 0:p, :] = jnp.zeros((b_blk, H, p, C), jnp.float32)
        pad_ref[:, p:p + H, p + W:p + W + p, :] = jnp.zeros((b_blk, H, p, C),
                                                            jnp.float32)
    pad_ref[:, p:p + H, p:p + W, :] = x_sp

    wdw = wdw_ref[...]                                       # (k*k, C)
    acc = jnp.zeros((b_blk, H, W, C), jnp.float32) + bdw_ref[...]
    for i in range(ksz):
        for j in range(ksz):
            tap = wdw[i * ksz + j:i * ksz + j + 1, :]        # (1, C)
            acc = acc + pad_ref[:, i:i + H, j:j + W, :] * tap

    t = _gelu(acc)
    t = t * bn1s_ref[...] + bn1b_ref[...]                    # BN1 (eval)
    r = x_sp + t                                             # residual

    # ---- pointwise 1x1 conv on the MXU: bf16 in, f32 acc, channels-major ----
    rf = r.reshape(b_blk * H * W, C).astype(jnp.bfloat16)    # (Bblk*HW, Cin)
    w = wpw_ref[...].astype(jnp.bfloat16)                    # (Cout, Cin)
    y = lax.dot_general(w, rf, (((1,), (1,)), ((), ())),
                        preferred_element_type=jnp.float32)  # (Cout, Bblk*HW)
    y = y + bpw_ref[...]                                     # (C,1) broadcast
    y = _gelu(y)
    y = y * bn2s_ref[...] + bn2b_ref[...]                    # BN2 (eval)
    yt_ref[...] = y                                          # lane-dense store


# --------------------------------- wrapper ----------------------------------
def layer_forward(xs_nchw, all_squeezed, params):
    D, B, C, H, W = xs_nchw.shape
    Dprev = all_squeezed.shape[0]
    assert Dprev >= 1 and Dprev + 1 == D, "expect all_squeezed depth == D-1"
    HW = H * W
    ksz = params["w_dw"].shape[-1]

    # whole batch per grid step when small; multiples of 8 otherwise
    if B <= 8 or B % 8 != 0:
        b_blk = B
    else:
        b_blk = 8
    n_blk = B // b_blk

    # channels-last layouts for the kernel
    xs_k = jnp.transpose(xs_nchw, (0, 1, 3, 4, 2)).reshape(D, B, HW, C)
    prev_k = jnp.transpose(all_squeezed, (1, 0, 2))          # (B, Dprev, C)

    bn1_scale = params["bn1_w"] / jnp.sqrt(params["bn1_v"] + BN_EPS)
    bn1_shift = params["bn1_b"] - params["bn1_m"] * bn1_scale
    bn2_scale = params["bn2_w"] / jnp.sqrt(params["bn2_v"] + BN_EPS)
    bn2_shift = params["bn2_b"] - params["bn2_m"] * bn2_scale
    wdw_k = jnp.transpose(params["w_dw"], (1, 2, 0)).reshape(ksz * ksz, C)

    row = lambda v: v.reshape(1, C)
    col = lambda v: v.reshape(C, 1)
    vec_spec = pl.BlockSpec((1, C), lambda b: (0, 0))
    col_spec = pl.BlockSpec((C, 1), lambda b: (0, 0))

    kernel = functools.partial(
        _layer_kernel, depth=D, depth_prev=Dprev, H=H, W=W, C=C, ksz=ksz,
        inv_temperature=1.0 / TEMPERATURE)

    y_t, sq_new = pl.pallas_call(
        kernel,
        grid=(n_blk,),
        in_specs=[
            pl.BlockSpec((D, b_blk, HW, C), lambda b: (0, b, 0, 0)),   # xs
            pl.BlockSpec((b_blk, Dprev, C), lambda b: (b, 0, 0)),      # prev sq
            vec_spec,                                                  # gamma
            pl.BlockSpec((ksz * ksz, C), lambda b: (0, 0)),            # dw wts
            vec_spec,                                                  # dw bias
            vec_spec, vec_spec,                                        # BN1
            pl.BlockSpec((C, C), lambda b: (0, 0)),                    # pw wts
            col_spec,                                                  # pw bias
            col_spec, col_spec,                                        # BN2
        ],
        out_specs=(
            pl.BlockSpec((C, b_blk * HW), lambda b: (0, b)),   # lane-dense y^T
            pl.BlockSpec((b_blk, C), lambda b: (b, 0)),        # new squeezed
        ),
        out_shape=(
            jax.ShapeDtypeStruct((C, B * HW), jnp.float32),
            jax.ShapeDtypeStruct((B, C), jnp.float32),
        ),
        scratch_shapes=[
            pltpu.VMEM((b_blk, H + (ksz - 1), W + (ksz - 1), C), jnp.float32),
        ],
        compiler_params=pltpu.CompilerParams(
            dimension_semantics=("parallel",)),
    )(xs_k, prev_k, params["gamma"].reshape(1, C), wdw_k,
      row(params["b_dw"]), row(bn1_scale), row(bn1_shift),
      params["w_pw"], col(params["b_pw"]), col(bn2_scale), col(bn2_shift))

    # (C, B*HW) -> (B, C, H, W)
    x_next = jnp.transpose(y_t.reshape(C, B, H, W), (1, 0, 2, 3))
    xs_out = jnp.concatenate([xs_nchw, x_next[None]], axis=0)
    allsq_out = jnp.concatenate([all_squeezed, sq_new[None]], axis=0)
    return xs_out, allsq_out


# ----------------------- pure-JAX reference (for check) ----------------------
def reference_forward(xs_nchw, all_squeezed, params):
    D, B, C, H, W = xs_nchw.shape
    ksz = params["w_dw"].shape[-1]
    sq = jnp.mean(xs_nchw[-1], axis=(2, 3)) * params["gamma"][None, :]
    all_sq = jnp.concatenate([all_squeezed, sq[None]], axis=0)
    query = all_sq[-1]
    scores = jnp.einsum("bh,dbh->db", query, all_sq) / TEMPERATURE
    attn = jax.nn.softmax(scores, axis=0)
    x_new = jnp.einsum("dbchw,db->bchw", xs_nchw, attn)

    t = lax.conv_general_dilated(
        x_new, params["w_dw"].reshape(C, 1, ksz, ksz), (1, 1), "SAME",
        feature_group_count=C,
        dimension_numbers=("NCHW", "OIHW", "NCHW"),
    ) + params["b_dw"][None, :, None, None]
    t = jax.nn.gelu(t, approximate=False)
    s1 = params["bn1_w"] / jnp.sqrt(params["bn1_v"] + BN_EPS)
    b1 = params["bn1_b"] - params["bn1_m"] * s1
    t = t * s1[None, :, None, None] + b1[None, :, None, None]
    r = x_new + t
    y = jnp.einsum("bchw,oc->bohw", r, params["w_pw"]) + params["b_pw"][None, :, None, None]
    y = jax.nn.gelu(y, approximate=False)
    s2 = params["bn2_w"] / jnp.sqrt(params["bn2_v"] + BN_EPS)
    b2 = params["bn2_b"] - params["bn2_m"] * s2
    y = y * s2[None, :, None, None] + b2[None, :, None, None]
    return jnp.concatenate([xs_nchw, y[None]], axis=0), all_sq


# ----------------------------------- main ------------------------------------
if __name__ == "__main__":
    D, B, C, H, W = 3, 2, 32, 8, 8      # xs depth, batch, hidden_dim, spatial
    KSZ = 5                             # kernel_size

    key = jax.random.PRNGKey(0)
    keys = jax.random.split(key, 10)
    params = {
        "gamma": INIT_SCALE * jnp.ones((C,), jnp.float32),          # LayerScaler
        "w_dw": 0.2 * jax.random.normal(keys[0], (C, KSZ, KSZ), jnp.float32),
        "b_dw": 0.1 * jax.random.normal(keys[1], (C,), jnp.float32),
        "bn1_w": 1.0 + 0.1 * jax.random.normal(keys[2], (C,), jnp.float32),
        "bn1_b": 0.1 * jax.random.normal(keys[3], (C,), jnp.float32),
        "bn1_m": jnp.zeros((C,), jnp.float32),
        "bn1_v": jnp.ones((C,), jnp.float32),
        "w_pw": (1.0 / np.sqrt(C)) * jax.random.normal(keys[4], (C, C), jnp.float32),
        "b_pw": 0.1 * jax.random.normal(keys[5], (C,), jnp.float32),
        "bn2_w": 1.0 + 0.1 * jax.random.normal(keys[6], (C,), jnp.float32),
        "bn2_b": 0.1 * jax.random.normal(keys[7], (C,), jnp.float32),
        "bn2_m": jnp.zeros((C,), jnp.float32),
        "bn2_v": jnp.ones((C,), jnp.float32),
    }
    xs = jax.random.normal(keys[8], (D, B, C, H, W), jnp.float32)
    all_squeezed = jax.random.normal(keys[9], (D - 1, B, C), jnp.float32)

    fwd = jax.jit(layer_forward)
    xs_out, allsq_out = fwd(xs, all_squeezed, params)
    jax.block_until_ready((xs_out, allsq_out))

    assert xs_out.shape == (D + 1, B, C, H, W)
    assert allsq_out.shape == (D, B, C)

    xs_ref, allsq_ref = reference_forward(xs, all_squeezed, params)
    # all_squeezed path is exact f32 -> tight tolerance
    np.testing.assert_allclose(np.asarray(allsq_out), np.asarray(allsq_ref),
                               rtol=1e-3, atol=1e-5)
    # block path uses bf16 MXU matmul + approx reciprocal + tanh GELU -> looser
    np.testing.assert_allclose(np.asarray(xs_out), np.asarray(xs_ref),
                               rtol=3e-2, atol=3e-2)

    print("KERNEL_OK")
</pallas_src>

<mosaic_0001>
module attributes {stable_mosaic.version = 11 : i64} {
  func.func @_layer_kernel(%arg0: i32, %arg1: memref<3x2x64x32xf32, #tpu.memory_space<vmem>>, %arg2: memref<2x2x32xf32, #tpu.memory_space<vmem>>, %arg3: memref<1x32xf32, #tpu.memory_space<vmem>>, %arg4: memref<25x32xf32, #tpu.memory_space<vmem>>, %arg5: memref<1x32xf32, #tpu.memory_space<vmem>>, %arg6: memref<1x32xf32, #tpu.memory_space<vmem>>, %arg7: memref<1x32xf32, #tpu.memory_space<vmem>>, %arg8: memref<32x32xf32, #tpu.memory_space<vmem>>, %arg9: memref<32x1xf32, #tpu.memory_space<vmem>>, %arg10: memref<32x1xf32, #tpu.memory_space<vmem>>, %arg11: memref<32x1xf32, #tpu.memory_space<vmem>>, %arg12: memref<32x128xf32, #tpu.memory_space<vmem>>, %arg13: memref<2x32xf32, #tpu.memory_space<vmem>>, %arg14: memref<2x12x12x32xf32, #tpu.memory_space<vmem>>) attributes {dimension_semantics = [#tpu.dimension_semantics<parallel>], iteration_bounds = array<i64: 1>, scalar_prefetch = 0 : i64, scratch_operands = 1 : i64, tpu.core_type = #tpu.core_type<tc>, window_params = [{transform_indices = @transform_0, window_bounds = array<i64: 3, 2, 64, 32>}, {transform_indices = @transform_1, window_bounds = array<i64: 2, 2, 32>}, {pipeline_mode = #tpu.pipeline_mode<synchronous>, transform_indices = @transform_2, window_bounds = array<i64: 1, 32>}, {pipeline_mode = #tpu.pipeline_mode<synchronous>, transform_indices = @transform_3, window_bounds = array<i64: 25, 32>}, {pipeline_mode = #tpu.pipeline_mode<synchronous>, transform_indices = @transform_4, window_bounds = array<i64: 1, 32>}, {pipeline_mode = #tpu.pipeline_mode<synchronous>, transform_indices = @transform_5, window_bounds = array<i64: 1, 32>}, {pipeline_mode = #tpu.pipeline_mode<synchronous>, transform_indices = @transform_6, window_bounds = array<i64: 1, 32>}, {pipeline_mode = #tpu.pipeline_mode<synchronous>, transform_indices = @transform_7, window_bounds = array<i64: 32, 32>}, {pipeline_mode = #tpu.pipeline_mode<synchronous>, transform_indices = @transform_8, window_bounds = array<i64: 32, 1>}, {pipeline_mode = #tpu.pipeline_mode<synchronous>, transform_indices = @transform_9, window_bounds = array<i64: 32, 1>}, {pipeline_mode = #tpu.pipeline_mode<synchronous>, transform_indices = @transform_10, window_bounds = array<i64: 32, 1>}, {transform_indices = @transform_11, window_bounds = array<i64: 32, 128>}, {transform_indices = @transform_12, window_bounds = array<i64: 2, 32>}]} {
    %c2 = arith.constant 2 : index
    %c0 = arith.constant 0 : index
    %c0_0 = arith.constant 0 : index
    %c0_1 = arith.constant 0 : index
    %0 = vector.load %arg1[%c2, %c0, %c0_0, %c0_1] : memref<3x2x64x32xf32, #tpu.memory_space<vmem>>, vector<1x2x64x32xf32>
    %1 = vector.shape_cast %0 : vector<1x2x64x32xf32> to vector<2x64x32xf32>
    %cst = arith.constant dense<0.000000e+00> : vector<2x32xf32>
    %2 = vector.multi_reduction <add>, %1, %cst [1] : vector<2x64x32xf32> to vector<2x32xf32>
    %cst_2 = arith.constant 6.400000e+01 : f32
    %3 = vector.broadcast %cst_2 : f32 to vector<2x32xf32>
    %4 = arith.divf %2, %3 : vector<2x32xf32>
    %c0_3 = arith.constant 0 : index
    %c0_4 = arith.constant 0 : index
    %5 = vector.load %arg3[%c0_3, %c0_4] : memref<1x32xf32, #tpu.memory_space<vmem>>, vector<1x32xf32>
    %6 = vector.broadcast %5 : vector<1x32xf32> to vector<2x32xf32>
    %7 = arith.mulf %4, %6 : vector<2x32xf32>
    %c0_5 = arith.constant 0 : index
    %c0_6 = arith.constant 0 : index
    %8 = vector.load %arg13[%c0_5, %c0_6] : memref<2x32xf32, #tpu.memory_space<vmem>>, vector<2x32xf32>
    tpu.vector_store %arg13[%c0_5, %c0_6], %7 {strides = array<i32>} : memref<2x32xf32, #tpu.memory_space<vmem>>, vector<2x32xf32>,
    %c0_7 = arith.constant 0 : index
    %c0_8 = arith.constant 0 : index
    %c0_9 = arith.constant 0 : index
    %9 = vector.load %arg2[%c0_7, %c0_8, %c0_9] : memref<2x2x32xf32, #tpu.memory_space<vmem>>, vector<2x2x32xf32>
    %10 = vector.shape_cast %7 : vector<2x32xf32> to vector<2x1x32xf32>
    %11 = vector.broadcast %10 : vector<2x1x32xf32> to vector<2x2x32xf32>
    %12 = arith.mulf %9, %11 : vector<2x2x32xf32>
    %cst_10 = arith.constant dense<0.000000e+00> : vector<2x2xf32>
    %13 = vector.multi_reduction <add>, %12, %cst_10 [2] : vector<2x2x32xf32> to vector<2x2xf32>
    %cst_11 = arith.constant 1.000000e+00 : f32
    %14 = vector.broadcast %cst_11 : f32 to vector<2x2xf32>
    %15 = arith.mulf %13, %14 : vector<2x2xf32>
    %16 = arith.mulf %7, %7 : vector<2x32xf32>
    %cst_12 = arith.constant dense<0.000000e+00> : vector<2xf32>
    %17 = vector.multi_reduction <add>, %16, %cst_12 [1] : vector<2x32xf32> to vector<2xf32>
    %18 = vector.shape_cast %17 : vector<2xf32> to vector<2x1xf32>
    %cst_13 = arith.constant 1.000000e+00 : f32
    %19 = vector.broadcast %cst_13 : f32 to vector<2x1xf32>
    %20 = arith.mulf %18, %19 : vector<2x1xf32>
    %cst_14 = arith.constant dense<0xFF800000> : vector<2xf32>
    %21 = vector.multi_reduction <maximumf>, %15, %cst_14 [1] : vector<2x2xf32> to vector<2xf32>
    %22 = vector.shape_cast %21 : vector<2xf32> to vector<2x1xf32>
    %23 = arith.maximumf %22, %20 : vector<2x1xf32>
    %24 = vector.broadcast %23 : vector<2x1xf32> to vector<2x2xf32>
    %25 = arith.subf %15, %24 : vector<2x2xf32>
    %26 = math.exp %25 : vector<2x2xf32>
    %27 = arith.subf %20, %23 : vector<2x1xf32>
    %28 = math.exp %27 : vector<2x1xf32>
    %cst_15 = arith.constant dense<0.000000e+00> : vector<2xf32>
    %29 = vector.multi_reduction <add>, %26, %cst_15 [1] : vector<2x2xf32> to vector<2xf32>
    %30 = vector.shape_cast %29 : vector<2xf32> to vector<2x1xf32>
    %31 = arith.addf %30, %28 : vector<2x1xf32>
    %32 = tpu.reciprocal %31 {approx = true} : vector<2x1xf32> -> vector<2x1xf32>
    %33 = vector.broadcast %32 : vector<2x1xf32> to vector<2x2xf32>
    %34 = arith.mulf %26, %33 : vector<2x2xf32>
    %35 = arith.mulf %28, %32 : vector<2x1xf32>
    %36 = vector.shape_cast %35 : vector<2x1xf32> to vector<2x1x1xf32>
    %37 = vector.broadcast %36 : vector<2x1x1xf32> to vector<2x64x32xf32>
    %38 = arith.mulf %37, %1 : vector<2x64x32xf32>
    %39 = vector.extract_strided_slice %34 {offsets = [0, 0], sizes = [2, 1], strides = [1, 1]} : vector<2x2xf32> to vector<2x1xf32>
    %40 = vector.shape_cast %39 : vector<2x1xf32> to vector<2x1x1xf32>
    %c0_16 = arith.constant 0 : index
    %c0_17 = arith.constant 0 : index
    %c0_18 = arith.constant 0 : index
    %c0_19 = arith.constant 0 : index
    %41 = vector.load %arg1[%c0_16, %c0_17, %c0_18, %c0_19] : memref<3x2x64x32xf32, #tpu.memory_space<vmem>>, vector<1x2x64x32xf32>
    %42 = vector.shape_cast %41 : vector<1x2x64x32xf32> to vector<2x64x32xf32>
    %43 = vector.broadcast %40 : vector<2x1x1xf32> to vector<2x64x32xf32>
    %44 = arith.mulf %43, %42 : vector<2x64x32xf32>
    %45 = arith.addf %38, %44 : vector<2x64x32xf32>
    %46 = vector.extract_strided_slice %34 {offsets = [0, 1], sizes = [2, 1], strides = [1, 1]} : vector<2x2xf32> to vector<2x1xf32>
    %47 = vector.shape_cast %46 : vector<2x1xf32> to vector<2x1x1xf32>
    %c1 = arith.constant 1 : index
    %c0_20 = arith.constant 0 : index
    %c0_21 = arith.constant 0 : index
    %c0_22 = arith.constant 0 : index
    %48 = vector.load %arg1[%c1, %c0_20, %c0_21, %c0_22] : memref<3x2x64x32xf32, #tpu.memory_space<vmem>>, vector<1x2x64x32xf32>
    %49 = vector.shape_cast %48 : vector<1x2x64x32xf32> to vector<2x64x32xf32>
    %50 = vector.broadcast %47 : vector<2x1x1xf32> to vector<2x64x32xf32>
    %51 = arith.mulf %50, %49 : vector<2x64x32xf32>
    %52 = arith.addf %45, %51 : vector<2x64x32xf32>
    %53 = vector.shape_cast %52 : vector<2x64x32xf32> to vector<2x8x8x32xf32>
    %cst_23 = arith.constant 0.000000e+00 : f32
    %54 = vector.broadcast %cst_23 : f32 to vector<2x2x12x32xf32>
    %c0_24 = arith.constant 0 : index
    %c0_25 = arith.constant 0 : index
    %c0_26 = arith.constant 0 : index
    %c0_27 = arith.constant 0 : index
    %55 = vector.load %arg14[%c0_24, %c0_25, %c0_26, %c0_27] : memref<2x12x12x32xf32, #tpu.memory_space<vmem>>, vector<2x2x12x32xf32>
    tpu.vector_store %arg14[%c0_24, %c0_25, %c0_26, %c0_27], %54 {strides = array<i32>} : memref<2x12x12x32xf32, #tpu.memory_space<vmem>>, vector<2x2x12x32xf32>,
    %cst_28 = arith.constant 0.000000e+00 : f32
    %56 = vector.broadcast %cst_28 : f32 to vector<2x2x12x32xf32>
    %c0_29 = arith.constant 0 : index
    %c10 = arith.constant 10 : index
    %c0_30 = arith.constant 0 : index
    %c0_31 = arith.constant 0 : index
    %57 = vector.load %arg14[%c0_29, %c10, %c0_30, %c0_31] : memref<2x12x12x32xf32, #tpu.memory_space<vmem>>, vector<2x2x12x32xf32>
    tpu.vector_store %arg14[%c0_29, %c10, %c0_30, %c0_31], %56 {strides = array<i32>} : memref<2x12x12x32xf32, #tpu.memory_space<vmem>>, vector<2x2x12x32xf32>,
    %cst_32 = arith.constant 0.000000e+00 : f32
    %58 = vector.broadcast %cst_32 : f32 to vector<2x8x2x32xf32>
    %c0_33 = arith.constant 0 : index
    %c2_34 = arith.constant 2 : index
    %c0_35 = arith.constant 0 : index
    %c0_36 = arith.constant 0 : index
    %59 = vector.load %arg14[%c0_33, %c2_34, %c0_35, %c0_36] : memref<2x12x12x32xf32, #tpu.memory_space<vmem>>, vector<2x8x2x32xf32>
    tpu.vector_store %arg14[%c0_33, %c2_34, %c0_35, %c0_36], %58 {strides = array<i32>} : memref<2x12x12x32xf32, #tpu.memory_space<vmem>>, vector<2x8x2x32xf32>,
    %cst_37 = arith.constant 0.000000e+00 : f32
    %60 = vector.broadcast %cst_37 : f32 to vector<2x8x2x32xf32>
    %c0_38 = arith.constant 0 : index
    %c2_39 = arith.constant 2 : index
    %c10_40 = arith.constant 10 : index
    %c0_41 = arith.constant 0 : index
    %61 = vector.load %arg14[%c0_38, %c2_39, %c10_40, %c0_41] : memref<2x12x12x32xf32, #tpu.memory_space<vmem>>, vector<2x8x2x32xf32>
    tpu.vector_store %arg14[%c0_38, %c2_39, %c10_40, %c0_41], %60 {strides = array<i32>} : memref<2x12x12x32xf32, #tpu.memory_space<vmem>>, vector<2x8x2x32xf32>,
    %c0_42 = arith.constant 0 : index
    %c2_43 = arith.constant 2 : index
    %c2_44 = arith.constant 2 : index
    %c0_45 = arith.constant 0 : index
    %62 = vector.load %arg14[%c0_42, %c2_43, %c2_44, %c0_45] : memref<2x12x12x32xf32, #tpu.memory_space<vmem>>, vector<2x8x8x32xf32>
    tpu.vector_store %arg14[%c0_42, %c2_43, %c2_44, %c0_45], %53 {strides = array<i32>} : memref<2x12x12x32xf32, #tpu.memory_space<vmem>>, vector<2x8x8x32xf32>,
    %c0_46 = arith.constant 0 : index
    %c0_47 = arith.constant 0 : index
    %63 = vector.load %arg4[%c0_46, %c0_47] : memref<25x32xf32, #tpu.memory_space<vmem>>, vector<25x32xf32>
    %cst_48 = arith.constant 0.000000e+00 : f32
    %64 = vector.broadcast %cst_48 : f32 to vector<2x8x8x32xf32>
    %c0_49 = arith.constant 0 : index
    %c0_50 = arith.constant 0 : index
    %65 = vector.load %arg5[%c0_49, %c0_50] : memref<1x32xf32, #tpu.memory_space<vmem>>, vector<1x32xf32>
    %66 = vector.shape_cast %65 : vector<1x32xf32> to vector<1x1x1x32xf32>
    %67 = vector.broadcast %66 : vector<1x1x1x32xf32> to vector<2x8x8x32xf32>
    %68 = arith.addf %64, %67 : vector<2x8x8x32xf32>
    %69 = vector.extract_strided_slice %63 {offsets = [0, 0], sizes = [1, 32], strides = [1, 1]} : vector<25x32xf32> to vector<1x32xf32>
    %c0_51 = arith.constant 0 : index
    %c0_52 = arith.constant 0 : index
    %c0_53 = arith.constant 0 : index
    %c0_54 = arith.constant 0 : index
    %70 = vector.load %arg14[%c0_51, %c0_52, %c0_53, %c0_54] : memref<2x12x12x32xf32, #tpu.memory_space<vmem>>, vector<2x8x8x32xf32>
    %71 = vector.shape_cast %69 : vector<1x32xf32> to vector<1x1x1x32xf32>
    %72 = vector.broadcast %71 : vector<1x1x1x32xf32> to vector<2x8x8x32xf32>
    %73 = arith.mulf %70, %72 : vector<2x8x8x32xf32>
    %74 = arith.addf %68, %73 : vector<2x8x8x32xf32>
    %75 = vector.extract_strided_slice %63 {offsets = [1, 0], sizes = [1, 32], strides = [1, 1]} : vector<25x32xf32> to vector<1x32xf32>
    %c0_55 = arith.constant 0 : index
    %c0_56 = arith.constant 0 : index
    %c1_57 = arith.constant 1 : index
    %c0_58 = arith.constant 0 : index
    %76 = vector.load %arg14[%c0_55, %c0_56, %c1_57, %c0_58] : memref<2x12x12x32xf32, #tpu.memory_space<vmem>>, vector<2x8x8x32xf32>
    %77 = vector.shape_cast %75 : vector<1x32xf32> to vector<1x1x1x32xf32>
    %78 = vector.broadcast %77 : vector<1x1x1x32xf32> to vector<2x8x8x32xf32>
    %79 = arith.mulf %76, %78 : vector<2x8x8x32xf32>
    %80 = arith.addf %74, %79 : vector<2x8x8x32xf32>
    %81 = vector.extract_strided_slice %63 {offsets = [2, 0], sizes = [1, 32], strides = [1, 1]} : vector<25x32xf32> to vector<1x32xf32>
    %c0_59 = arith.constant 0 : index
    %c0_60 = arith.constant 0 : index
    %c2_61 = arith.constant 2 : index
    %c0_62 = arith.constant 0 : index
    %82 = vector.load %arg14[%c0_59, %c0_60, %c2_61, %c0_62] : memref<2x12x12x32xf32, #tpu.memory_space<vmem>>, vector<2x8x8x32xf32>
    %83 = vector.shape_cast %81 : vector<1x32xf32> to vector<1x1x1x32xf32>
    %84 = vector.broadcast %83 : vector<1x1x1x32xf32> to vector<2x8x8x32xf32>
    %85 = arith.mulf %82, %84 : vector<2x8x8x32xf32>
    %86 = arith.addf %80, %85 : vector<2x8x8x32xf32>
    %87 = vector.extract_strided_slice %63 {offsets = [3, 0], sizes = [1, 32], strides = [1, 1]} : vector<25x32xf32> to vector<1x32xf32>
    %c0_63 = arith.constant 0 : index
    %c0_64 = arith.constant 0 : index
    %c3 = arith.constant 3 : index
    %c0_65 = arith.constant 0 : index
    %88 = vector.load %arg14[%c0_63, %c0_64, %c3, %c0_65] : memref<2x12x12x32xf32, #tpu.memory_space<vmem>>, vector<2x8x8x32xf32>
    %89 = vector.shape_cast %87 : vector<1x32xf32> to vector<1x1x1x32xf32>
    %90 = vector.broadcast %89 : vector<1x1x1x32xf32> to vector<2x8x8x32xf32>
    %91 = arith.mulf %88, %90 : vector<2x8x8x32xf32>
    %92 = arith.addf %86, %91 : vector<2x8x8x32xf32>
    %93 = vector.extract_strided_slice %63 {offsets = [4, 0], sizes = [1, 32], strides = [1, 1]} : vector<25x32xf32> to vector<1x32xf32>
    %c0_66 = arith.constant 0 : index
    %c0_67 = arith.constant 0 : index
    %c4 = arith.constant 4 : index
    %c0_68 = arith.constant 0 : index
    %94 = vector.load %arg14[%c0_66, %c0_67, %c4, %c0_68] : memref<2x12x12x32xf32, #tpu.memory_space<vmem>>, vector<2x8x8x32xf32>
    %95 = vector.shape_cast %93 : vector<1x32xf32> to vector<1x1x1x32xf32>
    %96 = vector.broadcast %95 : vector<1x1x1x32xf32> to vector<2x8x8x32xf32>
    %97 = arith.mulf %94, %96 : vector<2x8x8x32xf32>
    %98 = arith.addf %92, %97 : vector<2x8x8x32xf32>
    %99 = vector.extract_strided_slice %63 {offsets = [5, 0], sizes = [1, 32], strides = [1, 1]} : vector<25x32xf32> to vector<1x32xf32>
    %c0_69 = arith.constant 0 : index
    %c1_70 = arith.constant 1 : index
    %c0_71 = arith.constant 0 : index
    %c0_72 = arith.constant 0 : index
    %100 = vector.load %arg14[%c0_69, %c1_70, %c0_71, %c0_72] : memref<2x12x12x32xf32, #tpu.memory_space<vmem>>, vector<2x8x8x32xf32>
    %101 = vector.shape_cast %99 : vector<1x32xf32> to vector<1x1x1x32xf32>
    %102 = vector.broadcast %101 : vector<1x1x1x32xf32> to vector<2x8x8x32xf32>
    %103 = arith.mulf %100, %102 : vector<2x8x8x32xf32>
    %104 = arith.addf %98, %103 : vector<2x8x8x32xf32>
    %105 = vector.extract_strided_slice %63 {offsets = [6, 0], sizes = [1, 32], strides = [1, 1]} : vector<25x32xf32> to vector<1x32xf32>
    %c0_73 = arith.constant 0 : index
    %c1_74 = arith.constant 1 : index
    %c1_75 = arith.constant 1 : index
    %c0_76 = arith.constant 0 : index
    %106 = vector.load %arg14[%c0_73, %c1_74, %c1_75, %c0_76] : memref<2x12x12x32xf32, #tpu.memory_space<vmem>>, vector<2x8x8x32xf32>
    %107 = vector.shape_cast %105 : vector<1x32xf32> to vector<1x1x1x32xf32>
    %108 = vector.broadcast %107 : vector<1x1x1x32xf32> to vector<2x8x8x32xf32>
    %109 = arith.mulf %106, %108 : vector<2x8x8x32xf32>
    %110 = arith.addf %104, %109 : vector<2x8x8x32xf32>
    %111 = vector.extract_strided_slice %63 {offsets = [7, 0], sizes = [1, 32], strides = [1, 1]} : vector<25x32xf32> to vector<1x32xf32>
    %c0_77 = arith.constant 0 : index
    %c1_78 = arith.constant 1 : index
    %c2_79 = arith.constant 2 : index
    %c0_80 = arith.constant 0 : index
    %112 = vector.load %arg14[%c0_77, %c1_78, %c2_79, %c0_80] : memref<2x12x12x32xf32, #tpu.memory_space<vmem>>, vector<2x8x8x32xf32>
    %113 = vector.shape_cast %111 : vector<1x32xf32> to vector<1x1x1x32xf32>
    %114 = vector.broadcast %113 : vector<1x1x1x32xf32> to vector<2x8x8x32xf32>
    %115 = arith.mulf %112, %114 : vector<2x8x8x32xf32>
    %116 = arith.addf %110, %115 : vector<2x8x8x32xf32>
    %117 = vector.extract_strided_slice %63 {offsets = [8, 0], sizes = [1, 32], strides = [1, 1]} : vector<25x32xf32> to vector<1x32xf32>
    %c0_81 = arith.constant 0 : index
    %c1_82 = arith.constant 1 : index
    %c3_83 = arith.constant 3 : index
    %c0_84 = arith.constant 0 : index
    %118 = vector.load %arg14[%c0_81, %c1_82, %c3_83, %c0_84] : memref<2x12x12x32xf32, #tpu.memory_space<vmem>>, vector<2x8x8x32xf32>
    %119 = vector.shape_cast %117 : vector<1x32xf32> to vector<1x1x1x32xf32>
    %120 = vector.broadcast %119 : vector<1x1x1x32xf32> to vector<2x8x8x32xf32>
    %121 = arith.mulf %118, %120 : vector<2x8x8x32xf32>
    %122 = arith.addf %116, %121 : vector<2x8x8x32xf32>
    %123 = vector.extract_strided_slice %63 {offsets = [9, 0], sizes = [1, 32], strides = [1, 1]} : vector<25x32xf32> to vector<1x32xf32>
    %c0_85 = arith.constant 0 : index
    %c1_86 = arith.constant 1 : index
    %c4_87 = arith.constant 4 : index
    %c0_88 = arith.constant 0 : index
    %124 = vector.load %arg14[%c0_85, %c1_86, %c4_87, %c0_88] : memref<2x12x12x32xf32, #tpu.memory_space<vmem>>, vector<2x8x8x32xf32>
    %125 = vector.shape_cast %123 : vector<1x32xf32> to vector<1x1x1x32xf32>
    %126 = vector.broadcast %125 : vector<1x1x1x32xf32> to vector<2x8x8x32xf32>
    %127 = arith.mulf %124, %126 : vector<2x8x8x32xf32>
    %128 = arith.addf %122, %127 : vector<2x8x8x32xf32>
    %129 = vector.extract_strided_slice %63 {offsets = [10, 0], sizes = [1, 32], strides = [1, 1]} : vector<25x32xf32> to vector<1x32xf32>
    %c0_89 = arith.constant 0 : index
    %c2_90 = arith.constant 2 : index
    %c0_91 = arith.constant 0 : index
    %c0_92 = arith.constant 0 : index
    %130 = vector.load %arg14[%c0_89, %c2_90, %c0_91, %c0_92] : memref<2x12x12x32xf32, #tpu.memory_space<vmem>>, vector<2x8x8x32xf32>
    %131 = vector.shape_cast %129 : vector<1x32xf32> to vector<1x1x1x32xf32>
    %132 = vector.broadcast %131 : vector<1x1x1x32xf32> to vector<2x8x8x32xf32>
    %133 = arith.mulf %130, %132 : vector<2x8x8x32xf32>
    %134 = arith.addf %128, %133 : vector<2x8x8x32xf32>
    %135 = vector.extract_strided_slice %63 {offsets = [11, 0], sizes = [1, 32], strides = [1, 1]} : vector<25x32xf32> to vector<1x32xf32>
    %c0_93 = arith.constant 0 : index
    %c2_94 = arith.constant 2 : index
    %c1_95 = arith.constant 1 : index
    %c0_96 = arith.constant 0 : index
    %136 = vector.load %arg14[%c0_93, %c2_94, %c1_95, %c0_96] : memref<2x12x12x32xf32, #tpu.memory_space<vmem>>, vector<2x8x8x32xf32>
    %137 = vector.shape_cast %135 : vector<1x32xf32> to vector<1x1x1x32xf32>
    %138 = vector.broadcast %137 : vector<1x1x1x32xf32> to vector<2x8x8x32xf32>
    %139 = arith.mulf %136, %138 : vector<2x8x8x32xf32>
    %140 = arith.addf %134, %139 : vector<2x8x8x32xf32>
    %141 = vector.extract_strided_slice %63 {offsets = [12, 0], sizes = [1, 32], strides = [1, 1]} : vector<25x32xf32> to vector<1x32xf32>
    %c0_97 = arith.constant 0 : index
    %c2_98 = arith.constant 2 : index
    %c2_99 = arith.constant 2 : index
    %c0_100 = arith.constant 0 : index
    %142 = vector.load %arg14[%c0_97, %c2_98, %c2_99, %c0_100] : memref<2x12x12x32xf32, #tpu.memory_space<vmem>>, vector<2x8x8x32xf32>
    %143 = vector.shape_cast %141 : vector<1x32xf32> to vector<1x1x1x32xf32>
    %144 = vector.broadcast %143 : vector<1x1x1x32xf32> to vector<2x8x8x32xf32>
    %145 = arith.mulf %142, %144 : vector<2x8x8x32xf32>
    %146 = arith.addf %140, %145 : vector<2x8x8x32xf32>
    %147 = vector.extract_strided_slice %63 {offsets = [13, 0], sizes = [1, 32], strides = [1, 1]} : vector<25x32xf32> to vector<1x32xf32>
    %c0_101 = arith.constant 0 : index
    %c2_102 = arith.constant 2 : index
    %c3_103 = arith.constant 3 : index
    %c0_104 = arith.constant 0 : index
    %148 = vector.load %arg14[%c0_101, %c2_102, %c3_103, %c0_104] : memref<2x12x12x32xf32, #tpu.memory_space<vmem>>, vector<2x8x8x32xf32>
    %149 = vector.shape_cast %147 : vector<1x32xf32> to vector<1x1x1x32xf32>
    %150 = vector.broadcast %149 : vector<1x1x1x32xf32> to vector<2x8x8x32xf32>
    %151 = arith.mulf %148, %150 : vector<2x8x8x32xf32>
    %152 = arith.addf %146, %151 : vector<2x8x8x32xf32>
    %153 = vector.extract_strided_slice %63 {offsets = [14, 0], sizes = [1, 32], strides = [1, 1]} : vector<25x32xf32> to vector<1x32xf32>
    %c0_105 = arith.constant 0 : index
    %c2_106 = arith.constant 2 : index
    %c4_107 = arith.constant 4 : index
    %c0_108 = arith.constant 0 : index
    %154 = vector.load %arg14[%c0_105, %c2_106, %c4_107, %c0_108] : memref<2x12x12x32xf32, #tpu.memory_space<vmem>>, vector<2x8x8x32xf32>
    %155 = vector.shape_cast %153 : vector<1x32xf32> to vector<1x1x1x32xf32>
    %156 = vector.broadcast %155 : vector<1x1x1x32xf32> to vector<2x8x8x32xf32>
    %157 = arith.mulf %154, %156 : vector<2x8x8x32xf32>
    %158 = arith.addf %152, %157 : vector<2x8x8x32xf32>
    %159 = vector.extract_strided_slice %63 {offsets = [15, 0], sizes = [1, 32], strides = [1, 1]} : vector<25x32xf32> to vector<1x32xf32>
    %c0_109 = arith.constant 0 : index
    %c3_110 = arith.constant 3 : index
    %c0_111 = arith.constant 0 : index
    %c0_112 = arith.constant 0 : index
    %160 = vector.load %arg14[%c0_109, %c3_110, %c0_111, %c0_112] : memref<2x12x12x32xf32, #tpu.memory_space<vmem>>, vector<2x8x8x32xf32>
    %161 = vector.shape_cast %159 : vector<1x32xf32> to vector<1x1x1x32xf32>
    %162 = vector.broadcast %161 : vector<1x1x1x32xf32> to vector<2x8x8x32xf32>
    %163 = arith.mulf %160, %162 : vector<2x8x8x32xf32>
    %164 = arith.addf %158, %163 : vector<2x8x8x32xf32>
    %165 = vector.extract_strided_slice %63 {offsets = [16, 0], sizes = [1, 32], strides = [1, 1]} : vector<25x32xf32> to vector<1x32xf32>
    %c0_113 = arith.constant 0 : index
    %c3_114 = arith.constant 3 : index
    %c1_115 = arith.constant 1 : index
    %c0_116 = arith.constant 0 : index
    %166 = vector.load %arg14[%c0_113, %c3_114, %c1_115, %c0_116] : memref<2x12x12x32xf32, #tpu.memory_space<vmem>>, vector<2x8x8x32xf32>
    %167 = vector.shape_cast %165 : vector<1x32xf32> to vector<1x1x1x32xf32>
    %168 = vector.broadcast %167 : vector<1x1x1x32xf32> to vector<2x8x8x32xf32>
    %169 = arith.mulf %166, %168 : vector<2x8x8x32xf32>
    %170 = arith.addf %164, %169 : vector<2x8x8x32xf32>
    %171 = vector.extract_strided_slice %63 {offsets = [17, 0], sizes = [1, 32], strides = [1, 1]} : vector<25x32xf32> to vector<1x32xf32>
    %c0_117 = arith.constant 0 : index
    %c3_118 = arith.constant 3 : index
    %c2_119 = arith.constant 2 : index
    %c0_120 = arith.constant 0 : index
    %172 = vector.load %arg14[%c0_117, %c3_118, %c2_119, %c0_120] : memref<2x12x12x32xf32, #tpu.memory_space<vmem>>, vector<2x8x8x32xf32>
    %173 = vector.shape_cast %171 : vector<1x32xf32> to vector<1x1x1x32xf32>
    %174 = vector.broadcast %173 : vector<1x1x1x32xf32> to vector<2x8x8x32xf32>
    %175 = arith.mulf %172, %174 : vector<2x8x8x32xf32>
    %176 = arith.addf %170, %175 : vector<2x8x8x32xf32>
    %177 = vector.extract_strided_slice %63 {offsets = [18, 0], sizes = [1, 32], strides = [1, 1]} : vector<25x32xf32> to vector<1x32xf32>
    %c0_121 = arith.constant 0 : index
    %c3_122 = arith.constant 3 : index
    %c3_123 = arith.constant 3 : index
    %c0_124 = arith.constant 0 : index
    %178 = vector.load %arg14[%c0_121, %c3_122, %c3_123, %c0_124] : memref<2x12x12x32xf32, #tpu.memory_space<vmem>>, vector<2x8x8x32xf32>
    %179 = vector.shape_cast %177 : vector<1x32xf32> to vector<1x1x1x32xf32>
    %180 = vector.broadcast %179 : vector<1x1x1x32xf32> to vector<2x8x8x32xf32>
    %181 = arith.mulf %178, %180 : vector<2x8x8x32xf32>
    %182 = arith.addf %176, %181 : vector<2x8x8x32xf32>
    %183 = vector.extract_strided_slice %63 {offsets = [19, 0], sizes = [1, 32], strides = [1, 1]} : vector<25x32xf32> to vector<1x32xf32>
    %c0_125 = arith.constant 0 : index
    %c3_126 = arith.constant 3 : index
    %c4_127 = arith.constant 4 : index
    %c0_128 = arith.constant 0 : index
    %184 = vector.load %arg14[%c0_125, %c3_126, %c4_127, %c0_128] : memref<2x12x12x32xf32, #tpu.memory_space<vmem>>, vector<2x8x8x32xf32>
    %185 = vector.shape_cast %183 : vector<1x32xf32> to vector<1x1x1x32xf32>
    %186 = vector.broadcast %185 : vector<1x1x1x32xf32> to vector<2x8x8x32xf32>
    %187 = arith.mulf %184, %186 : vector<2x8x8x32xf32>
    %188 = arith.addf %182, %187 : vector<2x8x8x32xf32>
    %189 = vector.extract_strided_slice %63 {offsets = [20, 0], sizes = [1, 32], strides = [1, 1]} : vector<25x32xf32> to vector<1x32xf32>
    %c0_129 = arith.constant 0 : index
    %c4_130 = arith.constant 4 : index
    %c0_131 = arith.constant 0 : index
    %c0_132 = arith.constant 0 : index
    %190 = vector.load %arg14[%c0_129, %c4_130, %c0_131, %c0_132] : memref<2x12x12x32xf32, #tpu.memory_space<vmem>>, vector<2x8x8x32xf32>
    %191 = vector.shape_cast %189 : vector<1x32xf32> to vector<1x1x1x32xf32>
    %192 = vector.broadcast %191 : vector<1x1x1x32xf32> to vector<2x8x8x32xf32>
    %193 = arith.mulf %190, %192 : vector<2x8x8x32xf32>
    %194 = arith.addf %188, %193 : vector<2x8x8x32xf32>
    %195 = vector.extract_strided_slice %63 {offsets = [21, 0], sizes = [1, 32], strides = [1, 1]} : vector<25x32xf32> to vector<1x32xf32>
    %c0_133 = arith.constant 0 : index
    %c4_134 = arith.constant 4 : index
    %c1_135 = arith.constant 1 : index
    %c0_136 = arith.constant 0 : index
    %196 = vector.load %arg14[%c0_133, %c4_134, %c1_135, %c0_136] : memref<2x12x12x32xf32, #tpu.memory_space<vmem>>, vector<2x8x8x32xf32>
    %197 = vector.shape_cast %195 : vector<1x32xf32> to vector<1x1x1x32xf32>
    %198 = vector.broadcast %197 : vector<1x1x1x32xf32> to vector<2x8x8x32xf32>
    %199 = arith.mulf %196, %198 : vector<2x8x8x32xf32>
    %200 = arith.addf %194, %199 : vector<2x8x8x32xf32>
    %201 = vector.extract_strided_slice %63 {offsets = [22, 0], sizes = [1, 32], strides = [1, 1]} : vector<25x32xf32> to vector<1x32xf32>
    %c0_137 = arith.constant 0 : index
    %c4_138 = arith.constant 4 : index
    %c2_139 = arith.constant 2 : index
    %c0_140 = arith.constant 0 : index
    %202 = vector.load %arg14[%c0_137, %c4_138, %c2_139, %c0_140] : memref<2x12x12x32xf32, #tpu.memory_space<vmem>>, vector<2x8x8x32xf32>
    %203 = vector.shape_cast %201 : vector<1x32xf32> to vector<1x1x1x32xf32>
    %204 = vector.broadcast %203 : vector<1x1x1x32xf32> to vector<2x8x8x32xf32>
    %205 = arith.mulf %202, %204 : vector<2x8x8x32xf32>
    %206 = arith.addf %200, %205 : vector<2x8x8x32xf32>
    %207 = vector.extract_strided_slice %63 {offsets = [23, 0], sizes = [1, 32], strides = [1, 1]} : vector<25x32xf32> to vector<1x32xf32>
    %c0_141 = arith.constant 0 : index
    %c4_142 = arith.constant 4 : index
    %c3_143 = arith.constant 3 : index
    %c0_144 = arith.constant 0 : index
    %208 = vector.load %arg14[%c0_141, %c4_142, %c3_143, %c0_144] : memref<2x12x12x32xf32, #tpu.memory_space<vmem>>, vector<2x8x8x32xf32>
    %209 = vector.shape_cast %207 : vector<1x32xf32> to vector<1x1x1x32xf32>
    %210 = vector.broadcast %209 : vector<1x1x1x32xf32> to vector<2x8x8x32xf32>
    %211 = arith.mulf %208, %210 : vector<2x8x8x32xf32>
    %212 = arith.addf %206, %211 : vector<2x8x8x32xf32>
    %213 = vector.extract_strided_slice %63 {offsets = [24, 0], sizes = [1, 32], strides = [1, 1]} : vector<25x32xf32> to vector<1x32xf32>
    %c0_145 = arith.constant 0 : index
    %c4_146 = arith.constant 4 : index
    %c4_147 = arith.constant 4 : index
    %c0_148 = arith.constant 0 : index
    %214 = vector.load %arg14[%c0_145, %c4_146, %c4_147, %c0_148] : memref<2x12x12x32xf32, #tpu.memory_space<vmem>>, vector<2x8x8x32xf32>
    %215 = vector.shape_cast %213 : vector<1x32xf32> to vector<1x1x1x32xf32>
    %216 = vector.broadcast %215 : vector<1x1x1x32xf32> to vector<2x8x8x32xf32>
    %217 = arith.mulf %214, %216 : vector<2x8x8x32xf32>
    %218 = arith.addf %212, %217 : vector<2x8x8x32xf32>
    %cst_149 = arith.constant 5.000000e-01 : f32
    %219 = vector.broadcast %cst_149 : f32 to vector<2x8x8x32xf32>
    %220 = arith.mulf %219, %218 : vector<2x8x8x32xf32>
    %cst_150 = arith.constant 4.471500e-02 : f32
    %221 = vector.broadcast %cst_150 : f32 to vector<2x8x8x32xf32>
    %222 = arith.mulf %221, %218 : vector<2x8x8x32xf32>
    %223 = arith.mulf %222, %218 : vector<2x8x8x32xf32>
    %224 = arith.mulf %223, %218 : vector<2x8x8x32xf32>
    %225 = arith.addf %218, %224 : vector<2x8x8x32xf32>
    %cst_151 = arith.constant 0.797884583 : f32
    %226 = vector.broadcast %cst_151 : f32 to vector<2x8x8x32xf32>
    %227 = arith.mulf %226, %225 : vector<2x8x8x32xf32>
    %228 = math.tanh %227 : vector<2x8x8x32xf32>
    %cst_152 = arith.constant 1.000000e+00 : f32
    %229 = vector.broadcast %cst_152 : f32 to vector<2x8x8x32xf32>
    %230 = arith.addf %229, %228 : vector<2x8x8x32xf32>
    %231 = arith.mulf %220, %230 : vector<2x8x8x32xf32>
    %c0_153 = arith.constant 0 : index
    %c0_154 = arith.constant 0 : index
    %232 = vector.load %arg6[%c0_153, %c0_154] : memref<1x32xf32, #tpu.memory_space<vmem>>, vector<1x32xf32>
    %233 = vector.shape_cast %232 : vector<1x32xf32> to vector<1x1x1x32xf32>
    %234 = vector.broadcast %233 : vector<1x1x1x32xf32> to vector<2x8x8x32xf32>
    %235 = arith.mulf %231, %234 : vector<2x8x8x32xf32>
    %c0_155 = arith.constant 0 : index
    %c0_156 = arith.constant 0 : index
    %236 = vector.load %arg7[%c0_155, %c0_156] : memref<1x32xf32, #tpu.memory_space<vmem>>, vector<1x32xf32>
    %237 = vector.shape_cast %236 : vector<1x32xf32> to vector<1x1x1x32xf32>
    %238 = vector.broadcast %237 : vector<1x1x1x32xf32> to vector<2x8x8x32xf32>
    %239 = arith.addf %235, %238 : vector<2x8x8x32xf32>
    %240 = arith.addf %53, %239 : vector<2x8x8x32xf32>
    %241 = vector.shape_cast %240 : vector<2x8x8x32xf32> to vector<128x32xf32>
    %242 = arith.truncf %241 : vector<128x32xf32> to vector<128x32xbf16>
    %c0_157 = arith.constant 0 : index
    %c0_158 = arith.constant 0 : index
    %243 = vector.load %arg8[%c0_157, %c0_158] : memref<32x32xf32, #tpu.memory_space<vmem>>, vector<32x32xf32>
    %244 = arith.truncf %243 : vector<32x32xf32> to vector<32x32xbf16>
    %cst_159 = arith.constant dense<0.000000e+00> : vector<32x128xf32>
    %245 = tpu.matmul %244, %242, %cst_159 {dimension_numbers = #tpu.dot_dimension_numbers<[1], [1], [0], [0], [0, 0, 1, 0], [], []>} : vector<32x32xbf16>, vector<128x32xbf16>, vector<32x128xf32> -> vector<32x128xf32>
    %c0_160 = arith.constant 0 : index
    %c0_161 = arith.constant 0 : index
    %246 = vector.load %arg9[%c0_160, %c0_161] : memref<32x1xf32, #tpu.memory_space<vmem>>, vector<32x1xf32>
    %247 = vector.broadcast %246 : vector<32x1xf32> to vector<32x128xf32>
    %248 = arith.addf %245, %247 : vector<32x128xf32>
    %cst_162 = arith.constant 5.000000e-01 : f32
    %249 = vector.broadcast %cst_162 : f32 to vector<32x128xf32>
    %250 = arith.mulf %249, %248 : vector<32x128xf32>
    %cst_163 = arith.constant 4.471500e-02 : f32
    %251 = vector.broadcast %cst_163 : f32 to vector<32x128xf32>
    %252 = arith.mulf %251, %248 : vector<32x128xf32>
    %253 = arith.mulf %252, %248 : vector<32x128xf32>
    %254 = arith.mulf %253, %248 : vector<32x128xf32>
    %255 = arith.addf %248, %254 : vector<32x128xf32>
    %cst_164 = arith.constant 0.797884583 : f32
    %256 = vector.broadcast %cst_164 : f32 to vector<32x128xf32>
    %257 = arith.mulf %256, %255 : vector<32x128xf32>
    %258 = math.tanh %257 : vector<32x128xf32>
    %cst_165 = arith.constant 1.000000e+00 : f32
    %259 = vector.broadcast %cst_165 : f32 to vector<32x128xf32>
    %260 = arith.addf %259, %258 : vector<32x128xf32>
    %261 = arith.mulf %250, %260 : vector<32x128xf32>
    %c0_166 = arith.constant 0 : index
    %c0_167 = arith.constant 0 : index
    %262 = vector.load %arg10[%c0_166, %c0_167] : memref<32x1xf32, #tpu.memory_space<vmem>>, vector<32x1xf32>
    %263 = vector.broadcast %262 : vector<32x1xf32> to vector<32x128xf32>
    %264 = arith.mulf %261, %263 : vector<32x128xf32>
    %c0_168 = arith.constant 0 : index
    %c0_169 = arith.constant 0 : index
    %265 = vector.load %arg11[%c0_168, %c0_169] : memref<32x1xf32, #tpu.memory_space<vmem>>, vector<32x1xf32>
    %266 = vector.broadcast %265 : vector<32x1xf32> to vector<32x128xf32>
    %267 = arith.addf %264, %266 : vector<32x128xf32>
    %c0_170 = arith.constant 0 : index
    %c0_171 = arith.constant 0 : index
    %268 = vector.load %arg12[%c0_170, %c0_171] : memref<32x128xf32, #tpu.memory_space<vmem>>, vector<32x128xf32>
    tpu.vector_store %arg12[%c0_170, %c0_171], %267 {strides = array<i32>} : memref<32x128xf32, #tpu.memory_space<vmem>>, vector<32x128xf32>,
    return
  }
  func.func @transform_0(%arg0: i32) -> (i32, i32, i32, i32) {
    %c0_i32 = arith.constant 0 : i32
    %c0_i32_0 = arith.constant 0 : i32
    %c0_i32_1 = arith.constant 0 : i32
    %c0_i32_2 = arith.constant 0 : i32
    return %c0_i32, %arg0, %c0_i32_0, %c0_i32_1 : i32, i32, i32, i32
  }
  func.func @transform_1(%arg0: i32) -> (i32, i32, i32) {
    %c0_i32 = arith.constant 0 : i32
    %c0_i32_0 = arith.constant 0 : i32
    %c0_i32_1 = arith.constant 0 : i32
    return %arg0, %c0_i32, %c0_i32_0 : i32, i32, i32
  }
  func.func @transform_2(%arg0: i32) -> (i32, i32) {
    %c0_i32 = arith.constant 0 : i32
    %c0_i32_0 = arith.constant 0 : i32
    %c0_i32_1 = arith.constant 0 : i32
    return %c0_i32, %c0_i32_0 : i32, i32
  }
  func.func @transform_3(%arg0: i32) -> (i32, i32) {
    %c0_i32 = arith.constant 0 : i32
    %c0_i32_0 = arith.constant 0 : i32
    %c0_i32_1 = arith.constant 0 : i32
    return %c0_i32, %c0_i32_0 : i32, i32
  }
  func.func @transform_4(%arg0: i32) -> (i32, i32) {
    %c0_i32 = arith.constant 0 : i32
    %c0_i32_0 = arith.constant 0 : i32
    %c0_i32_1 = arith.constant 0 : i32
    return %c0_i32, %c0_i32_0 : i32, i32
  }
  func.func @transform_5(%arg0: i32) -> (i32, i32) {
    %c0_i32 = arith.constant 0 : i32
    %c0_i32_0 = arith.constant 0 : i32
    %c0_i32_1 = arith.constant 0 : i32
    return %c0_i32, %c0_i32_0 : i32, i32
  }
  func.func @transform_6(%arg0: i32) -> (i32, i32) {
    %c0_i32 = arith.constant 0 : i32
    %c0_i32_0 = arith.constant 0 : i32
    %c0_i32_1 = arith.constant 0 : i32
    return %c0_i32, %c0_i32_0 : i32, i32
  }
  func.func @transform_7(%arg0: i32) -> (i32, i32) {
    %c0_i32 = arith.constant 0 : i32
    %c0_i32_0 = arith.constant 0 : i32
    %c0_i32_1 = arith.constant 0 : i32
    return %c0_i32, %c0_i32_0 : i32, i32
  }
  func.func @transform_8(%arg0: i32) -> (i32, i32) {
    %c0_i32 = arith.constant 0 : i32
    %c0_i32_0 = arith.constant 0 : i32
    %c0_i32_1 = arith.constant 0 : i32
    return %c0_i32, %c0_i32_0 : i32, i32
  }
  func.func @transform_9(%arg0: i32) -> (i32, i32) {
    %c0_i32 = arith.constant 0 : i32
    %c0_i32_0 = arith.constant 0 : i32
    %c0_i32_1 = arith.constant 0 : i32
    return %c0_i32, %c0_i32_0 : i32, i32
  }
  func.func @transform_10(%arg0: i32) -> (i32, i32) {
    %c0_i32 = arith.constant 0 : i32
    %c0_i32_0 = arith.constant 0 : i32
    %c0_i32_1 = arith.constant 0 : i32
    return %c0_i32, %c0_i32_0 : i32, i32
  }
  func.func @transform_11(%arg0: i32) -> (i32, i32) {
    %c0_i32 = arith.constant 0 : i32
    %c0_i32_0 = arith.constant 0 : i32
    return %c0_i32, %arg0 : i32, i32
  }
  func.func @transform_12(%arg0: i32) -> (i32, i32) {
    %c0_i32 = arith.constant 0 : i32
    %c0_i32_0 = arith.constant 0 : i32
    return %arg0, %c0_i32 : i32, i32
  }
}

</mosaic_0001>

<bundles_post_ra>
// kernel: layer_forward.1
= control target key start
LH: loop header
LB: loop body
LE: loop exit
PB: predicated region body
PF: predicated region fallthrough
CT: control target
= control target key end

     0   :  { %18 = vsyncpa [#allocation4], 0  ;;  %s2331_s21 = smov [#allocation3]   ;;  %s3997_s0 = inlined_call_operand.hbm [shape: f32[3,2,64,32], index: 0, kind: input, shape index: {}]   ;;  %s3998_s1 = inlined_call_operand.vmem [shape: f32[2,2,32], index: 1, kind: input, shape index: {}]   ;;  %s3999_s2 = inlined_call_operand.vmem [shape: f32[1,32], index: 2, kind: input, shape index: {}]   ;;  %s4000_s3 = inlined_call_operand.vmem [shape: f32[25,32], index: 3, kind: input, shape index: {}]   ;;  %s4001_s4 = inlined_call_operand.vmem [shape: f32[1,32], index: 4, kind: input, shape index: {}]   ;;  %s4002_s5 = inlined_call_operand.vmem [shape: f32[1,32], index: 5, kind: input, shape index: {}]   ;;  %s4003_s6 = inlined_call_operand.vmem [shape: f32[1,32], index: 6, kind: input, shape index: {}]   ;;  %s4004_s7 = inlined_call_operand.vmem [shape: f32[32,32], index: 7, kind: input, shape index: {}]   ;;  %s4005_s8 = inlined_call_operand.vmem [shape: f32[32,1], index: 8, kind: input, shape index: {}]   ;;  %s4006_s9 = inlined_call_operand.vmem [shape: f32[32,1], index: 9, kind: input, shape index: {}]   ;;  %s4007_s10 = inlined_call_operand.vmem [shape: f32[32,1], index: 10, kind: input, shape index: {}]   ;;  %s4008_s11 = inlined_call_operand.vmem [shape: f32[32,128], index: 11, kind: output, shape index: {0}]   ;;  %s4009_s12 = inlined_call_operand.vmem [shape: f32[2,32], index: 12, kind: output, shape index: {1}]  }
   0x1   :  { %s24_s22 = sshll.u32 %s2331_s21, 4  ;;  %s2307_s25 = scalar_lea.hbm %s3997_s0, 6144  ;;  %s25_s22 = int_to_ptr.vmem [resolvable:$true] %s24_s22 }
   0x2   :  { %p2308_p0 = scmp.ne.s32.totalorder %s3997_s0, %s2307_s25  ;;  %p2311_p1 = scmp.lt.u32.totalorder %s2307_s25, %s3997_s0 }
   0x4   :  { %p2313_p2 = pnand %p2311_p1, %p2308_p0 }
   0x6   :  { %2316 = shalt.err (!%p2313_p2)
}
   0x7   :  { %s2317_s30 = scalar_lea.vmem %s25_s22, 6144  ;;  %p2322_p4 = scmp.lt.s32.totalorder %s25_s22, %s25_s22 }
   0x8   :  { %p2318_p3 = scmp.ne.s32.totalorder %s25_s22, %s2317_s30  ;;  %p2323_p5 = scmp.lt.s32.totalorder %s2317_s30, %s2317_s30 }
   0xa   :  { %p2324_p6 = por %p2323_p5, %p2322_p4 }
   0xc   :  { %p2325_p7 = pnand %p2324_p6, %p2318_p3 }
   0xe   :  { %2328 = shalt.err (!%p2325_p7)
}
   0xf   :  { %s2332_s13 = smov 128   ;;  %s2333_s14 = smov 8  }
  0x10   :  { %30 = dma.hbm_to_vmem [thread:$0]  %s3997_s0, 6144, %s25_s22, [#allocation4], %s2332_s13, %s2332_s13, %s2333_s14  }
  0x11   :  { %2329 = dma.done.wait [#allocation4], 6144  }
  0x12   :  { %2330 = vsyncadd [#allocation4], 4294961152  ;;  %vm72_vm0 = vcmask 261120   ;;  %v2413_v0 = vld [vmem:[#allocation3 + $0x100] sm:$0xff]  ;;  %v2415_v1 = vld [vmem:[#allocation3 + $0x108] sm:$0xff]  ;;  %v137_v49 = vlaneseq  ;;  %vm133_vm1 = vcmask 254976  }
  0x13   :  { %v2417_v2 = vld [vmem:[#allocation3 + $0x110] sm:$0xff]  ;;  %v2419_v3 = vld [vmem:[#allocation3 + $0x118] sm:$0xff]  ;;  %v73_v4 = vsel %vm72_vm0, %v2413_v0, 0.0  ;;  %v74_v5 = vsel %vm72_vm0, %v2415_v1, 0.0  ;;  %v2427_v7 = vld [vmem:[#allocation3 + $0x120] sm:$0xff]  ;;  %vm130_vm2 = vcmask 1041409  }
  0x14   :  { %v76_v6 = vsel %vm72_vm0, %v2417_v2, 0.0  ;;  %v75_v8 = vadd.f32 %v74_v5, %v73_v4  ;;  %v2429_v9 = vld [vmem:[#allocation3 + $0x140] sm:$0xff]  ;;  %v2431_v10 = vld [vmem:[#allocation3 + $0x128] sm:$0xff]  ;;  %v78_v11 = vsel %vm72_vm0, %v2419_v3, 0.0  ;;  %v2437_v14 = vld [vmem:[#allocation3 + $0x150] sm:$0xff]  ;;  %v80_v17 = vsel %vm72_vm0, %v2427_v7, 0.0 }
  0x15   :  { %v2435_v13 = vld [vmem:[#allocation3 + $0x148] sm:$0xff]  ;;  %v2439_v15 = vld [vmem:[#allocation3 + $0x158] sm:$0xff]  ;;  %v94_v16 = vsel %vm72_vm0, %v2429_v9, 0.0  ;;  %v97_v19 = vsel %vm72_vm0, %v2437_v14, 0.0  ;;  %v2449_v20 = vld [vmem:[#allocation3 + $0x130] sm:$0xff]  ;;  %v82_v24 = vsel %vm72_vm0, %v2431_v10, 0.0 }
  0x16   :  { %v77_v12 = vadd.f32 %v76_v6, %v75_v8  ;;  %v95_v18 = vsel %vm72_vm0, %v2435_v13, 0.0  ;;  %v2451_v22 = vld [vmem:[#allocation3 + $0x160] sm:$0xff]  ;;  %v99_v25 = vsel %vm72_vm0, %v2439_v15, 0.0  ;;  %v2457_v26 = vld [vmem:[#allocation3 + $0x138] sm:$0xff]  ;;  %v2459_v28 = vld [vmem:[#allocation3 + $0x168] sm:$0xff]  ;;  %v84_v30 = vsel %vm72_vm0, %v2449_v20, 0.0 }
  0x17   :  { %v96_v23 = vadd.f32 %v95_v18, %v94_v16  ;;  %v101_v31 = vsel %vm72_vm0, %v2451_v22, 0.0  ;;  %v2465_v33 = vld [vmem:[#allocation3 + $0x170] sm:$0xff]  ;;  %v86_v35 = vsel %vm72_vm0, %v2457_v26, 0.0  ;;  %v103_v36 = vsel %vm72_vm0, %v2459_v28, 0.0  ;;  %v2471_v38 = vld [vmem:[#allocation3 + $0x178] sm:$0xff] }
  0x18   :  { %v79_v21 = vadd.f32 %v78_v11, %v77_v12  ;;  %v105_v40 = vsel %vm72_vm0, %v2465_v33, 0.0  ;;  %v107_v43 = vsel %vm72_vm0, %v2471_v38, 0.0  ;;  %v2477_v54 = vshrl.u32 %v137_v49, 7  ;;  %v2189_v58 = vld [vmem:[%s3999_s2] ss:$0 sm:$0xff] }
  0x19   :  { %v98_v29 = vadd.f32 %v97_v19, %v96_v23  ;;  %v135_v4 = vld [vmem:[%s3998_s1] sm:$0x3]  ;;  %v136_v12 = vld [vmem:[%s3998_s1 + $0x2] sm:$0x3]  ;;  %vm177_vm3 = vcmask 9216   ;;  %vm380_vm4 = vcmask 257024  }
  0x1a   :  { %v81_v27 = vadd.f32 %v80_v17, %v79_v21  ;;  %v2483_v60 = vsub.s32 0, %v2477_v54 }
  0x1b   :  { %v100_v34 = vadd.f32 %v99_v25, %v98_v29 }
  0x1c   :  { %v83_v32 = vadd.f32 %v82_v24, %v81_v27 }
  0x1d   :  { %v102_v39 = vadd.f32 %v101_v31, %v100_v34  ;;  %v166_v31 = vand.u32 127, %v137_v49 }
  0x1e   :  { %v85_v37 = vadd.f32 %v84_v30, %v83_v32 }
  0x1f   :  { %v104_v42 = vadd.f32 %v103_v36, %v102_v39  ;;  %v169_v34 = vsub.s32 %v166_v31, %v2477_v54 }
  0x20   :  { %v87_v41 = vadd.f32 %v86_v35, %v85_v37 }
  0x21   :  { %v106_v45 = vadd.f32 %v105_v40, %v104_v42 }
  0x22   :  { %v88_v44 = vrot.slane %v87_v41, 4 }
  0x23   :  { %v108_v47 = vadd.f32 %v107_v43, %v106_v45  ;;  %v2508_v43 = vsub.s32 1, %v2477_v54 }
  0x24   :  { %v89_v46 = vadd.f32 %v88_v44, %v87_v41  ;;  %v2334_v41 = vmov 0  }
  0x25   :  { %v109_v50 = vrot.slane %v108_v47, 4  ;;  %2248 = vset.pattern.permute.xlu1 %v2334_v41  ;;  %2247 = vset.pattern.permute.xlu0 %v2334_v41 }
  0x26   :  { %v90_v48 = vrot.slane %v89_v46, 2 }
  0x27   :  { %v110_v52 = vadd.f32 %v109_v50, %v108_v47 }
  0x28   :  { %v91_v51 = vadd.f32 %v90_v48, %v89_v46 }
  0x29   :  { %v111_v55 = vrot.slane %v110_v52, 2 }
  0x2a   :  { %v92_v53 = vrot.slane %v91_v51, 1 }
  0x2b   :  { %v112_v57 = vadd.f32 %v111_v55, %v110_v52 }
  0x2c   :  { %v93_v56 = vadd.f32 %v92_v53, %v91_v51 }
  0x2d   :  { %v113_v61 = vrot.slane %v112_v57, 1 }
  0x2e   :  { %v116_v59 = vmul.f32 0.015625, %v93_v56  ;;  %v1981_v56 = vld [vmem:[%s4005_s8] sm:$0xff] }
  0x2f   :  { %v114_v63 = vadd.f32 %v113_v61, %v112_v57  ;;  %v1982_v57 = vld [vmem:[%s4005_s8 + $0x8] sm:$0xff] }
  0x30   :  { %v125_v62 = vmul.f32 %v2189_v58, %v116_v59  ;;  %v2120_v59 = vld [vmem:[%s4006_s9] sm:$0xff]  ;;  %v2121_v61 = vld [vmem:[%s4006_s9 + $0x8] sm:$0xff] }
  0x31   :  { %v117_v6 = vmul.f32 0.015625, %v114_v63  ;;  %v2123_v63 = vld [vmem:[%s4006_s9 + $0x18] sm:$0xff] }
  0x32   :  { %v140_v5 = vrot.slane %v125_v62, %v2483_v60  ;;  %v153_v23 = vmul.f32 %v125_v62, %v125_v62 }
  0x33   :  { %v126_v11 = vmul.f32 %v2189_v58, %v117_v6  ;;  %v1983_v58 = vld [vmem:[%s4005_s8 + $0x10] sm:$0xff] }
  0x34   :  { %v145_v8 = vmul.f32 %v140_v5, %v135_v4  ;;  %v2149_v4 = vld [vmem:[%s4007_s10 + $0x8] sm:$0xff]  ;;  %v2151_v5 = vld [vmem:[%s4007_s10 + $0x18] sm:$0xff] }
  0x35   :  { %v144_v17 = vrot.slane %v126_v11, %v2483_v60  ;;  %v154_v21 = vmul.f32 %v126_v11, %v126_v11  ;;  %v129_v29 = vrot.slane %v126_v11, 7 }
  0x36   :  { %v147_v16 = vsel %vm133_vm1, %v145_v8, 0.0 }
  0x37   :  { %148 = vadd.xlane.f32.xlu0 %v147_v16  ;;  %v146_v18 = vmul.f32 %v144_v17, %v136_v12  ;;  %v157_v24 = vrot.slane %v154_v21, 7  ;;  %v131_v30 = vsel %vm130_vm2, %v129_v29, %v125_v62  ;;  %v2122_v62 = vld [vmem:[%s4006_s9 + $0x10] sm:$0xff] }
  0x38   :  { %134 = vst.msk [vmem:[%s4009_s12] sm:$0x3] %vm133_vm1, %v131_v30  ;;  %v2150_v21 = vld [vmem:[%s4007_s10 + $0x10] sm:$0xff] }
  0x39   :  { %v150_v19 = vsel %vm133_vm1, %v146_v18, 0.0  ;;  %v158_v25 = vsel %vm130_vm2, %v157_v24, %v153_v23  ;;  %v1984_v18 = vld [vmem:[%s4005_s8 + $0x18] sm:$0xff]  ;;  %v2335_v23 = vmov 0.0  }
  0x3a   :  { %v160_v27 = vsel %vm133_vm1, %v158_v25, 0.0  ;;  %400 = vst.msk [vmem:[#allocation2 + $0x40] sm:$0x3] %vm133_vm1, %v2335_v23  ;;  %401 = vst.msk [vmem:[#allocation2 + $0x50] sm:$0x3] %vm133_vm1, %v2335_v23 }
  0x3b   :  { %151 = vadd.xlane.f32.xlu0 %v150_v19  ;;  %161 = vadd.xlane.f32.xlu1 %v160_v27  ;;  %v2148_v19 = vld [vmem:[%s4007_s10] sm:$0xff]  ;;  %402 = vst.msk [vmem:[#allocation2 + $0x60] sm:$0x3] %vm133_vm1, %v2335_v23  ;;  %403 = vst.msk [vmem:[#allocation2 + $0x70] sm:$0x3] %vm133_vm1, %v2335_v23 }
  0x3c   :  { %404 = vst.msk [vmem:[#allocation2 + $0x80] sm:$0x3] %vm133_vm1, %v2335_v23  ;;  %405 = vst.msk [vmem:[#allocation2 + $0x90] sm:$0x3] %vm133_vm1, %v2335_v23 }
  0x3d   :  { %416 = vst.msk [vmem:[#allocation2 + $0x4a] sm:$0x3] %vm133_vm1, %v2335_v23  ;;  %417 = vst.msk [vmem:[#allocation2 + $0x5a] sm:$0x3] %vm133_vm1, %v2335_v23 }
  0x3e   :  { %418 = vst.msk [vmem:[#allocation2 + $0x6a] sm:$0x3] %vm133_vm1, %v2335_v23  ;;  %419 = vst.msk [vmem:[#allocation2 + $0x7a] sm:$0x3] %vm133_vm1, %v2335_v23 }
  0x3f   :  { %420 = vst.msk [vmem:[#allocation2 + $0x8a] sm:$0x3] %vm133_vm1, %v2335_v23  ;;  %398 = vst.msk [vmem:[#allocation2 + $0x20] sm:$0x3] %vm133_vm1, %v2335_v23 }
  0x40   :  { %379 = vst.msk [vmem:[#allocation2] sm:$0xff] %vm72_vm0, %v2335_v23  ;;  %382 = vst.msk [vmem:[#allocation2 + $0x10] sm:$0xff] %vm72_vm0, %v2335_v23 }
  0x41   :  { %384 = vst.msk [vmem:[#allocation2 + $0xc0] sm:$0xff] %vm72_vm0, %v2335_v23  ;;  %386 = vst.msk [vmem:[#allocation2 + $0xd0] sm:$0xff] %vm72_vm0, %v2335_v23 }
  0x42   :  { %389 = vst.msk [vmem:[#allocation2 + $0xa0] sm:$0xff] %vm72_vm0, %v2335_v23  ;;  %391 = vst.msk [vmem:[#allocation2 + $0xb0] sm:$0xff] %vm72_vm0, %v2335_v23 }
  0x43   :  { %393 = vst.msk [vmem:[#allocation2 + $0x160] sm:$0xff] %vm72_vm0, %v2335_v23  ;;  %395 = vst.msk [vmem:[#allocation2 + $0x170] sm:$0xff] %vm72_vm0, %v2335_v23 }
  0x44   :  { %399 = vst.msk [vmem:[#allocation2 + $0x30] sm:$0x3] %vm133_vm1, %v2335_v23  ;;  %406 = vst.msk [vmem:[#allocation2 + $0xe0] sm:$0x3] %vm133_vm1, %v2335_v23 }
  0x45   :  { %407 = vst.msk [vmem:[#allocation2 + $0xf0] sm:$0x3] %vm133_vm1, %v2335_v23  ;;  %408 = vst.msk [vmem:[#allocation2 + $0x100] sm:$0x3] %vm133_vm1, %v2335_v23 }
  0x46   :  { %409 = vst.msk [vmem:[#allocation2 + $0x110] sm:$0x3] %vm133_vm1, %v2335_v23  ;;  %410 = vst.msk [vmem:[#allocation2 + $0x120] sm:$0x3] %vm133_vm1, %v2335_v23 }
  0x47   :  { %411 = vst.msk [vmem:[#allocation2 + $0x130] sm:$0x3] %vm133_vm1, %v2335_v23  ;;  %412 = vst.msk [vmem:[#allocation2 + $0x140] sm:$0x3] %vm133_vm1, %v2335_v23 }
  0x48   :  { %413 = vst.msk [vmem:[#allocation2 + $0x150] sm:$0x3] %vm133_vm1, %v2335_v23  ;;  %414 = vst.msk [vmem:[#allocation2 + $0x2a] sm:$0x3] %vm133_vm1, %v2335_v23 }
  0x49   :  { %415 = vst.msk [vmem:[#allocation2 + $0x3a] sm:$0x3] %vm133_vm1, %v2335_v23  ;;  %421 = vst.msk [vmem:[#allocation2 + $0x9a] sm:$0x3] %vm133_vm1, %v2335_v23 }
  0x4a   :  { %422 = vst.msk [vmem:[#allocation2 + $0xea] sm:$0x3] %vm133_vm1, %v2335_v23  ;;  %423 = vst.msk [vmem:[#allocation2 + $0xfa] sm:$0x3] %vm133_vm1, %v2335_v23 }
  0x4b   :  { %424 = vst.msk [vmem:[#allocation2 + $0x10a] sm:$0x3] %vm133_vm1, %v2335_v23  ;;  %425 = vst.msk [vmem:[#allocation2 + $0x11a] sm:$0x3] %vm133_vm1, %v2335_v23 }
  0x4c   :  { %426 = vst.msk [vmem:[#allocation2 + $0x12a] sm:$0x3] %vm133_vm1, %v2335_v23  ;;  %427 = vst.msk [vmem:[#allocation2 + $0x13a] sm:$0x3] %vm133_vm1, %v2335_v23 }
  0x4d   :  { %428 = vst.msk [vmem:[#allocation2 + $0x14a] sm:$0x3] %vm133_vm1, %v2335_v23  ;;  %429 = vst.msk [vmem:[#allocation2 + $0x15a] sm:$0x3] %vm133_vm1, %v2335_v23 }
  0x4e   :  { %381 = vst.msk [vmem:[#allocation2 + $0x8] sm:$0xf] %vm380_vm4, %v2335_v23  ;;  %383 = vst.msk [vmem:[#allocation2 + $0x18] sm:$0xf] %vm380_vm4, %v2335_v23 }
  0x4f   :  { %385 = vst.msk [vmem:[#allocation2 + $0xc8] sm:$0xf] %vm380_vm4, %v2335_v23  ;;  %387 = vst.msk [vmem:[#allocation2 + $0xd8] sm:$0xf] %vm380_vm4, %v2335_v23 }
  0x50   :  { %390 = vst.msk [vmem:[#allocation2 + $0xa8] sm:$0xf] %vm380_vm4, %v2335_v23  ;;  %392 = vst.msk [vmem:[#allocation2 + $0xb8] sm:$0xf] %vm380_vm4, %v2335_v23 }
  0x51   :  { %394 = vst.msk [vmem:[#allocation2 + $0x168] sm:$0xf] %vm380_vm4, %v2335_v23  ;;  %396 = vst.msk [vmem:[#allocation2 + $0x178] sm:$0xf] %vm380_vm4, %v2335_v23 }
  0xc4   :  { %v149_v32 = vpop.xlane.xlu0 %148 }
  0xc5   :  { %v170_v36 = vrot.slane %v149_v32, %v169_v34 }
  0xc8   :  { %v152_v35 = vpop.xlane.xlu0 %151  ;;  %v2505_v42 = vpop.xlane.xlu1 %161 }
  0xc9   :  { %v174_v37 = vrot.slane %v152_v35, %v169_v34 }
  0xcb   :  { %v175_v39 = vsel %vm130_vm2, %v174_v37, %v170_v36 }
  0xcc   :  { %v178_v40 = vsel %vm177_vm3, %v175_v39, -inf }
  0xcd   :  { %179 = vmax.xlane.f32.xlu1 %v178_v40  ;;  %v446_v40 = vld [vmem:[%s4000_s3] sm:$0xff] }
  0xce   :  { %v2616_v41 = vrot.slane %v446_v40, %v2483_v60 }
 0x15a   :  { %v180_v44 = vpop.xlane.xlu1 %179 }
 0x15b   :  { %v2511_v45 = vmax.f32 %v180_v44, %v2505_v42  ;;  %v2619_v44 = vrot.slane %v446_v40, %v2508_v43 }
 0x15d   :  { %v186_v46 = vrot.slane %v2511_v45, %v2483_v60  ;;  %v190_v47 = vrot.slane %v2511_v45, %v2508_v43  ;;  %v199_v48 = vsub.f32 %v2505_v42, %v2511_v45  ;;  %v458_v42 = vld [vmem:[#allocation2] sm:$0xff]  ;;  %v580_v45 = vsub.s32 2, %v2477_v54 }
 0x15f   :  { %v193_v49 = vsub.f32 %v149_v32, %v186_v46  ;;  %v194_v50 = vsub.f32 %v152_v35, %v190_v47  ;;  %v200_v24 = vmul.f32 1.442695, %v199_v48  ;;  %v478_v46 = vmul.f32 %v2616_v41, %v458_v42  ;;  %v2626_v47 = vld [vmem:[%s4001_s4] ss:$0 sm:$0xff]  ;;  %v510_v48 = vld [vmem:[#allocation2 + $0x1] sm:$0xff]  ;;  %v615_v42 = vld [vmem:[#allocation2 + $0x13] sm:$0xff] }
 0x161   :  { %v195_v51 = vmul.f32 1.442695, %v193_v49  ;;  %v197_v52 = vmul.f32 1.442695, %v194_v50  ;;  %v2628_v49 = vrot.slane %v446_v40, %v580_v45  ;;  %v632_v50 = vsub.s32 3, %v2477_v54 }
 0x163   :  { %2249 = vpow2.f32 %v195_v51  ;;  %4062 = vst [vmem:[#allocation6_spill] sm:$0xff] %v2628_v49  ;;  %v494_v51 = vadd.f32 %v2626_v47, %v478_v46 }
 0x164   :  { %2251 = vpow2.f32 %v197_v52  ;;  %v530_v52 = vmul.f32 %v2619_v44, %v510_v48  ;;  %v2681_v48 = vld [vmem:[%s4000_s3 + $0x10] sm:$0xff] }
 0x165   :  { %2253 = vpow2.f32 %v200_v24  ;;  %v511_v24 = vld [vmem:[#allocation2 + $0x11] sm:$0xff] }
 0x16d   :  { %v2519_v53 = vpop.eup %2249 }
 0x16e   :  { %v2521_v55 = vpop.eup %2251  ;;  %205 = vperm.xlu0 %2247, %v2519_v53  }
 0x16f   :  { %208 = vperm.xlu1 %2248, %v2521_v55   ;;  %v2254_v25 = vpop.eup %2253 }
 0x172   :  { %1987 = vperm.xlu0 %2247, %v1981_v56   ;;  %v2636_v56 = vsub.s32 4, %v2477_v54 }
 0x176   :  { %1992 = vperm.xlu0 %2247, %v1982_v57   ;;  %v546_v57 = vadd.f32 %v530_v52, %v494_v51 }
 0x17a   :  { %1997 = vperm.xlu0 %2247, %v1983_v58  }
 0x17e   :  { %2126 = vperm.xlu0 %2247, %v2120_v59   ;;  %v614_v59 = vld [vmem:[#allocation2 + $0x3] sm:$0xff] }
 0x182   :  { %2131 = vperm.xlu0 %2247, %v2121_v61   ;;  %v2640_v61 = vrot.slane %v446_v40, %v2636_v56 }
 0x184   :  { %4064 = vst [vmem:[#allocation8_spill] sm:$0xff] %v2640_v61 }
 0x186   :  { %2136 = vperm.xlu0 %2247, %v2122_v62   ;;  %v2643_v62 = vsub.s32 5, %v2477_v54 }
 0x18a   :  { %2141 = vperm.xlu0 %2247, %v2123_v63  }
 0x18e   :  { %2159 = vperm.xlu0 %2247, %v2149_v4  }
 0x192   :  { %2169 = vperm.xlu0 %2247, %v2151_v5   ;;  %v666_v5 = vld [vmem:[#allocation2 + $0x4] sm:$0xff] }
 0x1ed   :  { %v206_v6 = vpop.permute.xlu0 %205 }
 0x1ee   :  { %v209_v8 = vpop.permute.xlu1 %208  ;;  %v213_v11 = vrot.slane %v206_v6, %v169_v34  ;;  %v2647_v6 = vrot.slane %v446_v40, %v2643_v62 }
 0x1ef   :  { %v217_v12 = vrot.slane %v209_v8, %v169_v34  ;;  %v2650_v8 = vsub.s32 6, %v2477_v54 }
 0x1f0   :  { %4065 = vst [vmem:[#allocation9_spill] sm:$0xff] %v2647_v6 }
 0x1f1   :  { %v218_v16 = vsel %vm130_vm2, %v217_v12, %v213_v11  ;;  %v686_v12 = vmul.f32 %v2640_v61, %v666_v5  ;;  %v667_v5 = vld [vmem:[#allocation2 + $0x14] sm:$0xff] }
 0x1f2   :  { %v220_v17 = vsel %vm177_vm3, %v218_v16, 0.0  ;;  %v459_v16 = vld [vmem:[#allocation2 + $0x10] sm:$0xff] }
 0x1f3   :  { %221 = vadd.xlane.f32.xlu1 %v220_v17  ;;  %v2654_v17 = vsub.s32 7, %v2477_v54  ;;  %v739_v23 = vmul.f32 %v2647_v6, %v459_v16  ;;  %v531_v54 = vmul.f32 %v2619_v44, %v511_v24 }
 0x204   :  { %2002 = vperm.xlu1 %2248, %v1984_v18   ;;  %v2657_v18 = vrot.slane %v446_v40, %v2650_v8 }
 0x206   :  { %4066 = vst [vmem:[#allocation10_spill] sm:$0xff] %v2657_v18 }
 0x208   :  { %2154 = vperm.xlu1 %2248, %v2148_v19   ;;  %v479_v19 = vmul.f32 %v2616_v41, %v459_v16 }
 0x20c   :  { %2164 = vperm.xlu1 %2248, %v2150_v21  }
 0x280   :  { %v222_v27 = vpop.xlane.xlu1 %221 }
 0x281   :  { %v223_v29 = vadd.f32 %v2254_v25, %v222_v27  ;;  %v447_v27 = vld [vmem:[%s4000_s3 + $0x8] sm:$0xff] }
 0x282   :  { %v2676_v46 = vrot.slane %v447_v27, %v2508_v43  ;;  %v2701_v16 = vrot.slane %v447_v27, %v2654_v17 }
 0x283   :  { %2255 = vrcp.f32 %v223_v29  ;;  %v495_v29 = vadd.f32 %v2626_v47, %v479_v19 }
 0x284   :  { %4069 = vst [vmem:[#allocation13_spill] sm:$0xff] %v2676_v46  ;;  %4075 = vst [vmem:[#allocation19_spill] sm:$0xff] %v2701_v16 }
 0x28d   :  { %v2256_v30 = vpop.eup %2255 }
 0x28e   :  { %v2606_v31 = vmul.f32 %v2256_v30, %v2254_v25  ;;  %v229_v32 = vrot.slane %v2256_v30, %v2483_v60  ;;  %v233_v34 = vrot.slane %v2256_v30, %v2508_v43  ;;  %v2662_v25 = vrot.slane %v446_v40, %v2654_v17 }
 0x290   :  { %v236_v35 = vmul.f32 %v2519_v53, %v229_v32  ;;  %v237_v36 = vmul.f32 %v2521_v55, %v233_v34  ;;  %v562_v53 = vld [vmem:[#allocation2 + $0x2] sm:$0xff]  ;;  %v2633_v55 = vrot.slane %v446_v40, %v632_v50  ;;  %4067 = vst [vmem:[#allocation11_spill] sm:$0xff] %v2662_v25  ;;  %v791_v32 = vmul.f32 %v2657_v18, %v511_v24  ;;  %v563_v34 = vld [vmem:[#allocation2 + $0x12] sm:$0xff] }
 0x291   :  { %v582_v58 = vmul.f32 %v2628_v49, %v562_v53  ;;  %v843_v40 = vmul.f32 %v2662_v25, %v563_v34  ;;  %v2705_v19 = vrot.slane %v2606_v31, %v2508_v43  ;;  %v2716_v24 = vrot.slane %v2681_v48, %v580_v45 }
 0x292   :  { %2234 = vpush %v236_v35  ;;  %v339_v37 = vrot.slane %v236_v35, 1  ;;  %v340_v39 = vrot.slane %v237_v36, 1  ;;  %4063 = vst [vmem:[#allocation7_spill] sm:$0xff] %v2633_v55  ;;  %v634_v4 = vmul.f32 %v2633_v55, %v614_v59  ;;  %v2671_v35 = vrot.slane %v447_v27, %v2483_v60 }
 0x293   :  { %2236 = vpush %v237_v36  ;;  %v598_v63 = vadd.f32 %v582_v58, %v546_v57  ;;  %v547_v36 = vadd.f32 %v531_v54, %v495_v29  ;;  %v635_v52 = vmul.f32 %v2633_v55, %v615_v42  ;;  %v2685_v58 = vrot.slane %v447_v27, %v580_v45 }
 0x294   :  { %2238 = vpush %v339_v37  ;;  %4068 = vst [vmem:[#allocation12_spill] sm:$0xff] %v2671_v35  ;;  %v583_v37 = vmul.f32 %v2628_v49, %v563_v34  ;;  %v895_v57 = vmul.f32 %v2671_v35, %v615_v42  ;;  %v2687_v59 = vrot.slane %v447_v27, %v632_v50 }
 0x295   :  { %2240 = vpush %v340_v39  ;;  %v650_v11 = vadd.f32 %v634_v4, %v598_v63  ;;  %4070 = vst [vmem:[#allocation14_spill] sm:$0xff] %v2685_v58  ;;  %v2690_v63 = vrot.slane %v447_v27, %v2636_v56  ;;  %v243_v4 = vrot.slane %v2606_v31, %v2483_v60 }
 0x296   :  { %v599_v51 = vadd.f32 %v583_v37, %v547_v36  ;;  %4071 = vst [vmem:[#allocation15_spill] sm:$0xff] %v2687_v59  ;;  %4078 = vst [vmem:[#allocation22_spill] sm:$0xff] %v2716_v24  ;;  %v2719_v29 = vrot.slane %v2681_v48, %v632_v50  ;;  %v2724_v54 = vmul.f32 %v2640_v61, %v667_v5  ;;  %v268_v50 = vld [vmem:[#allocation3 + $0x10] sm:$0xff]  ;;  %v269_v37 = vld [vmem:[#allocation3 + $0x18] sm:$0xff] }
 0x297   :  { %v702_v21 = vadd.f32 %v686_v12, %v650_v11  ;;  %4072 = vst [vmem:[#allocation16_spill] sm:$0xff] %v2690_v63  ;;  %v2695_v11 = vrot.slane %v447_v27, %v2643_v62  ;;  %v2698_v12 = vrot.slane %v447_v27, %v2650_v8  ;;  %v254_v45 = vmul.f32 %v243_v4, %v2427_v7  ;;  %v280_v24 = vld [vmem:[#allocation3 + $0x70] sm:$0xff] }
 0x298   :  { %4079 = vst [vmem:[#allocation23_spill] sm:$0xff] %v2719_v29  ;;  %v2721_v27 = vadd.f32 %v635_v52, %v599_v51  ;;  %v256_v34 = vmul.f32 %v243_v4, %v2449_v20  ;;  %v257_v36 = vmul.f32 %v243_v4, %v2457_v26  ;;  %v260_v42 = vmul.f32 %v2705_v19, %v2437_v14  ;;  %v272_v51 = vld [vmem:[#allocation3 + $0x30] sm:$0xff]  ;;  %v278_v29 = vld [vmem:[#allocation3 + $0x60] sm:$0xff] }
 0x299   :  { %v755_v30 = vadd.f32 %v739_v23, %v702_v21  ;;  %4073 = vst [vmem:[#allocation17_spill] sm:$0xff] %v2695_v11  ;;  %4074 = vst [vmem:[#allocation18_spill] sm:$0xff] %v2698_v12  ;;  %v2709_v21 = vrot.slane %v2681_v48, %v2483_v60  ;;  %v2713_v23 = vrot.slane %v2681_v48, %v2508_v43  ;;  %v326_v12 = vld [vmem:[#allocation3 + $0x98] sm:$0xff] }
 0x29a   :  { %v2729_v60 = vmul.f32 %v2676_v46, %v667_v5  ;;  %v253_v43 = vmul.f32 %v243_v4, %v2419_v3  ;;  %v273_v3 = vld [vmem:[#allocation3 + $0x38] sm:$0xff]  ;;  %v262_v7 = vmul.f32 %v2705_v19, %v2451_v22  ;;  %v264_v20 = vmul.f32 %v2705_v19, %v2465_v33 }
 0x29b   :  { %v807_v39 = vadd.f32 %v791_v32, %v755_v30  ;;  %4076 = vst [vmem:[#allocation20_spill] sm:$0xff] %v2709_v21  ;;  %4077 = vst [vmem:[#allocation21_spill] sm:$0xff] %v2713_v23  ;;  %v252_v30 = vmul.f32 %v243_v4, %v2417_v2  ;;  %v255_v32 = vmul.f32 %v243_v4, %v2431_v10  ;;  %v277_v5 = vld [vmem:[#allocation3 + $0x58] sm:$0xff] }
 0x29c   :  { %v261_v2 = vmul.f32 %v2705_v19, %v2439_v15  ;;  %v263_v10 = vmul.f32 %v2705_v19, %v2459_v28  ;;  %v265_v26 = vmul.f32 %v2705_v19, %v2471_v38  ;;  %v2752_v14 = vmul.f32 %v243_v4, %v2413_v0 }
 0x29d   :  { %v859_v53 = vadd.f32 %v843_v40, %v807_v39  ;;  %v270_v39 = vld [vmem:[#allocation3 + $0x20] sm:$0xff]  ;;  %v271_v40 = vld [vmem:[#allocation3 + $0x28] sm:$0xff]  ;;  %v2755_v15 = vmul.f32 %v243_v4, %v2415_v1  ;;  %v2759_v22 = vmul.f32 %v2705_v19, %v2429_v9  ;;  %v281_v9 = vld [vmem:[#allocation3 + $0x78] sm:$0xff] }
 0x29e   :  { %v279_v4 = vld [vmem:[#allocation3 + $0x68] sm:$0xff] }
 0x29f   :  { %v2726_v31 = vadd.f32 %v895_v57, %v859_v53  ;;  %v276_v57 = vld [vmem:[#allocation3 + $0x50] sm:$0xff] }
 0x2c3   :  { %s2235_s28 = spop %2234 }
 0x2c4   :  { %v2749_v52 = vstv %s2235_s28  ;;  %s2237_s29 = spop %2236 }
 0x2c5   :  { %v292_v28 = vmul.f32 %v2749_v52, %v268_v50  ;;  %v293_v33 = vmul.f32 %v2749_v52, %v269_v37  ;;  %v294_v53 = vmul.f32 %v2749_v52, %v270_v39  ;;  %v295_v38 = vmul.f32 %v2749_v52, %v271_v40  ;;  %s2239_s30 = spop %2238  ;;  %v325_v40 = vld [vmem:[#allocation3 + $0x90] sm:$0xff] }
 0x2c6   :  { %v296_v0 = vmul.f32 %v2749_v52, %v272_v51  ;;  %v297_v1 = vmul.f32 %v2749_v52, %v273_v3  ;;  %v2767_v23 = vstv %s2237_s29  ;;  %v2769_v50 = vstv %s2239_s30  ;;  %v327_v3 = vld [vmem:[#allocation3 + $0xa0] sm:$0xff]  ;;  %s2241_s13 = spop %2240 }
 0x2c7   :  { %v308_v37 = vadd.f32 %v292_v28, %v252_v30  ;;  %v309_v21 = vadd.f32 %v293_v33, %v253_v43  ;;  %v310_v39 = vadd.f32 %v294_v53, %v254_v45  ;;  %v311_v16 = vadd.f32 %v295_v38, %v255_v32  ;;  %v328_v43 = vld [vmem:[#allocation3 + $0xa8] sm:$0xff]  ;;  %v329_v45 = vld [vmem:[#allocation3 + $0xb0] sm:$0xff]  ;;  %v330_v32 = vld [vmem:[#allocation3 + $0xb8] sm:$0xff] }
 0x2c8   :  { %v312_v11 = vadd.f32 %v296_v0, %v256_v34  ;;  %v313_v63 = vadd.f32 %v297_v1, %v257_v36  ;;  %v300_v59 = vmul.f32 %v2767_v23, %v276_v57  ;;  %v301_v51 = vmul.f32 %v2767_v23, %v277_v5  ;;  %v266_v53 = vld [vmem:[#allocation3] sm:$0xff]  ;;  %v333_v0 = vld [vmem:[#allocation3 + $0xd0] sm:$0xff] }
 0x2c9   :  { %v302_v58 = vmul.f32 %v2767_v23, %v278_v29  ;;  %v303_v46 = vmul.f32 %v2767_v23, %v279_v4  ;;  %v304_v35 = vmul.f32 %v2767_v23, %v280_v24  ;;  %v305_v30 = vmul.f32 %v2767_v23, %v281_v9  ;;  %v336_v9 = vld [vmem:[#allocation3 + $0xe8] sm:$0xff] }
 0x2ca   :  { %v316_v28 = vadd.f32 %v300_v59, %v260_v42  ;;  %v317_v33 = vadd.f32 %v301_v51, %v261_v2  ;;  %v349_v34 = vmul.f32 %v2769_v50, %v325_v40  ;;  %v350_v36 = vmul.f32 %v2769_v50, %v326_v12  ;;  %v334_v42 = vld [vmem:[#allocation3 + $0xd8] sm:$0xff]  ;;  %v335_v2 = vld [vmem:[#allocation3 + $0xe0] sm:$0xff] }
 0x2cb   :  { %v318_v38 = vadd.f32 %v302_v58, %v262_v7  ;;  %v319_v57 = vadd.f32 %v303_v46, %v263_v10  ;;  %v320_v29 = vadd.f32 %v304_v35, %v264_v20  ;;  %v321_v5 = vadd.f32 %v305_v30, %v265_v26  ;;  %v337_v58 = vld [vmem:[#allocation3 + $0xf0] sm:$0xff]  ;;  %v338_v46 = vld [vmem:[#allocation3 + $0xf8] sm:$0xff]  ;;  %v267_v7 = vld [vmem:[#allocation3 + $0x8] sm:$0xff] }
 0x2cc   :  { %v351_v24 = vmul.f32 %v2769_v50, %v327_v3  ;;  %v352_v1 = vmul.f32 %v2769_v50, %v328_v43  ;;  %v353_v4 = vmul.f32 %v2769_v50, %v329_v45  ;;  %v354_v59 = vmul.f32 %v2769_v50, %v330_v32  ;;  %v324_v32 = vld [vmem:[#allocation3 + $0x88] sm:$0xff] }
 0x2cd   :  { %v2783_v40 = vadd.f32 %v349_v34, %v308_v37  ;;  %v2785_v12 = vadd.f32 %v350_v36, %v309_v21  ;;  %v2787_v35 = vstv %s2241_s13  ;;  %v290_v10 = vmul.f32 %v2749_v52, %v266_v53  ;;  %v274_v34 = vld [vmem:[#allocation3 + $0x40] sm:$0xff]  ;;  %v275_v36 = vld [vmem:[#allocation3 + $0x48] sm:$0xff] }
 0x2ce   :  { %v2790_v20 = vadd.f32 %v351_v24, %v310_v39  ;;  %v2792_v26 = vadd.f32 %v352_v1, %v311_v16  ;;  %v2794_v51 = vadd.f32 %v353_v4, %v312_v11  ;;  %v2796_v3 = vadd.f32 %v354_v59, %v313_v63  ;;  %v323_v16 = vld [vmem:[#allocation3 + $0x80] sm:$0xff] }
 0x2cf   :  { %4080 = vst [vmem:[#allocation24_spill] sm:$0xff] %v2783_v40  ;;  %4081 = vst [vmem:[#allocation25_spill] sm:$0xff] %v2785_v12  ;;  %v357_v21 = vmul.f32 %v2787_v35, %v333_v0  ;;  %v358_v37 = vmul.f32 %v2787_v35, %v334_v42  ;;  %v359_v30 = vmul.f32 %v2787_v35, %v335_v2  ;;  %v466_v4 = vld [vmem:[#allocation2 + $0xc0] sm:$0xff] }
 0x2d0   :  { %4082 = vst [vmem:[#allocation26_spill] sm:$0xff] %v2790_v20  ;;  %4083 = vst [vmem:[#allocation27_spill] sm:$0xff] %v2792_v26  ;;  %v360_v39 = vmul.f32 %v2787_v35, %v336_v9  ;;  %v361_v63 = vmul.f32 %v2787_v35, %v337_v58  ;;  %v362_v11 = vmul.f32 %v2787_v35, %v338_v46 }
 0x2d1   :  { %4084 = vst [vmem:[#allocation28_spill] sm:$0xff] %v2794_v51  ;;  %4085 = vst [vmem:[#allocation29_spill] sm:$0xff] %v2796_v3  ;;  %v291_v43 = vmul.f32 %v2749_v52, %v267_v7  ;;  %v306_v45 = vadd.f32 %v290_v10, %v2752_v14  ;;  %v2818_v53 = vadd.f32 %v357_v21, %v316_v28 }
 0x2d2   :  { %432 = vst.msk [vmem:[#allocation2 + $0x42] sm:$0xff] %vm72_vm0, %v2783_v40  ;;  %433 = vst.msk [vmem:[#allocation2 + $0x52] sm:$0xff] %vm72_vm0, %v2785_v12  ;;  %v2820_v0 = vadd.f32 %v358_v37, %v317_v33  ;;  %v2822_v24 = vadd.f32 %v359_v30, %v318_v38  ;;  %v2824_v1 = vadd.f32 %v360_v39, %v319_v57  ;;  %v331_v57 = vld [vmem:[#allocation3 + $0xc0] sm:$0xff]  ;;  %v4109_v40 = vld [vmem:[#allocation13_spill] sm:$0xff] }
 0x2d3   :  { %434 = vst.msk [vmem:[#allocation2 + $0x62] sm:$0xff] %vm72_vm0, %v2790_v20  ;;  %435 = vst.msk [vmem:[#allocation2 + $0x72] sm:$0xff] %vm72_vm0, %v2792_v26  ;;  %v2826_v59 = vadd.f32 %v361_v63, %v320_v29  ;;  %v2828_v42 = vadd.f32 %v362_v11, %v321_v5  ;;  %v307_v52 = vadd.f32 %v291_v43, %v2755_v15 }
 0x2d4   :  { %436 = vst.msk [vmem:[#allocation2 + $0x82] sm:$0xff] %vm72_vm0, %v2794_v51  ;;  %437 = vst.msk [vmem:[#allocation2 + $0x92] sm:$0xff] %vm72_vm0, %v2796_v3  ;;  %v347_v14 = vmul.f32 %v2769_v50, %v323_v16  ;;  %v348_v28 = vmul.f32 %v2769_v50, %v324_v32  ;;  %v259_v33 = vmul.f32 %v2705_v19, %v2435_v13  ;;  %v332_v19 = vld [vmem:[#allocation3 + $0xc8] sm:$0xff] }
 0x2d5   :  { %4086 = vst [vmem:[#allocation30_spill] sm:$0xff] %v2818_v53  ;;  %4087 = vst [vmem:[#allocation31_spill] sm:$0xff] %v2820_v0  ;;  %v298_v15 = vmul.f32 %v2767_v23, %v274_v34  ;;  %v299_v38 = vmul.f32 %v2767_v23, %v275_v36  ;;  %v2847_v29 = vrot.slane %v2681_v48, %v2636_v56  ;;  %v518_v50 = vld [vmem:[#allocation2 + $0xc1] sm:$0xff] }
 0x2d6   :  { %4088 = vst [vmem:[#allocation32_spill] sm:$0xff] %v2822_v24  ;;  %4089 = vst [vmem:[#allocation33_spill] sm:$0xff] %v2824_v1  ;;  %v2851_v5 = vrot.slane %v2681_v48, %v2643_v62  ;;  %v2857_v13 = vadd.f32 %v347_v14, %v306_v45  ;;  %v486_v23 = vmul.f32 %v2616_v41, %v466_v4 }
 0x2d7   :  { %4090 = vst [vmem:[#allocation34_spill] sm:$0xff] %v2826_v59  ;;  %4091 = vst [vmem:[#allocation35_spill] sm:$0xff] %v2828_v42  ;;  %v2862_v56 = vrot.slane %v2681_v48, %v2650_v8  ;;  %v2864_v2 = vadd.f32 %v348_v28, %v307_v52  ;;  %v2867_v62 = vadd.f32 %v298_v15, %v2759_v22 }
 0x2d8   :  { %440 = vst.msk [vmem:[#allocation2 + $0x102] sm:$0xff] %vm72_vm0, %v2818_v53  ;;  %441 = vst.msk [vmem:[#allocation2 + $0x112] sm:$0xff] %vm72_vm0, %v2820_v0  ;;  %v2869_v9 = vadd.f32 %v299_v38, %v259_v33  ;;  %v2873_v58 = vrot.slane %v2681_v48, %v2654_v17  ;;  %v2885_v8 = vadd.f32 %v2724_v54, %v2721_v27 }
 0x2d9   :  { %442 = vst.msk [vmem:[#allocation2 + $0x122] sm:$0xff] %vm72_vm0, %v2822_v24  ;;  %443 = vst.msk [vmem:[#allocation2 + $0x132] sm:$0xff] %vm72_vm0, %v2824_v1  ;;  %v2875_v46 = vld [vmem:[#allocation2 + $0x40] sm:$0xff]  ;;  %v2877_v7 = vld [vmem:[#allocation2 + $0x50] sm:$0xff]  ;;  %v2889_v22 = vadd.f32 %v2729_v60, %v2726_v31  ;;  %v2892_v17 = vmul.f32 %v2787_v35, %v331_v57  ;;  %v2907_v27 = vmul.f32 %v2787_v35, %v332_v19 }
 0x2da   :  { %4092 = vst [vmem:[#allocation36_spill] sm:$0xff] %v2847_v29  ;;  %4093 = vst [vmem:[#allocation37_spill] sm:$0xff] %v2851_v5  ;;  %v2879_v10 = vld [vmem:[#allocation2 + $0x41] sm:$0xff]  ;;  %v2896_v21 = vld [vmem:[#allocation2 + $0x70] sm:$0xff]  ;;  %v482_v37 = vmul.f32 %v2616_v41, %v2875_v46  ;;  %v483_v30 = vmul.f32 %v2616_v41, %v2877_v7  ;;  %v2910_v54 = vmul.f32 %v2619_v44, %v518_v50 }
 0x2db   :  { %444 = vst.msk [vmem:[#allocation2 + $0x142] sm:$0xff] %vm72_vm0, %v2826_v59  ;;  %445 = vst.msk [vmem:[#allocation2 + $0x152] sm:$0xff] %vm72_vm0, %v2828_v42  ;;  %v2894_v48 = vld [vmem:[#allocation2 + $0x60] sm:$0xff]  ;;  %v2902_v39 = vld [vmem:[#allocation2 + $0x51] sm:$0xff]  ;;  %v485_v60 = vmul.f32 %v2616_v41, %v2896_v21  ;;  %v534_v11 = vmul.f32 %v2619_v44, %v2879_v10  ;;  %v2925_v35 = vadd.f32 %v2626_v47, %v486_v23 }
 0x2dc   :  { %4094 = vst [vmem:[#allocation38_spill] sm:$0xff] %v2857_v13  ;;  %4095 = vst [vmem:[#allocation39_spill] sm:$0xff] %v2862_v56  ;;  %v484_v31 = vmul.f32 %v2616_v41, %v2894_v48  ;;  %v2916_v16 = vld [vmem:[#allocation2 + $0x61] sm:$0xff]  ;;  %v2918_v63 = vld [vmem:[#allocation2 + $0x71] sm:$0xff]  ;;  %v498_v45 = vadd.f32 %v2626_v47, %v482_v37  ;;  %v499_v32 = vadd.f32 %v2626_v47, %v483_v30 }
 0x2dd   :  { %4096 = vst [vmem:[#allocation40_spill] sm:$0xff] %v2864_v2  ;;  %4097 = vst [vmem:[#allocation41_spill] sm:$0xff] %v2867_v62  ;;  %v2922_v43 = vld [vmem:[#allocation2 + $0x42] sm:$0xff]  ;;  %v535_v34 = vmul.f32 %v2619_v44, %v2902_v39  ;;  %v2931_v36 = vld [vmem:[#allocation2 + $0x52] sm:$0xff]  ;;  %v743_v14 = vmul.f32 %v2647_v6, %v2877_v7  ;;  %v501_v33 = vadd.f32 %v2626_v47, %v485_v60 }
 0x2de   :  { %4098 = vst [vmem:[#allocation42_spill] sm:$0xff] %v2869_v9  ;;  %4099 = vst [vmem:[#allocation43_spill] sm:$0xff] %v2873_v58  ;;  %v2933_v4 = vld [vmem:[#allocation2 + $0x62] sm:$0xff]  ;;  %v2935_v52 = vld [vmem:[#allocation2 + $0x72] sm:$0xff]  ;;  %v500_v28 = vadd.f32 %v2626_v47, %v484_v31  ;;  %v536_v15 = vmul.f32 %v2619_v44, %v2916_v16  ;;  %v537_v38 = vmul.f32 %v2619_v44, %v2918_v63 }
 0x2df   :  { %430 = vst.msk [vmem:[#allocation2 + $0x22] sm:$0xff] %vm72_vm0, %v2857_v13  ;;  %4100 = vst [vmem:[#allocation44_spill] sm:$0xff] %v2892_v17  ;;  %v2945_v57 = vld [vmem:[#allocation2 + $0x43] sm:$0xff]  ;;  %v619_v19 = vld [vmem:[#allocation2 + $0x53] sm:$0xff]  ;;  %v550_v23 = vadd.f32 %v534_v11, %v498_v45  ;;  %v551_v50 = vadd.f32 %v535_v34, %v499_v32  ;;  %v586_v37 = vmul.f32 %v2628_v49, %v2922_v43 }
 0x2e0   :  { %431 = vst.msk [vmem:[#allocation2 + $0x32] sm:$0xff] %vm72_vm0, %v2864_v2  ;;  %4101 = vst [vmem:[#allocation45_spill] sm:$0xff] %v2907_v27  ;;  %v587_v30 = vmul.f32 %v2628_v49, %v2931_v36  ;;  %v620_v31 = vld [vmem:[#allocation2 + $0x63] sm:$0xff]  ;;  %v621_v42 = vld [vmem:[#allocation2 + $0x73] sm:$0xff]  ;;  %v552_v60 = vadd.f32 %v536_v15, %v500_v28  ;;  %v553_v59 = vadd.f32 %v537_v38, %v501_v33 }
 0x2e1   :  { %4102 = vst [vmem:[#allocation46_spill] sm:$0xff] %v2910_v54  ;;  %4103 = vst [vmem:[#allocation47_spill] sm:$0xff] %v2925_v35  ;;  %v588_v1 = vmul.f32 %v2628_v49, %v2933_v4  ;;  %v589_v24 = vmul.f32 %v2628_v49, %v2935_v52  ;;  %v670_v0 = vld [vmem:[#allocation2 + $0x44] sm:$0xff]  ;;  %v671_v53 = vld [vmem:[#allocation2 + $0x54] sm:$0xff]  ;;  %v602_v11 = vadd.f32 %v586_v37, %v550_v23 }
 0x2e2   :  { %4104 = vst [vmem:[#allocation48_spill] sm:$0xff] %v2931_v36  ;;  %4105 = vst [vmem:[#allocation49_spill] sm:$0xff] %v2933_v4  ;;  %v603_v45 = vadd.f32 %v587_v30, %v551_v50  ;;  %v638_v32 = vmul.f32 %v2633_v55, %v2945_v57  ;;  %v639_v34 = vmul.f32 %v2633_v55, %v619_v19  ;;  %v672_v3 = vld [vmem:[#allocation2 + $0x64] sm:$0xff]  ;;  %v673_v51 = vld [vmem:[#allocation2 + $0x74] sm:$0xff] }
 0x2e3   :  { %4106 = vst [vmem:[#allocation50_spill] sm:$0xff] %v2935_v52  ;;  %v604_v26 = vadd.f32 %v588_v1, %v552_v60  ;;  %v605_v28 = vadd.f32 %v589_v24, %v553_v59  ;;  %v640_v33 = vmul.f32 %v2633_v55, %v620_v31  ;;  %v641_v15 = vmul.f32 %v2633_v55, %v621_v42  ;;  %v726_v50 = vld [vmem:[#allocation2 + $0x80] sm:$0xff] }
 0x2e4   :  { %v654_v38 = vadd.f32 %v638_v32, %v602_v11  ;;  %v655_v20 = vadd.f32 %v639_v34, %v603_v45  ;;  %v690_v54 = vmul.f32 %v2640_v61, %v670_v0  ;;  %v691_v23 = vmul.f32 %v2640_v61, %v671_v53  ;;  %v2968_v60 = vld [vmem:[#allocation2 + $0x81] sm:$0xff] }
 0x2e5   :  { %v656_v37 = vadd.f32 %v640_v33, %v604_v26  ;;  %v657_v30 = vadd.f32 %v641_v15, %v605_v28  ;;  %v692_v35 = vmul.f32 %v2640_v61, %v672_v3  ;;  %v693_v27 = vmul.f32 %v2640_v61, %v673_v51  ;;  %v2977_v33 = vld [vmem:[#allocation2 + $0x82] sm:$0xff] }
 0x2e6   :  { %v706_v9 = vadd.f32 %v690_v54, %v654_v38  ;;  %v707_v1 = vadd.f32 %v691_v23, %v655_v20  ;;  %v744_v24 = vmul.f32 %v2647_v6, %v2894_v48  ;;  %v745_v59 = vmul.f32 %v2647_v6, %v2896_v21  ;;  %4107 = vst [vmem:[#allocation51_spill] sm:$0xff] %v2977_v33  ;;  %v3079_v13 = vld [vmem:[#allocation2 + $0x103] sm:$0xff] }
 0x2e7   :  { %v708_v11 = vadd.f32 %v692_v35, %v656_v37  ;;  %v709_v45 = vadd.f32 %v693_v27, %v657_v30  ;;  %v746_v32 = vmul.f32 %v2647_v6, %v726_v50  ;;  %v795_v26 = vmul.f32 %v2657_v18, %v2902_v39  ;;  %v882_v30 = vld [vmem:[#allocation2 + $0x83] sm:$0xff] }
 0x2e8   :  { %v759_v34 = vadd.f32 %v743_v14, %v706_v9  ;;  %v760_v28 = vadd.f32 %v744_v24, %v707_v1  ;;  %v796_v20 = vmul.f32 %v2657_v18, %v2916_v16  ;;  %v797_v54 = vmul.f32 %v2657_v18, %v2918_v63 }
 0x2e9   :  { %v761_v15 = vadd.f32 %v745_v59, %v708_v11  ;;  %v762_v38 = vadd.f32 %v746_v32, %v709_v45  ;;  %v798_v27 = vmul.f32 %v2657_v18, %v2968_v60  ;;  %v847_v35 = vmul.f32 %v2662_v25, %v2931_v36  ;;  %v4108_v11 = vld [vmem:[#allocation12_spill] sm:$0xff] }
 0x2ea   :  { %v811_v23 = vadd.f32 %v795_v26, %v759_v34  ;;  %v812_v37 = vadd.f32 %v796_v20, %v760_v28  ;;  %v848_v9 = vmul.f32 %v2662_v25, %v2933_v4  ;;  %v849_v14 = vmul.f32 %v2662_v25, %v2935_v52  ;;  %v934_v34 = vld [vmem:[#allocation2 + $0x84] sm:$0xff] }
 0x2eb   :  { %v813_v1 = vadd.f32 %v797_v54, %v761_v15  ;;  %v814_v24 = vadd.f32 %v798_v27, %v762_v38  ;;  %v850_v59 = vmul.f32 %v2662_v25, %v2977_v33  ;;  %v899_v45 = vmul.f32 %v4108_v11, %v619_v19  ;;  %v986_v27 = vld [vmem:[#allocation2 + $0x90] sm:$0xff]  ;;  %v3093_v4 = vld [vmem:[#allocation2 + $0x104] sm:$0xff] }
 0x2ec   :  { %v863_v32 = vadd.f32 %v847_v35, %v811_v23  ;;  %v864_v17 = vadd.f32 %v848_v9, %v812_v37  ;;  %v900_v62 = vmul.f32 %v4108_v11, %v620_v31  ;;  %v901_v26 = vmul.f32 %v4108_v11, %v621_v42  ;;  %v470_v37 = vld [vmem:[#allocation2 + $0x100] sm:$0xff]  ;;  %v3081_v33 = vld [vmem:[#allocation2 + $0x113] sm:$0xff] }
 0x2ed   :  { %v865_v28 = vadd.f32 %v849_v14, %v813_v1  ;;  %v866_v20 = vadd.f32 %v850_v59, %v814_v24  ;;  %v902_v12 = vmul.f32 %v4108_v11, %v882_v30  ;;  %v2994_v2 = vmul.f32 %v4109_v40, %v670_v0  ;;  %v4111_v14 = vld [vmem:[#allocation14_spill] sm:$0xff] }
 0x2ee   :  { %v915_v54 = vadd.f32 %v899_v45, %v863_v32  ;;  %v916_v15 = vadd.f32 %v900_v62, %v864_v17  ;;  %v951_v38 = vmul.f32 %v4109_v40, %v671_v53  ;;  %v952_v19 = vmul.f32 %v4109_v40, %v672_v3  ;;  %v3018_v53 = vld [vmem:[#allocation2 + $0x130] sm:$0xff]  ;;  %v3030_v1 = vld [vmem:[#allocation2 + $0x101] sm:$0xff] }
 0x2ef   :  { %v917_v35 = vadd.f32 %v901_v26, %v865_v28  ;;  %v918_v23 = vadd.f32 %v902_v12, %v866_v20  ;;  %v953_v31 = vmul.f32 %v4109_v40, %v673_v51  ;;  %v954_v42 = vmul.f32 %v4109_v40, %v934_v34  ;;  %v3014_v12 = vld [vmem:[#allocation2 + $0x110] sm:$0xff]  ;;  %v3016_v51 = vld [vmem:[#allocation2 + $0x120] sm:$0xff]  ;;  %v4120_v45 = vld [vmem:[#allocation15_spill] sm:$0xff] }
 0x2f0   :  { %v3000_v9 = vadd.f32 %v951_v38, %v915_v54  ;;  %v3004_v0 = vmul.f32 %v4111_v14, %v2877_v7  ;;  %v3008_v62 = vmul.f32 %v4111_v14, %v2894_v48  ;;  %v3012_v3 = vmul.f32 %v4111_v14, %v2896_v21  ;;  %v3032_v21 = vld [vmem:[#allocation2 + $0x111] sm:$0xff]  ;;  %v3034_v24 = vld [vmem:[#allocation2 + $0x121] sm:$0xff] }
 0x2f1   :  { %v3020_v17 = vadd.f32 %v952_v19, %v916_v15  ;;  %v3022_v30 = vadd.f32 %v953_v31, %v917_v35  ;;  %v3025_v7 = vmul.f32 %v4111_v14, %v726_v50  ;;  %v3028_v48 = vmul.f32 %v4111_v14, %v986_v27  ;;  %v3047_v34 = vld [vmem:[#allocation2 + $0x131] sm:$0xff]  ;;  %v3059_v15 = vld [vmem:[#allocation2 + $0x102] sm:$0xff] }
 0x2f2   :  { %4110 = vst [vmem:[#allocation52_spill] sm:$0xff] %v3000_v9  ;;  %4112 = vst [vmem:[#allocation53_spill] sm:$0xff] %v3004_v0  ;;  %v3036_v59 = vadd.f32 %v954_v42, %v918_v23  ;;  %v3040_v32 = vmul.f32 %v4120_v45, %v2902_v39  ;;  %v3044_v26 = vmul.f32 %v4120_v45, %v2916_v16  ;;  %v3061_v16 = vld [vmem:[#allocation2 + $0x112] sm:$0xff]  ;;  %v3063_v38 = vld [vmem:[#allocation2 + $0x122] sm:$0xff] }
 0x2f3   :  { %4113 = vst [vmem:[#allocation54_spill] sm:$0xff] %v3008_v62  ;;  %4114 = vst [vmem:[#allocation55_spill] sm:$0xff] %v3012_v3  ;;  %v490_v50 = vmul.f32 %v2616_v41, %v470_v37  ;;  %v3051_v28 = vmul.f32 %v4120_v45, %v2918_v63  ;;  %v491_v20 = vmul.f32 %v2616_v41, %v3014_v12  ;;  %v3072_v23 = vld [vmem:[#allocation2 + $0x132] sm:$0xff] }
 0x2f4   :  { %4115 = vst [vmem:[#allocation56_spill] sm:$0xff] %v3020_v17  ;;  %4116 = vst [vmem:[#allocation57_spill] sm:$0xff] %v3022_v30  ;;  %v492_v54 = vmul.f32 %v2616_v41, %v3016_v51  ;;  %v493_v39 = vmul.f32 %v2616_v41, %v3018_v53  ;;  %v542_v63 = vmul.f32 %v2619_v44, %v3030_v1  ;;  %v3095_v3 = vld [vmem:[#allocation2 + $0x114] sm:$0xff] }
 0x2f5   :  { %4117 = vst [vmem:[#allocation58_spill] sm:$0xff] %v3025_v7  ;;  %4118 = vst [vmem:[#allocation59_spill] sm:$0xff] %v3028_v48  ;;  %v506_v19 = vadd.f32 %v2626_v47, %v490_v50  ;;  %v543_v27 = vmul.f32 %v2619_v44, %v3032_v21  ;;  %v544_v35 = vmul.f32 %v2619_v44, %v3034_v24  ;;  %v3083_v48 = vld [vmem:[#allocation2 + $0x123] sm:$0xff] }
 0x2f6   :  { %4119 = vst [vmem:[#allocation60_spill] sm:$0xff] %v3036_v59  ;;  %4121 = vst [vmem:[#allocation61_spill] sm:$0xff] %v3040_v32  ;;  %v507_v31 = vadd.f32 %v2626_v47, %v491_v20  ;;  %v508_v42 = vadd.f32 %v2626_v47, %v492_v54  ;;  %v509_v37 = vadd.f32 %v2626_v47, %v493_v39  ;;  %v629_v39 = vld [vmem:[#allocation2 + $0x133] sm:$0xff]  ;;  %v734_v32 = vld [vmem:[#allocation2 + $0x140] sm:$0xff] }
 0x2f7   :  { %4122 = vst [vmem:[#allocation62_spill] sm:$0xff] %v3044_v26  ;;  %4123 = vst [vmem:[#allocation63_spill] sm:$0xff] %v3051_v28  ;;  %v545_v50 = vmul.f32 %v2619_v44, %v3047_v34  ;;  %v558_v59 = vadd.f32 %v542_v63, %v506_v19  ;;  %v594_v7 = vmul.f32 %v2628_v49, %v3059_v15  ;;  %v3097_v19 = vld [vmem:[#allocation2 + $0x124] sm:$0xff] }
 0x2f8   :  { %v595_v20 = vmul.f32 %v2628_v49, %v3061_v16  ;;  %v596_v54 = vmul.f32 %v2628_v49, %v3063_v38  ;;  %v559_v30 = vadd.f32 %v543_v27, %v507_v31  ;;  %v560_v52 = vadd.f32 %v544_v35, %v508_v42  ;;  %v681_v35 = vld [vmem:[#allocation2 + $0x134] sm:$0xff] }
 0x2f9   :  { %v561_v28 = vadd.f32 %v545_v50, %v509_v37  ;;  %v597_v26 = vmul.f32 %v2628_v49, %v3072_v23  ;;  %v610_v63 = vadd.f32 %v594_v7, %v558_v59  ;;  %v646_v17 = vmul.f32 %v2633_v55, %v3079_v13 }
 0x2fa   :  { %v647_v62 = vmul.f32 %v2633_v55, %v3081_v33  ;;  %v648_v27 = vmul.f32 %v2633_v55, %v3083_v48  ;;  %v611_v31 = vadd.f32 %v595_v20, %v559_v30  ;;  %v612_v42 = vadd.f32 %v596_v54, %v560_v52  ;;  %v3119_v20 = vld [vmem:[#allocation2 + $0x141] sm:$0xff] }
 0x2fb   :  { %v613_v37 = vadd.f32 %v597_v26, %v561_v28  ;;  %v649_v50 = vmul.f32 %v2633_v55, %v629_v39  ;;  %v662_v9 = vadd.f32 %v646_v17, %v610_v63  ;;  %v698_v36 = vmul.f32 %v2640_v61, %v3093_v4 }
 0x2fc   :  { %v699_v7 = vmul.f32 %v2640_v61, %v3095_v3  ;;  %v700_v59 = vmul.f32 %v2640_v61, %v3097_v19  ;;  %v663_v58 = vadd.f32 %v647_v62, %v611_v31  ;;  %v664_v56 = vadd.f32 %v648_v27, %v612_v42  ;;  %v1038_v42 = vld [vmem:[#allocation2 + $0x91] sm:$0xff] }
 0x2fd   :  { %v665_v0 = vadd.f32 %v649_v50, %v613_v37  ;;  %v701_v30 = vmul.f32 %v2640_v61, %v681_v35  ;;  %v714_v52 = vadd.f32 %v698_v36, %v662_v9  ;;  %v751_v26 = vmul.f32 %v2647_v6, %v3014_v12 }
 0x2fe   :  { %v752_v17 = vmul.f32 %v2647_v6, %v3016_v51  ;;  %v753_v28 = vmul.f32 %v2647_v6, %v3018_v53  ;;  %v715_v54 = vadd.f32 %v699_v7, %v663_v58  ;;  %v716_v63 = vadd.f32 %v700_v59, %v664_v56  ;;  %v3130_v58 = vld [vmem:[#allocation2 + $0x142] sm:$0xff] }
 0x2ff   :  { %v717_v5 = vadd.f32 %v701_v30, %v665_v0  ;;  %v754_v62 = vmul.f32 %v2647_v6, %v734_v32  ;;  %v767_v27 = vadd.f32 %v751_v26, %v714_v52  ;;  %v803_v36 = vmul.f32 %v2657_v18, %v3032_v21 }
 0x300   :  { %v804_v9 = vmul.f32 %v2657_v18, %v3034_v24  ;;  %v805_v31 = vmul.f32 %v2657_v18, %v3047_v34  ;;  %v768_v37 = vadd.f32 %v752_v17, %v715_v54  ;;  %v769_v50 = vadd.f32 %v753_v28, %v716_v63  ;;  %v890_v28 = vld [vmem:[#allocation2 + $0x143] sm:$0xff] }
 0x301   :  { %v770_v29 = vadd.f32 %v754_v62, %v717_v5  ;;  %v806_v56 = vmul.f32 %v2657_v18, %v3119_v20  ;;  %v3134_v0 = vmul.f32 %v4120_v45, %v2968_v60  ;;  %v819_v7 = vadd.f32 %v803_v36, %v767_v27 }
 0x302   :  { %v855_v59 = vmul.f32 %v2662_v25, %v3061_v16  ;;  %v856_v30 = vmul.f32 %v2662_v25, %v3063_v38  ;;  %v820_v52 = vadd.f32 %v804_v9, %v768_v37  ;;  %v821_v26 = vadd.f32 %v805_v31, %v769_v50  ;;  %v942_v31 = vld [vmem:[#allocation2 + $0x144] sm:$0xff] }
 0x303   :  { %v822_v17 = vadd.f32 %v806_v56, %v770_v29  ;;  %v857_v5 = vmul.f32 %v2662_v25, %v3072_v23  ;;  %v3143_v54 = vmul.f32 %v4120_v45, %v1038_v42  ;;  %v858_v60 = vmul.f32 %v2662_v25, %v3130_v58 }
 0x304   :  { %v871_v63 = vadd.f32 %v855_v59, %v819_v7  ;;  %v907_v62 = vmul.f32 %v4108_v11, %v3081_v33  ;;  %v872_v27 = vadd.f32 %v856_v30, %v820_v52  ;;  %v908_v9 = vmul.f32 %v4108_v11, %v3083_v48 }
 0x305   :  { %v873_v36 = vadd.f32 %v857_v5, %v821_v26  ;;  %v909_v29 = vmul.f32 %v4108_v11, %v629_v39  ;;  %v3154_v37 = vmul.f32 %v2657_v18, %v3030_v1  ;;  %v874_v42 = vadd.f32 %v858_v60, %v822_v17  ;;  %v994_v17 = vld [vmem:[#allocation2 + $0x150] sm:$0xff] }
 0x306   :  { %v910_v50 = vmul.f32 %v4108_v11, %v890_v28  ;;  %v923_v56 = vadd.f32 %v907_v62, %v871_v63  ;;  %v924_v7 = vadd.f32 %v908_v9, %v872_v27  ;;  %v959_v33 = vmul.f32 %v4109_v40, %v3095_v3 }
 0x307   :  { %4124 = vst [vmem:[#allocation64_spill] sm:$0xff] %v3154_v37  ;;  %v925_v59 = vadd.f32 %v909_v29, %v873_v36  ;;  %v960_v30 = vmul.f32 %v4109_v40, %v3097_v19  ;;  %v3163_v48 = vmul.f32 %v2662_v25, %v3059_v15  ;;  %v961_v52 = vmul.f32 %v4109_v40, %v681_v35 }
 0x308   :  { %v926_v39 = vadd.f32 %v910_v50, %v874_v42  ;;  %v962_v26 = vmul.f32 %v4109_v40, %v942_v31  ;;  %v3169_v5 = vmul.f32 %v4108_v11, %v3079_v13  ;;  %v975_v28 = vadd.f32 %v959_v33, %v923_v56  ;;  %v512_v42 = vld [vmem:[#allocation2 + $0x21] sm:$0xff]  ;;  %v3217_v33 = vld [vmem:[#allocation2 + $0x32] sm:$0xff] }
 0x309   :  { %4125 = vst [vmem:[#allocation65_spill] sm:$0xff] %v3163_v48  ;;  %v976_v60 = vadd.f32 %v960_v30, %v924_v7  ;;  %v1011_v3 = vmul.f32 %v4111_v14, %v3016_v51  ;;  %v977_v19 = vadd.f32 %v961_v52, %v925_v59  ;;  %v1012_v62 = vmul.f32 %v4111_v14, %v3018_v53  ;;  %v1046_v51 = vld [vmem:[#allocation2 + $0x151] sm:$0xff]  ;;  %v564_v59 = vld [vmem:[#allocation2 + $0x22] sm:$0xff] }
 0x30a   :  { %4126 = vst [vmem:[#allocation66_spill] sm:$0xff] %v3169_v5  ;;  %v978_v63 = vadd.f32 %v962_v26, %v926_v39  ;;  %v1013_v27 = vmul.f32 %v4111_v14, %v734_v32  ;;  %v3178_v35 = vmul.f32 %v4109_v40, %v3093_v4  ;;  %v3182_v13 = vmul.f32 %v4111_v14, %v3014_v12  ;;  %v460_v32 = vld [vmem:[#allocation2 + $0x20] sm:$0xff]  ;;  %v3199_v12 = vld [vmem:[#allocation2 + $0x30] sm:$0xff] }
 0x30b   :  { %v1014_v36 = vmul.f32 %v4111_v14, %v994_v17  ;;  %v3185_v9 = vadd.f32 %v1011_v3, %v975_v28  ;;  %v3187_v29 = vadd.f32 %v1012_v62, %v976_v60  ;;  %v3193_v53 = vmul.f32 %v4120_v45, %v3030_v1  ;;  %v4139_v39 = vld [vmem:[#allocation16_spill] sm:$0xff]  ;;  %v616_v52 = vld [vmem:[#allocation2 + $0x23] sm:$0xff] }
 0x30c   :  { %4127 = vst [vmem:[#allocation67_spill] sm:$0xff] %v3178_v35  ;;  %4128 = vst [vmem:[#allocation68_spill] sm:$0xff] %v3182_v13  ;;  %v3189_v31 = vadd.f32 %v1013_v27, %v977_v19  ;;  %v3197_v4 = vmul.f32 %v4120_v45, %v3032_v21  ;;  %v3205_v56 = vmul.f32 %v4120_v45, %v3034_v24  ;;  %v3215_v21 = vld [vmem:[#allocation2 + $0x31] sm:$0xff]  ;;  %v668_v60 = vld [vmem:[#allocation2 + $0x24] sm:$0xff] }
 0x30d   :  { %4129 = vst [vmem:[#allocation69_spill] sm:$0xff] %v3185_v9  ;;  %4130 = vst [vmem:[#allocation70_spill] sm:$0xff] %v3187_v29  ;;  %v3201_v50 = vadd.f32 %v1014_v36, %v978_v63  ;;  %v3209_v7 = vmul.f32 %v4120_v45, %v3047_v34  ;;  %v3213_v1 = vmul.f32 %v4120_v45, %v3119_v20  ;;  %v3234_v26 = vld [vmem:[#allocation2 + $0x33] sm:$0xff] }
 0x30e   :  { %4131 = vst [vmem:[#allocation71_spill] sm:$0xff] %v3189_v31  ;;  %4132 = vst [vmem:[#allocation72_spill] sm:$0xff] %v3193_v53  ;;  %v3220_v30 = vmul.f32 %v4120_v45, %v1046_v51  ;;  %v3224_v24 = vmul.f32 %v4139_v39, %v3059_v15  ;;  %v3228_v34 = vmul.f32 %v4139_v39, %v3061_v16  ;;  %v3247_v3 = vld [vmem:[#allocation2 + $0x34] sm:$0xff] }
 0x30f   :  { %4133 = vst [vmem:[#allocation73_spill] sm:$0xff] %v3197_v4  ;;  %4134 = vst [vmem:[#allocation74_spill] sm:$0xff] %v3201_v50  ;;  %v3232_v20 = vmul.f32 %v4139_v39, %v3063_v38  ;;  %v3238_v17 = vmul.f32 %v4139_v39, %v3072_v23  ;;  %v3242_v28 = vmul.f32 %v4139_v39, %v3130_v58 }
 0x310   :  { %4135 = vst [vmem:[#allocation75_spill] sm:$0xff] %v3205_v56  ;;  %4136 = vst [vmem:[#allocation76_spill] sm:$0xff] %v3209_v7  ;;  %v480_v15 = vmul.f32 %v2616_v41, %v460_v32  ;;  %v481_v16 = vmul.f32 %v2616_v41, %v3199_v12  ;;  %v532_v38 = vmul.f32 %v2619_v44, %v512_v42 }
 0x311   :  { %4137 = vst [vmem:[#allocation77_spill] sm:$0xff] %v3213_v1  ;;  %4138 = vst [vmem:[#allocation78_spill] sm:$0xff] %v3220_v30  ;;  %v533_v19 = vmul.f32 %v2619_v44, %v3215_v21  ;;  %v584_v23 = vmul.f32 %v2628_v49, %v564_v59  ;;  %v585_v63 = vmul.f32 %v2628_v49, %v3217_v33  ;;  %v1712_v49 = vld [vmem:[#allocation2 + $0x74] sm:$0xff] }
 0x312   :  { %4140 = vst [vmem:[#allocation16_spill] sm:$0xff] %v3224_v24  ;;  %4141 = vst [vmem:[#allocation79_spill] sm:$0xff] %v3228_v34  ;;  %v496_v58 = vadd.f32 %v2626_v47, %v480_v15  ;;  %v497_v62 = vadd.f32 %v2626_v47, %v481_v16  ;;  %v636_v27 = vmul.f32 %v2633_v55, %v616_v52 }
 0x313   :  { %4142 = vst [vmem:[#allocation80_spill] sm:$0xff] %v3232_v20  ;;  %4143 = vst [vmem:[#allocation81_spill] sm:$0xff] %v3238_v17  ;;  %v637_v36 = vmul.f32 %v2633_v55, %v3234_v26  ;;  %v688_v51 = vmul.f32 %v2640_v61, %v668_v60  ;;  %v740_v30 = vmul.f32 %v2647_v6, %v460_v32 }
 0x314   :  { %4144 = vst [vmem:[#allocation82_spill] sm:$0xff] %v3242_v28  ;;  %v689_v28 = vmul.f32 %v2640_v61, %v3247_v3  ;;  %v741_v50 = vmul.f32 %v2647_v6, %v3199_v12  ;;  %v548_v1 = vadd.f32 %v532_v38, %v496_v58  ;;  %v549_v31 = vadd.f32 %v533_v19, %v497_v62  ;;  %v981_v19 = vld [vmem:[#allocation2 + $0x40] sm:$0xff] }
 0x315   :  { %v742_v47 = vmul.f32 %v2647_v6, %v2875_v46  ;;  %v792_v15 = vmul.f32 %v2657_v18, %v512_v42  ;;  %v756_v16 = vadd.f32 %v740_v30, %v2885_v8  ;;  %v793_v17 = vmul.f32 %v2657_v18, %v3215_v21  ;;  %v1399_v61 = vld [vmem:[#allocation2 + $0x63] sm:$0xff] }
 0x316   :  { %v794_v20 = vmul.f32 %v2657_v18, %v2879_v10  ;;  %v844_v7 = vmul.f32 %v2662_v25, %v564_v59  ;;  %v600_v29 = vadd.f32 %v584_v23, %v548_v1  ;;  %v601_v56 = vadd.f32 %v585_v63, %v549_v31  ;;  %v1033_v23 = vld [vmem:[#allocation2 + $0x41] sm:$0xff] }
 0x317   :  { %v845_v38 = vmul.f32 %v2662_v25, %v3217_v33  ;;  %v846_v46 = vmul.f32 %v2662_v25, %v2922_v43  ;;  %v808_v58 = vadd.f32 %v792_v15, %v756_v16  ;;  %v896_v8 = vmul.f32 %v4108_v11, %v616_v52 }
 0x318   :  { %v897_v30 = vmul.f32 %v4108_v11, %v3234_v26  ;;  %v898_v10 = vmul.f32 %v4108_v11, %v2945_v57  ;;  %v652_v62 = vadd.f32 %v636_v27, %v600_v29  ;;  %v653_v9 = vadd.f32 %v637_v36, %v601_v56  ;;  %v4157_v11 = vld [vmem:[#allocation61_spill] sm:$0xff] }
 0x319   :  { %v948_v31 = vmul.f32 %v4109_v40, %v668_v60  ;;  %v999_v1 = vmul.f32 %v4111_v14, %v460_v32  ;;  %v860_v63 = vadd.f32 %v844_v7, %v808_v58  ;;  %v949_v34 = vmul.f32 %v4109_v40, %v3247_v3 }
 0x31a   :  { %v1000_v15 = vmul.f32 %v4111_v14, %v3199_v12  ;;  %v1001_v16 = vmul.f32 %v4111_v14, %v981_v19  ;;  %v704_v4 = vadd.f32 %v688_v51, %v652_v62  ;;  %v705_v13 = vadd.f32 %v689_v28, %v653_v9  ;;  %v4145_v9 = vld [vmem:[#allocation17_spill] sm:$0xff] }
 0x31b   :  { %v1015_v57 = vadd.f32 %v999_v1, %v2889_v22  ;;  %v1051_v29 = vmul.f32 %v4120_v45, %v512_v42  ;;  %v912_v56 = vadd.f32 %v896_v8, %v860_v63  ;;  %v1052_v32 = vmul.f32 %v4120_v45, %v3215_v21  ;;  %v4146_v63 = vld [vmem:[#allocation18_spill] sm:$0xff] }
 0x31c   :  { %v1053_v7 = vmul.f32 %v4120_v45, %v1033_v23  ;;  %v1103_v27 = vmul.f32 %v4139_v39, %v564_v59  ;;  %v757_v36 = vadd.f32 %v741_v50, %v704_v4  ;;  %v758_v58 = vadd.f32 %v742_v47, %v705_v13  ;;  %v1345_v4 = vld [vmem:[#allocation2 + $0x42] sm:$0xff] }
 0x31d   :  { %v1067_v24 = vadd.f32 %v1051_v29, %v1015_v57  ;;  %v1104_v35 = vmul.f32 %v4139_v39, %v3217_v33  ;;  %v964_v51 = vadd.f32 %v948_v31, %v912_v56  ;;  %v1105_v22 = vmul.f32 %v4139_v39, %v2922_v43  ;;  %v4147_v47 = vld [vmem:[#allocation19_spill] sm:$0xff]  ;;  %v4148_v56 = vld [vmem:[#allocation20_spill] sm:$0xff] }
 0x31e   :  { %v1155_v42 = vmul.f32 %v4145_v9, %v616_v52  ;;  %v1156_v28 = vmul.f32 %v4145_v9, %v3234_v26  ;;  %v809_v8 = vadd.f32 %v793_v17, %v757_v36  ;;  %v810_v62 = vadd.f32 %v794_v20, %v758_v58  ;;  %v1397_v20 = vld [vmem:[#allocation2 + $0x43] sm:$0xff] }
 0x31f   :  { %v1119_v1 = vadd.f32 %v1103_v27, %v1067_v24  ;;  %v1207_v59 = vmul.f32 %v4146_v63, %v668_v60  ;;  %v1016_v13 = vadd.f32 %v1000_v15, %v964_v51  ;;  %v1208_v50 = vmul.f32 %v4146_v63, %v3247_v3  ;;  %v1449_v24 = vld [vmem:[#allocation2 + $0x44] sm:$0xff]  ;;  %v4149_v15 = vld [vmem:[#allocation21_spill] sm:$0xff] }
 0x320   :  { %v1260_v31 = vmul.f32 %v4147_v47, %v3199_v12  ;;  %v1261_v43 = vmul.f32 %v4147_v47, %v981_v19  ;;  %v861_v57 = vadd.f32 %v845_v38, %v809_v8  ;;  %v862_v52 = vadd.f32 %v846_v46, %v810_v62  ;;  %v4150_v38 = vld [vmem:[#allocation22_spill] sm:$0xff]  ;;  %v1554_v8 = vld [vmem:[#allocation2 + $0x51] sm:$0xff] }
 0x321   :  { %v1171_v29 = vadd.f32 %v1155_v42, %v1119_v1  ;;  %v1312_v17 = vmul.f32 %v4148_v56, %v3215_v21  ;;  %v1068_v27 = vadd.f32 %v1052_v32, %v1016_v13  ;;  %v1313_v60 = vmul.f32 %v4148_v56, %v1033_v23  ;;  %v1502_v42 = vld [vmem:[#allocation2 + $0x50] sm:$0xff]  ;;  %v4151_v32 = vld [vmem:[#allocation23_spill] sm:$0xff] }
 0x322   :  { %v1364_v36 = vmul.f32 %v4149_v15, %v3217_v33  ;;  %v1365_v58 = vmul.f32 %v4149_v15, %v1345_v4  ;;  %v913_v51 = vadd.f32 %v897_v30, %v861_v57  ;;  %v914_v12 = vadd.f32 %v898_v10, %v862_v52  ;;  %v4152_v10 = vld [vmem:[#allocation36_spill] sm:$0xff] }
 0x323   :  { %v1223_v53 = vadd.f32 %v1207_v59, %v1171_v29  ;;  %v1416_v46 = vmul.f32 %v4150_v38, %v3234_v26  ;;  %v1120_v62 = vadd.f32 %v1104_v35, %v1068_v27  ;;  %v1417_v21 = vmul.f32 %v4150_v38, %v1397_v20  ;;  %v1606_v57 = vld [vmem:[#allocation2 + $0x52] sm:$0xff] }
 0x324   :  { %v1468_v1 = vmul.f32 %v4151_v32, %v3247_v3  ;;  %v3322_v13 = vmul.f32 %v4151_v32, %v1449_v24  ;;  %v965_v33 = vadd.f32 %v949_v34, %v913_v51  ;;  %v966_v5 = vadd.f32 %v2994_v2, %v914_v12  ;;  %v1658_v52 = vld [vmem:[#allocation2 + $0x53] sm:$0xff] }
 0x325   :  { %v1276_v30 = vadd.f32 %v1260_v31, %v1223_v53  ;;  %v1521_v59 = vmul.f32 %v4152_v10, %v981_v19  ;;  %v1172_v26 = vadd.f32 %v1156_v28, %v1120_v62  ;;  %v3327_v29 = vmul.f32 %v4152_v10, %v1502_v42  ;;  %v4153_v35 = vld [vmem:[#allocation37_spill] sm:$0xff]  ;;  %v4155_v31 = vld [vmem:[#allocation39_spill] sm:$0xff] }
 0x326   :  { %v1573_v27 = vmul.f32 %v4153_v35, %v1033_v23  ;;  %v3331_v45 = vmul.f32 %v4153_v35, %v1554_v8  ;;  %v3336_v34 = vld [vmem:[%s4000_s3 + $0x18] ss:$0 sm:$0xff]  ;;  %v1017_v2 = vadd.f32 %v1001_v16, %v965_v33  ;;  %v1625_v51 = vmul.f32 %v4155_v31, %v1345_v4  ;;  %v4156_v23 = vld [vmem:[#allocation43_spill] sm:$0xff]  ;;  %v4158_v16 = vld [vmem:[#allocation48_spill] sm:$0xff] }
 0x327   :  { %v4154_v53 = vld [vmem:[#allocation53_spill] sm:$0xff]  ;;  %v1328_v19 = vadd.f32 %v1312_v17, %v1276_v30  ;;  %v1224_v12 = vadd.f32 %v1208_v50, %v1172_v26  ;;  %v3341_v62 = vmul.f32 %v4155_v31, %v1606_v57  ;;  %v1677_v48 = vmul.f32 %v4156_v23, %v1397_v20  ;;  %v1243_v30 = vld [vmem:[#allocation2 + $0x60] sm:$0xff] }
 0x328   :  { %v1018_v3 = vadd.f32 %v4154_v53, %v966_v5  ;;  %v1710_v28 = vld [vmem:[#allocation2 + $0x54] sm:$0xff]  ;;  %v3345_v14 = vmul.f32 %v4156_v23, %v1658_v52  ;;  %v1069_v37 = vadd.f32 %v1053_v7, %v1017_v2  ;;  %v1106_v5 = vmul.f32 %v4139_v39, %v4158_v16 }
 0x329   :  { %v1380_v40 = vadd.f32 %v1364_v36, %v1328_v19  ;;  %v1277_v17 = vadd.f32 %v1261_v43, %v1224_v12  ;;  %v1729_v4 = vmul.f32 %v3336_v34, %v1449_v24  ;;  %v3352_v50 = vmul.f32 %v3336_v34, %v1710_v28  ;;  %v1295_v36 = vld [vmem:[#allocation2 + $0x61] sm:$0xff] }
 0x32a   :  { %v1070_v25 = vadd.f32 %v4157_v11, %v1018_v3  ;;  %v1157_v33 = vmul.f32 %v1397_v20, %v4145_v9  ;;  %v1121_v26 = vadd.f32 %v1105_v22, %v1069_v37  ;;  %v1158_v7 = vmul.f32 %v1658_v52, %v4145_v9  ;;  %v1347_v19 = vld [vmem:[#allocation2 + $0x62] sm:$0xff] }
 0x32b   :  { %v1432_v53 = vadd.f32 %v1416_v46, %v1380_v40  ;;  %v1329_v2 = vadd.f32 %v1313_v60, %v1277_v17  ;;  %v1209_v11 = vmul.f32 %v1449_v24, %v4146_v63  ;;  %v1210_v3 = vmul.f32 %v1710_v28, %v4146_v63  ;;  %v1451_v60 = vld [vmem:[#allocation2 + $0x64] sm:$0xff]  ;;  %v3364_v17 = vld [vmem:[#allocation2 + $0x70] sm:$0xff] }
 0x32c   :  { %v1122_v18 = vadd.f32 %v1106_v5, %v1070_v25  ;;  %v1262_v43 = vmul.f32 %v1502_v42, %v4147_v47  ;;  %v1173_v16 = vadd.f32 %v1157_v33, %v1121_v26  ;;  %v1263_v20 = vmul.f32 %v4147_v47, %v1243_v30 }
 0x32d   :  { %v1484_v12 = vadd.f32 %v1468_v1, %v1432_v53  ;;  %v1381_v37 = vadd.f32 %v1365_v58, %v1329_v2  ;;  %v1314_v25 = vmul.f32 %v1554_v8, %v4148_v56  ;;  %v1315_v40 = vmul.f32 %v4148_v56, %v1295_v36  ;;  %v3369_v8 = vld [vmem:[#allocation2 + $0x71] sm:$0xff] }
 0x32e   :  { %v1174_v6 = vadd.f32 %v1158_v7, %v1122_v18  ;;  %v1366_v22 = vmul.f32 %v1606_v57, %v4149_v15  ;;  %v1225_v46 = vadd.f32 %v1209_v11, %v1173_v16  ;;  %v1367_v42 = vmul.f32 %v4149_v15, %v1347_v19  ;;  %v3372_v7 = vld [vmem:[#allocation2 + $0x72] sm:$0xff] }
 0x32f   :  { %v1537_v24 = vadd.f32 %v1521_v59, %v1484_v12  ;;  %v1433_v1 = vadd.f32 %v1417_v21, %v1381_v37  ;;  %v1418_v18 = vmul.f32 %v1658_v52, %v4150_v38  ;;  %v1419_v33 = vmul.f32 %v4150_v38, %v1399_v61  ;;  %v3379_v11 = vld [vmem:[#allocation2 + $0x73] sm:$0xff] }
 0x330   :  { %v1226_v5 = vadd.f32 %v1210_v3, %v1174_v6  ;;  %v1470_v58 = vmul.f32 %v1710_v28, %v4151_v32  ;;  %v1278_v53 = vadd.f32 %v1262_v43, %v1225_v46  ;;  %v1471_v59 = vmul.f32 %v4151_v32, %v1451_v60  ;;  %v4160_v46 = vld [vmem:[#allocation54_spill] sm:$0xff] }
 0x331   :  { %v1589_v26 = vadd.f32 %v1573_v27, %v1537_v24  ;;  %v1485_v6 = vadd.f32 %v3322_v13, %v1433_v1  ;;  %v1523_v2 = vmul.f32 %v4152_v10, %v1243_v30  ;;  %v1524_v21 = vmul.f32 %v4152_v10, %v3364_v17  ;;  %v4159_v24 = vld [vmem:[#allocation52_spill] sm:$0xff] }
 0x332   :  { %v1279_v57 = vadd.f32 %v1263_v20, %v1226_v5  ;;  %v1575_v52 = vmul.f32 %v4153_v35, %v1295_v36  ;;  %v1330_v3 = vadd.f32 %v1314_v25, %v1278_v53  ;;  %v1576_v43 = vmul.f32 %v4153_v35, %v3369_v8  ;;  %v4161_v5 = vld [vmem:[#allocation56_spill] sm:$0xff] }
 0x333   :  { %v1641_v28 = vadd.f32 %v1625_v51, %v1589_v26  ;;  %v1538_v12 = vadd.f32 %v3327_v29, %v1485_v6  ;;  %v1627_v16 = vmul.f32 %v4155_v31, %v1347_v19  ;;  %v1628_v13 = vmul.f32 %v4155_v31, %v3372_v7  ;;  %v4162_v19 = vld [vmem:[#allocation55_spill] sm:$0xff]  ;;  %v4163_v6 = vld [vmem:[#allocation49_spill] sm:$0xff] }
 0x334   :  { %v1331_v27 = vadd.f32 %v1315_v40, %v1279_v57  ;;  %v1679_v30 = vmul.f32 %v4156_v23, %v1399_v61  ;;  %v1382_v37 = vadd.f32 %v1366_v22, %v1330_v3  ;;  %v1680_v51 = vmul.f32 %v4156_v23, %v3379_v11  ;;  %v4165_v3 = vld [vmem:[#allocation63_spill] sm:$0xff] }
 0x335   :  { %v1693_v20 = vadd.f32 %v1677_v48, %v1641_v28  ;;  %v1590_v25 = vadd.f32 %v3331_v45, %v1538_v12  ;;  %v1731_v40 = vmul.f32 %v3336_v34, %v1451_v60  ;;  %v1019_v29 = vadd.f32 %v4160_v46, %v4159_v24 }
 0x336   :  { %v1383_v36 = vadd.f32 %v1367_v42, %v1331_v27  ;;  %v1020_v1 = vadd.f32 %v4162_v19, %v4161_v5  ;;  %v1434_v53 = vadd.f32 %v1418_v18, %v1382_v37  ;;  %v1107_v48 = vmul.f32 %v4139_v39, %v4163_v6  ;;  %v4164_v42 = vld [vmem:[#allocation62_spill] sm:$0xff] }
 0x337   :  { %v1745_v26 = vadd.f32 %v1729_v4, %v1693_v20  ;;  %v1642_v22 = vadd.f32 %v3341_v62, %v1590_v25  ;;  %v1071_v28 = vadd.f32 %v4164_v42, %v1019_v29  ;;  %v4166_v27 = vld [vmem:[#allocation50_spill] sm:$0xff]  ;;  %v1159_v4 = vmul.f32 %v1399_v61, %v4145_v9 }
 0x338   :  { %v1435_v57 = vadd.f32 %v1419_v33, %v1383_v36  ;;  %v1072_v45 = vadd.f32 %v4165_v3, %v1020_v1  ;;  %v1108_v12 = vmul.f32 %v4139_v39, %v4166_v27  ;;  %v1486_v24 = vadd.f32 %v1470_v58, %v1434_v53  ;;  %v1245_v1 = vld [vmem:[#allocation2 + $0x80] sm:$0xff] }
 0x339   :  { %v1777_v55 = vmul.f32 0.044715, %v1745_v26  ;;  %v1694_v18 = vadd.f32 %v3345_v14, %v1642_v22  ;;  %v1123_v33 = vadd.f32 %v1107_v48, %v1071_v28  ;;  %v1160_v62 = vmul.f32 %v3379_v11, %v4145_v9  ;;  %v1297_v6 = vld [vmem:[#allocation2 + $0x81] sm:$0xff] }
 0x33a   :  { %v1487_v46 = vadd.f32 %v1471_v59, %v1435_v57  ;;  %v1124_v20 = vadd.f32 %v1108_v12, %v1072_v45  ;;  %v1539_v36 = vadd.f32 %v1523_v2, %v1486_v24  ;;  %v1211_v29 = vmul.f32 %v1451_v60, %v4146_v63 }
 0x33b   :  { %v1793_v37 = vmul.f32 %v1777_v55, %v1745_v26  ;;  %v1746_v5 = vadd.f32 %v3352_v50, %v1694_v18  ;;  %v1175_v19 = vadd.f32 %v1159_v4, %v1123_v33  ;;  %v1212_v59 = vmul.f32 %v1712_v49, %v4146_v63 }
 0x33c   :  { %v1540_v25 = vadd.f32 %v1524_v21, %v1487_v46  ;;  %v1176_v58 = vadd.f32 %v1160_v62, %v1124_v20  ;;  %v1591_v53 = vadd.f32 %v1575_v52, %v1539_v36  ;;  %v1732_v57 = vmul.f32 %v3336_v34, %v1712_v49  ;;  %v1349_v46 = vld [vmem:[#allocation2 + $0x82] sm:$0xff] }
 0x33d   :  { %v1809_v61 = vmul.f32 %v1793_v37, %v1745_v26  ;;  %v1778_v48 = vmul.f32 0.044715, %v1746_v5  ;;  %v1227_v22 = vadd.f32 %v1211_v29, %v1175_v19  ;;  %v1264_v2 = vmul.f32 %v3364_v17, %v4147_v47  ;;  %v3430_v37 = vld [vmem:[#allocation2 + $0x84] sm:$0xff]  ;;  %v3438_v29 = vld [vmem:[#allocation2 + $0x90] sm:$0xff] }
 0x33e   :  { %v1592_v14 = vadd.f32 %v1576_v43, %v1540_v25  ;;  %v1228_v55 = vadd.f32 %v1212_v59, %v1176_v58  ;;  %v1643_v21 = vadd.f32 %v1627_v16, %v1591_v53  ;;  %v1265_v42 = vmul.f32 %v4147_v47, %v1245_v1  ;;  %v3441_v53 = vld [vmem:[#allocation2 + $0x91] sm:$0xff] }
 0x33f   :  { %v1825_v60 = vadd.f32 %v1809_v61, %v1745_v26  ;;  %v1794_v28 = vmul.f32 %v1778_v48, %v1746_v5  ;;  %v1280_v3 = vadd.f32 %v1264_v2, %v1227_v22  ;;  %v1316_v52 = vmul.f32 %v3369_v8, %v4148_v56  ;;  %v3448_v48 = vld [vmem:[#allocation2 + $0x92] sm:$0xff] }
 0x340   :  { %v1644_v50 = vadd.f32 %v1628_v13, %v1592_v14  ;;  %v1317_v43 = vmul.f32 %v4148_v56, %v1297_v6  ;;  %v1695_v27 = vadd.f32 %v1679_v30, %v1643_v21  ;;  %v1281_v24 = vadd.f32 %v1265_v42, %v1228_v55  ;;  %v3421_v13 = vld [vmem:[#allocation2 + $0x83] sm:$0xff] }
 0x341   :  { %v1841_v45 = vmul.f32 0.7978846, %v1825_v60  ;;  %v3417_v4 = vmul.f32 0.5, %v1745_v26  ;;  %v1810_v17 = vmul.f32 %v1794_v28, %v1746_v5  ;;  %v1332_v18 = vadd.f32 %v1316_v52, %v1280_v3 }
 0x342   :  { %v1696_v12 = vadd.f32 %v1680_v51, %v1644_v50  ;;  %v1368_v16 = vmul.f32 %v3372_v7, %v4149_v15  ;;  %v3423_v33 = vadd.f32 %v1731_v40, %v1695_v27  ;;  %v1333_v20 = vadd.f32 %v1317_v43, %v1281_v24  ;;  %v1090_v24 = vld [vmem:[#allocation2 + $0x92] sm:$0xff] }
 0x343   :  { %2257 = vtanh.f32 %v1841_v45  ;;  %v1826_v62 = vadd.f32 %v1810_v17, %v1746_v5  ;;  %v1369_v30 = vmul.f32 %v4149_v15, %v1349_v46  ;;  %v1420_v26 = vmul.f32 %v3379_v11, %v4150_v38 }
 0x344   :  { %v3425_v8 = vadd.f32 %v1732_v57, %v1696_v12  ;;  %v1384_v51 = vadd.f32 %v1368_v16, %v1332_v18  ;;  %v3432_v36 = vmul.f32 0.5, %v1746_v5  ;;  %v1779_v7 = vmul.f32 0.044715, %v3423_v33 }
 0x345   :  { %v1421_v40 = vmul.f32 %v4150_v38, %v3421_v13  ;;  %v1842_v19 = vmul.f32 0.7978846, %v1826_v62  ;;  %v1385_v58 = vadd.f32 %v1369_v30, %v1333_v20  ;;  %v1472_v61 = vmul.f32 %v1712_v49, %v4151_v32  ;;  %v3452_v49 = vld [vmem:[#allocation2 + $0x93] sm:$0xff] }
 0x346   :  { %v1780_v25 = vmul.f32 0.044715, %v3425_v8  ;;  %v1436_v59 = vadd.f32 %v1420_v26, %v1384_v51  ;;  %v1795_v11 = vmul.f32 %v1779_v7, %v3423_v33  ;;  %v1473_v14 = vmul.f32 %v4151_v32, %v3430_v37  ;;  %v4167_v51 = vld [vmem:[#allocation57_spill] sm:$0xff]  ;;  %v4168_v26 = vld [vmem:[#allocation58_spill] sm:$0xff] }
 0x347   :  { %v1525_v57 = vmul.f32 %v4152_v10, %v1245_v1  ;;  %2259 = vtanh.f32 %v1842_v19  ;;  %v1437_v22 = vadd.f32 %v1421_v40, %v1385_v58  ;;  %v1526_v2 = vmul.f32 %v4152_v10, %v3438_v29  ;;  %v3459_v1 = vld [vmem:[#allocation2 + $0x94] sm:$0xff]  ;;  %v4170_v40 = vld [vmem:[#allocation59_spill] sm:$0xff] }
 0x348   :  { %v1796_v5 = vmul.f32 %v1780_v25, %v3425_v8  ;;  %v1488_v55 = vadd.f32 %v1472_v61, %v1436_v59  ;;  %v1811_v60 = vmul.f32 %v1795_v11, %v3423_v33  ;;  %v1577_v50 = vmul.f32 %v4153_v35, %v1297_v6  ;;  %v4169_v25 = vld [vmem:[#allocation60_spill] sm:$0xff]  ;;  %v4171_v11 = vld [vmem:[#allocation51_spill] sm:$0xff] }
 0x349   :  { %v1578_v42 = vmul.f32 %v4153_v35, %v3441_v53  ;;  %v1489_v28 = vadd.f32 %v1473_v14, %v1437_v22  ;;  %v1629_v52 = vmul.f32 %v4155_v31, %v1349_v46  ;;  %v1630_v43 = vmul.f32 %v4155_v31, %v3448_v48  ;;  %v3483_v14 = vld [vmem:[%s4002_s5] ss:$0 sm:$0xff] }
 0x34a   :  { %v1812_v21 = vmul.f32 %v1796_v5, %v3425_v8  ;;  %v1541_v3 = vadd.f32 %v1525_v57, %v1488_v55  ;;  %v1827_v45 = vadd.f32 %v1811_v60, %v3423_v33  ;;  %v1681_v12 = vmul.f32 %v4156_v23, %v3421_v13 }
 0x34b   :  { %v1682_v6 = vmul.f32 %v4156_v23, %v3452_v49  ;;  %v1542_v17 = vadd.f32 %v1526_v2, %v1489_v28  ;;  %v1733_v16 = vmul.f32 %v3336_v34, %v3430_v37  ;;  %v1734_v46 = vmul.f32 %v3336_v34, %v3459_v1 }
 0x34c   :  { %v1828_v27 = vadd.f32 %v1812_v21, %v3425_v8  ;;  %v1593_v18 = vadd.f32 %v1577_v50, %v1541_v3  ;;  %v1843_v62 = vmul.f32 0.7978846, %v1827_v45  ;;  %v1021_v7 = vadd.f32 %v4168_v26, %v4167_v51  ;;  %v3492_v50 = vld [vmem:[%s4003_s6] ss:$0 sm:$0xff]  ;;  %v1299_v26 = vld [vmem:[#allocation2 + $0xa1] sm:$0xff] }
 0x34d   :  { %v2258_v20 = vpop.eup %2257  ;;  %v1022_v19 = vadd.f32 %v4170_v40, %v4169_v25  ;;  %v1594_v59 = vadd.f32 %v1578_v42, %v1542_v17  ;;  %v1109_v5 = vmul.f32 %v4139_v39, %v4171_v11  ;;  %v1110_v55 = vmul.f32 %v4139_v39, %v1090_v24 }
 0x34e   :  { %v1844_v30 = vmul.f32 0.7978846, %v1828_v27  ;;  %v1873_v58 = vadd.f32 1.0, %v2258_v20  ;;  %v1645_v61 = vadd.f32 %v1629_v52, %v1593_v18  ;;  %2261 = vtanh.f32 %v1843_v62 }
 0x34f   :  { %v1073_v57 = vadd.f32 %v3134_v0, %v1021_v7  ;;  %v1074_v22 = vadd.f32 %v3143_v54, %v1022_v19  ;;  %v1646_v60 = vadd.f32 %v1630_v43, %v1594_v59  ;;  %v1161_v3 = vmul.f32 %v3421_v13, %v4145_v9  ;;  %v4172_v7 = vld [vmem:[#allocation38_spill] sm:$0xff] }
 0x350   :  { %v1889_v2 = vmul.f32 %v1873_v58, %v3417_v4  ;;  %2263 = vtanh.f32 %v1844_v30  ;;  %v1697_v21 = vadd.f32 %v1681_v12, %v1645_v61  ;;  %v1162_v0 = vmul.f32 %v3452_v49, %v4145_v9 }
 0x351   :  { %v1125_v42 = vadd.f32 %v1109_v5, %v1073_v57  ;;  %v1126_v28 = vadd.f32 %v1110_v55, %v1074_v22  ;;  %v2260_v54 = vpop.eup %2259  ;;  %v1698_v4 = vadd.f32 %v1682_v6, %v1646_v60  ;;  %v1213_v43 = vmul.f32 %v3430_v37, %v4146_v63  ;;  %v1247_v6 = vld [vmem:[#allocation2 + $0xa0] sm:$0xff] }
 0x352   :  { %v1912_v52 = vmul.f32 %v3483_v14, %v1889_v2  ;;  %v3499_v45 = vadd.f32 %v1733_v16, %v1697_v21  ;;  %v1874_v27 = vadd.f32 1.0, %v2260_v54  ;;  %v1214_v17 = vmul.f32 %v3459_v1, %v4146_v63  ;;  %v1403_v21 = vld [vmem:[#allocation2 + $0xa3] sm:$0xff]  ;;  %v4173_v54 = vld [vmem:[#allocation40_spill] sm:$0xff] }
 0x353   :  { %v1177_v12 = vadd.f32 %v1161_v3, %v1125_v42  ;;  %v1178_v24 = vadd.f32 %v1162_v0, %v1126_v28  ;;  %v1763_v18 = vmul.f32 0.5, %v3423_v33  ;;  %v3507_v20 = vadd.f32 %v1734_v46, %v1698_v4  ;;  %v1351_v46 = vld [vmem:[#allocation2 + $0xa2] sm:$0xff] }
 0x354   :  { %v1935_v13 = vadd.f32 %v3492_v50, %v1912_v52  ;;  %v1781_v62 = vmul.f32 0.044715, %v3499_v45  ;;  %v1890_v16 = vmul.f32 %v1874_v27, %v3432_v36  ;;  %v1266_v37 = vmul.f32 %v3438_v29, %v4147_v47 }
 0x355   :  { %v1229_v30 = vadd.f32 %v1213_v43, %v1177_v12  ;;  %v1230_v51 = vadd.f32 %v1214_v17, %v1178_v24  ;;  %v1764_v40 = vmul.f32 0.5, %v3425_v8  ;;  %v1782_v19 = vmul.f32 0.044715, %v3507_v20 }
 0x356   :  { %v1951_v25 = vadd.f32 %v1935_v13, %v4172_v7  ;;  %v1797_v33 = vmul.f32 %v1781_v62, %v3499_v45  ;;  %v1913_v58 = vmul.f32 %v3483_v14, %v1890_v16  ;;  %v1267_v59 = vmul.f32 %v4147_v47, %v1247_v6  ;;  %v1455_v13 = vld [vmem:[#allocation2 + $0xa4] sm:$0xff] }
 0x357   :  { %v1282_v36 = vadd.f32 %v1266_v37, %v1229_v30  ;;  %v1318_v61 = vmul.f32 %v3441_v53, %v4148_v56  ;;  %v1798_v29 = vmul.f32 %v1782_v19, %v3507_v20  ;;  %v1319_v5 = vmul.f32 %v4148_v56, %v1299_v26  ;;  %v1508_v19 = vld [vmem:[#allocation2 + $0xb0] sm:$0xff] }
 0x358   :  { %v1813_v11 = vmul.f32 %v1797_v33, %v3499_v45  ;;  %v1370_v8 = vmul.f32 %v3448_v48, %v4149_v15  ;;  %v2262_v57 = vpop.eup %2261  ;;  %v1936_v22 = vadd.f32 %v3492_v50, %v1913_v58  ;;  %v1283_v55 = vadd.f32 %v1267_v59, %v1230_v51 }
 0x359   :  { %v1334_v2 = vadd.f32 %v1318_v61, %v1282_v36  ;;  %v1371_v60 = vmul.f32 %v4149_v15, %v1351_v46  ;;  %v1875_v28 = vadd.f32 1.0, %v2262_v57  ;;  %v1814_v53 = vmul.f32 %v1798_v29, %v3507_v20  ;;  %v1612_v29 = vld [vmem:[#allocation2 + $0xb2] sm:$0xff] }
 0x35a   :  { %v2264_v42 = vpop.eup %2263  ;;  %v1829_v3 = vadd.f32 %v1813_v11, %v3499_v45  ;;  %v1422_v0 = vmul.f32 %v3452_v49, %v4150_v38  ;;  %v1952_v52 = vadd.f32 %v1936_v22, %v4173_v54  ;;  %v1335_v4 = vadd.f32 %v1319_v5, %v1283_v55  ;;  %v1664_v57 = vld [vmem:[#allocation2 + $0xb3] sm:$0xff] }
 0x35b   :  { %v1876_v48 = vadd.f32 1.0, %v2264_v42  ;;  %v1386_v43 = vadd.f32 %v1370_v8, %v1334_v2  ;;  %v1891_v27 = vmul.f32 %v1875_v28, %v1763_v18  ;;  %v1830_v12 = vadd.f32 %v1814_v53, %v3507_v20  ;;  %v4174_v22 = vld [vmem:[#allocation24_spill] sm:$0xff]  ;;  %v4175_v28 = vld [vmem:[#allocation25_spill] sm:$0xff] }
 0x35c   :  { %v1845_v24 = vmul.f32 0.7978846, %v1829_v3  ;;  %v1423_v17 = vmul.f32 %v4150_v38, %v1403_v21  ;;  %v1967_v62 = vpack.c.bf16 %v1952_v52, %v1951_v25  ;;  %v1387_v30 = vadd.f32 %v1371_v60, %v1335_v4  ;;  %v467_v54 = vld [vmem:[#allocation2 + $0xd0] sm:$0xff] }
 0x35d   :  { %v1892_v16 = vmul.f32 %v1876_v48, %v1764_v40  ;;  %v1438_v51 = vadd.f32 %v1422_v0, %v1386_v43  ;;  %v1914_v37 = vmul.f32 %v3483_v14, %v1891_v27  ;;  %v1846_v7 = vmul.f32 0.7978846, %v1830_v12  ;;  %v1560_v40 = vld [vmem:[#allocation2 + $0xb1] sm:$0xff]  ;;  %v570_v12 = vld [vmem:[#allocation2 + $0xc2] sm:$0xff] }
 0x35e   :  { %2265 = vtanh.f32 %v1845_v24  ;;  %v1474_v49 = vmul.f32 %v3459_v1, %v4151_v32  ;;  %2226 = vmatprep.subr.msk.bf16.mxu0 %vm72_vm0, %v1967_v62  ;;  %v2012_v18 = vsel %vm72_vm0, %v1967_v62, 0  ;;  %v1439_v58 = vadd.f32 %v1423_v17, %v1387_v30  ;;  %v3553_v52 = vld [vmem:[#allocation2 + $0xd1] sm:$0xff] }
 0x35f   :  { %v1915_v33 = vmul.f32 %v3483_v14, %v1892_v16  ;;  %v1475_v25 = vmul.f32 %v4151_v32, %v1455_v13  ;;  %2207 = vmatpush3.bf16.xpose.msra.mxu0 %v2012_v18  ;;  %v1937_v59 = vadd.f32 %v3492_v50, %v1914_v37  ;;  %2267 = vtanh.f32 %v1846_v7  ;;  %v1716_v43 = vld [vmem:[#allocation2 + $0xb4] sm:$0xff]  ;;  %v4178_v16 = vld [vmem:[#allocation42_spill] sm:$0xff] }
 0x360   :  { %v1490_v36 = vadd.f32 %v1474_v49, %v1438_v51  ;;  %v1527_v61 = vmul.f32 %v4152_v10, %v1247_v6  ;;  %v1528_v5 = vmul.f32 %v4152_v10, %v1508_v19  ;;  %v1579_v8 = vmul.f32 %v4153_v35, %v1299_v26  ;;  %v4176_v17 = vld [vmem:[#allocation41_spill] sm:$0xff]  ;;  %v4177_v62 = vld [vmem:[#allocation44_spill] sm:$0xff]  ;;  %v622_v7 = vld [vmem:[#allocation2 + $0xc3] sm:$0xff] }
 0x361   :  { %v1938_v1 = vadd.f32 %v3492_v50, %v1915_v33  ;;  %v1491_v11 = vadd.f32 %v1475_v25, %v1439_v58  ;;  %v1953_v55 = vadd.f32 %v1937_v59, %v4174_v22  ;;  %v1580_v60 = vmul.f32 %v4153_v35, %v1560_v40  ;;  %v4179_v30 = vld [vmem:[#allocation45_spill] sm:$0xff]  ;;  %v4180_v19 = vld [vmem:[#allocation47_spill] sm:$0xff]  ;;  %v4181_v18 = vld [vmem:[#allocation46_spill] sm:$0xff] }
 0x362   :  { %v1543_v2 = vadd.f32 %v1527_v61, %v1490_v36  ;;  %v1631_v42 = vmul.f32 %v4155_v31, %v1351_v46  ;;  %v1765_v6 = vmul.f32 0.5, %v3499_v45  ;;  %v1632_v0 = vmul.f32 %v4155_v31, %v1612_v29  ;;  %v3566_v37 = vld [vmem:[#allocation2 + $0xd2] sm:$0xff]  ;;  %v4182_v59 = vld [vmem:[#allocation6_spill] sm:$0xff]  ;;  %v4183_v22 = vld [vmem:[#allocation7_spill] sm:$0xff] }
 0x363   :  { %v1954_v53 = vadd.f32 %v1938_v1, %v4175_v28  ;;  %v1544_v3 = vadd.f32 %v1528_v5, %v1491_v11  ;;  %v1683_v26 = vmul.f32 %v4156_v23, %v1403_v21  ;;  %v1684_v4 = vmul.f32 %v4156_v23, %v1664_v57  ;;  %v3581_v61 = vld [vmem:[#allocation2 + $0xd3] sm:$0xff]  ;;  %v674_v29 = vld [vmem:[#allocation2 + $0xc4] sm:$0xff]  ;;  %v2297_v5 = vld [vmem:[%s4001_s4] ss:$0 sm:$0xff] }
 0x364   :  { %v1595_v48 = vadd.f32 %v1579_v8, %v1543_v2  ;;  %v1735_v27 = vmul.f32 %v3336_v34, %v1455_v13  ;;  %v3560_v45 = vadd.f32 %v4177_v62, %v4176_v17  ;;  %v3564_v51 = vadd.f32 %v4179_v30, %v4178_v16  ;;  %v1098_v2 = vld [vmem:[#allocation2 + $0x152] sm:$0xff] }
 0x365   :  { %v1968_v46 = vpack.c.bf16 %v1954_v53, %v1953_v55  ;;  %v1596_v24 = vadd.f32 %v1580_v60, %v1544_v3  ;;  %v487_v49 = vmul.f32 %v2616_v41, %v467_v54  ;;  %v539_v13 = vmul.f32 %v2619_v44, %v3553_v52  ;;  %v3590_v3 = vld [vmem:[#allocation2 + $0xd4] sm:$0xff] }
 0x366   :  { %v1647_v21 = vadd.f32 %v1631_v42, %v1595_v48  ;;  %v554_v33 = vadd.f32 %v4181_v18, %v4180_v19  ;;  %v1736_v40 = vmul.f32 %v3336_v34, %v1716_v43  ;;  %438 = vst.msk [vmem:[#allocation2 + $0xe2] sm:$0xff] %vm72_vm0, %v3560_v45  ;;  %439 = vst.msk [vmem:[#allocation2 + $0xf2] sm:$0xff] %vm72_vm0, %v3564_v51  ;;  %v1766_v60 = vmul.f32 0.5, %v3507_v20 }
 0x367   :  { %2227 = vmatprep.subr.msk.bf16.mxu0 %vm72_vm0, %v1968_v46  ;;  %v2015_v58 = vsel %vm72_vm0, %v1968_v46, 0  ;;  %v1648_v25 = vadd.f32 %v1632_v0, %v1596_v24  ;;  %v590_v36 = vmul.f32 %v4182_v59, %v570_v12  ;;  %v503_v8 = vadd.f32 %v2297_v5, %v487_v49  ;;  %v4184_v12 = vld [vmem:[#allocation8_spill] sm:$0xff] }
 0x368   :  { %v2266_v1 = vpop.eup %2265  ;;  %2209 = vmatpush3.bf16.xpose.msra.mxu0 %v2015_v58  ;;  %v1699_v11 = vadd.f32 %v1683_v26, %v1647_v21  ;;  %v591_v57 = vmul.f32 %v4182_v59, %v3566_v37  ;;  %v642_v55 = vmul.f32 %v4183_v22, %v622_v7  ;;  %v643_v43 = vmul.f32 %v4183_v22, %v3581_v61 }
 0x369   :  { %v1877_v42 = vadd.f32 1.0, %v2266_v1  ;;  %v1700_v28 = vadd.f32 %v1684_v4, %v1648_v25  ;;  %v606_v53 = vadd.f32 %v590_v36, %v554_v33  ;;  %v2268_v0 = vpop.eup %2267  ;;  %v555_v26 = vadd.f32 %v539_v13, %v503_v8  ;;  %v4185_v13 = vld [vmem:[#allocation9_spill] sm:$0xff] }
 0x36a   :  { %v1751_v48 = vadd.f32 %v1735_v27, %v1699_v11  ;;  %v694_v46 = vmul.f32 %v4184_v12, %v674_v29  ;;  %v1878_v24 = vadd.f32 1.0, %v2268_v0  ;;  %v3598_v20 = vmul.f32 %v4139_v39, %v1098_v2 }
 0x36b   :  { %v1893_v17 = vmul.f32 %v1877_v42, %v1765_v6  ;;  %v3595_v62 = vadd.f32 %v1736_v40, %v1700_v28  ;;  %v658_v16 = vadd.f32 %v642_v55, %v606_v53  ;;  %v607_v30 = vadd.f32 %v591_v57, %v555_v26  ;;  %v4186_v28 = vld [vmem:[#allocation10_spill] sm:$0xff] }
 0x36c   :  { %v1783_v4 = vmul.f32 0.044715, %v1751_v48  ;;  %v695_v7 = vmul.f32 %v4184_v12, %v3590_v3  ;;  %v1894_v27 = vmul.f32 %v1878_v24, %v1766_v60  ;;  %v747_v19 = vmul.f32 %v4185_v13, %v467_v54  ;;  %v4187_v26 = vld [vmem:[#allocation26_spill] sm:$0xff] }
 0x36d   :  { %v1916_v21 = vmul.f32 %v3483_v14, %v1893_v17  ;;  %v1784_v49 = vmul.f32 0.044715, %v3595_v62  ;;  %v3605_v18 = vmul.f32 0.5, %v1751_v48  ;;  %v3607_v33 = vld [vmem:[#allocation2 + $0xe0] sm:$0xff]  ;;  %v3609_v58 = vld [vmem:[#allocation2 + $0xf0] sm:$0xff]  ;;  %v659_v40 = vadd.f32 %v643_v43, %v607_v30 }
 0x36e   :  { %v1799_v6 = vmul.f32 %v1783_v4, %v1751_v48  ;;  %v3611_v25 = vld [vmem:[#allocation2 + $0xe1] sm:$0xff]  ;;  %v710_v36 = vadd.f32 %v694_v46, %v658_v16  ;;  %v1917_v29 = vmul.f32 %v3483_v14, %v1894_v27  ;;  %v488_v54 = vmul.f32 %v2616_v41, %v3607_v33  ;;  %v3618_v8 = vld [vmem:[#allocation2 + $0xf1] sm:$0xff] }
 0x36f   :  { %v1939_v1 = vadd.f32 %v3492_v50, %v1916_v21  ;;  %v1800_v11 = vmul.f32 %v1784_v49, %v3595_v62  ;;  %v3620_v57 = vld [vmem:[#allocation2 + $0xe2] sm:$0xff]  ;;  %v489_v2 = vmul.f32 %v2616_v41, %v3609_v58  ;;  %v540_v60 = vmul.f32 %v2619_v44, %v3611_v25  ;;  %v3626_v42 = vld [vmem:[#allocation2 + $0xf2] sm:$0xff] }
 0x370   :  { %v1815_v55 = vmul.f32 %v1799_v6, %v1751_v48  ;;  %v799_v53 = vmul.f32 %v4186_v28, %v3553_v52  ;;  %v1940_v0 = vadd.f32 %v3492_v50, %v1917_v29  ;;  %v504_v24 = vadd.f32 %v2297_v5, %v488_v54  ;;  %v3633_v17 = vld [vmem:[#allocation2 + $0xe3] sm:$0xff]  ;;  %v3635_v16 = vld [vmem:[#allocation2 + $0xf3] sm:$0xff] }
 0x371   :  { %v1955_v43 = vadd.f32 %v1939_v1, %v4187_v26  ;;  %v1816_v46 = vmul.f32 %v1800_v11, %v3595_v62  ;;  %v505_v4 = vadd.f32 %v2297_v5, %v489_v2  ;;  %v541_v30 = vmul.f32 %v2619_v44, %v3618_v8  ;;  %v3641_v52 = vld [vmem:[#allocation2 + $0xe4] sm:$0xff] }
 0x372   :  { %v1831_v41 = vadd.f32 %v1815_v55, %v1751_v48  ;;  %v592_v27 = vmul.f32 %v4182_v59, %v3620_v57  ;;  %v4188_v21 = vld [vmem:[#allocation27_spill] sm:$0xff]  ;;  %v556_v29 = vadd.f32 %v540_v60, %v504_v24  ;;  %v593_v1 = vmul.f32 %v4182_v59, %v3626_v42  ;;  %v3651_v48 = vld [vmem:[#allocation2 + $0xf4] sm:$0xff] }
 0x373   :  { %v1956_v49 = vadd.f32 %v1940_v0, %v4188_v21  ;;  %v1832_v6 = vadd.f32 %v1816_v46, %v3595_v62  ;;  %v557_v54 = vadd.f32 %v541_v30, %v505_v4  ;;  %v644_v5 = vmul.f32 %v4183_v22, %v3633_v17  ;;  %v2298_v21 = vld [vmem:[#allocation2 + $0x100] sm:$0xff] }
 0x374   :  { %v1847_v11 = vmul.f32 0.7978846, %v1831_v41  ;;  %v645_v44 = vmul.f32 %v4183_v22, %v3635_v16  ;;  %v608_v26 = vadd.f32 %v592_v27, %v556_v29  ;;  %v696_v0 = vmul.f32 %v4184_v12, %v3641_v52 }
 0x375   :  { %v1969_v55 = vpack.c.bf16 %v1956_v49, %v1955_v43  ;;  %v1848_v2 = vmul.f32 0.7978846, %v1832_v6  ;;  %v609_v60 = vadd.f32 %v593_v1, %v557_v54  ;;  %v711_v46 = vadd.f32 %v695_v7, %v659_v40  ;;  %v4189_v6 = vld [vmem:[#allocation11_spill] sm:$0xff] }
 0x376   :  { %2269 = vtanh.f32 %v1847_v11  ;;  %v748_v59 = vmul.f32 %v4185_v13, %v3607_v33  ;;  %v660_v22 = vadd.f32 %v644_v5, %v608_v26  ;;  %v697_v43 = vmul.f32 %v4184_v12, %v3651_v48  ;;  %v4190_v5 = vld [vmem:[#allocation12_spill] sm:$0xff] }
 0x377   :  { %2228 = vmatprep.subr.msk.bf16.mxu0 %vm72_vm0, %v1969_v55  ;;  %v2018_v24 = vsel %vm72_vm0, %v1969_v55, 0  ;;  %2271 = vtanh.f32 %v1848_v2  ;;  %v661_v41 = vadd.f32 %v645_v44, %v609_v60  ;;  %v763_v4 = vadd.f32 %v747_v19, %v710_v36 }
 0x378   :  { %2211 = vmatpush3.bf16.xpose.msra.mxu0 %v2018_v24  ;;  %v764_v30 = vadd.f32 %v748_v59, %v711_v46  ;;  %v800_v27 = vmul.f32 %v4186_v28, %v3611_v25  ;;  %v712_v7 = vadd.f32 %v696_v0, %v660_v22  ;;  %v749_v40 = vmul.f32 %v4185_v13, %v3609_v58  ;;  %v4192_v59 = vld [vmem:[#allocation64_spill] sm:$0xff] }
 0x379   :  { %v750_v49 = vmul.f32 %v2298_v21, %v4185_v13  ;;  %v851_v29 = vmul.f32 %v4189_v6, %v3566_v37  ;;  %v713_v1 = vadd.f32 %v697_v43, %v661_v41  ;;  %v815_v11 = vadd.f32 %v799_v53, %v763_v4  ;;  %v4191_v37 = vld [vmem:[#allocation13_spill] sm:$0xff]  ;;  %v4193_v43 = vld [vmem:[#allocation14_spill] sm:$0xff] }
 0x37a   :  { %v816_v12 = vadd.f32 %v800_v27, %v764_v30  ;;  %v852_v19 = vmul.f32 %v4189_v6, %v3620_v57  ;;  %v765_v36 = vadd.f32 %v749_v40, %v712_v7  ;;  %v801_v54 = vmul.f32 %v4186_v28, %v3618_v8  ;;  %v4194_v7 = vld [vmem:[#allocation65_spill] sm:$0xff] }
 0x37b   :  { %v903_v44 = vmul.f32 %v4190_v5, %v3581_v61  ;;  %v904_v55 = vmul.f32 %v4190_v5, %v3633_v17  ;;  %v766_v13 = vadd.f32 %v750_v49, %v713_v1  ;;  %v867_v2 = vadd.f32 %v851_v29, %v815_v11 }
 0x37c   :  { %v868_v26 = vadd.f32 %v852_v19, %v816_v12  ;;  %v955_v53 = vmul.f32 %v4191_v37, %v3590_v3  ;;  %v1768_v0 = vmul.f32 0.5, %v3595_v62  ;;  %v817_v60 = vadd.f32 %v801_v54, %v765_v36  ;;  %v4195_v12 = vld [vmem:[#allocation15_spill] sm:$0xff] }
 0x37d   :  { %v853_v46 = vmul.f32 %v4189_v6, %v3626_v42  ;;  %v956_v28 = vmul.f32 %v4191_v37, %v3641_v52  ;;  %v818_v61 = vadd.f32 %v4192_v59, %v766_v13  ;;  %v919_v24 = vadd.f32 %v903_v44, %v867_v2 }
 0x37e   :  { %v920_v22 = vadd.f32 %v904_v55, %v868_v26  ;;  %v1007_v41 = vmul.f32 %v4193_v43, %v3607_v33  ;;  %v905_v3 = vmul.f32 %v4190_v5, %v3635_v16  ;;  %v957_v62 = vmul.f32 %v4191_v37, %v3651_v48 }
 0x37f   :  { %v869_v4 = vadd.f32 %v853_v46, %v817_v60  ;;  %v1008_v30 = vmul.f32 %v4193_v43, %v3609_v58  ;;  %v870_v40 = vadd.f32 %v4194_v7, %v818_v61  ;;  %v971_v49 = vadd.f32 %v955_v53, %v919_v24 }
 0x380   :  { %v2270_v27 = vpop.eup %2269  ;;  %v972_v6 = vadd.f32 %v956_v28, %v920_v22  ;;  %v1009_v29 = vmul.f32 %v2298_v21, %v4193_v43  ;;  %v1059_v19 = vmul.f32 %v4195_v12, %v3611_v25  ;;  %v1060_v36 = vmul.f32 %v4195_v12, %v3618_v8  ;;  %v4196_v25 = vld [vmem:[#allocation66_spill] sm:$0xff]  ;;  %v1510_v12 = vld [vmem:[#allocation2 + $0x110] sm:$0xff] }
 0x381   :  { %v2272_v1 = vpop.eup %2271  ;;  %v1879_v11 = vadd.f32 1.0, %v2270_v27  ;;  %v921_v33 = vadd.f32 %v905_v3, %v869_v4  ;;  %v1023_v5 = vadd.f32 %v1007_v41, %v971_v49  ;;  %v1111_v55 = vmul.f32 %v4139_v39, %v3620_v57  ;;  %v1249_v28 = vld [vmem:[#allocation2 + $0x100] sm:$0xff] }
 0x382   :  { %v1880_v54 = vadd.f32 1.0, %v2272_v1  ;;  %v1024_v44 = vadd.f32 %v1008_v30, %v972_v6  ;;  %v1112_v21 = vmul.f32 %v4139_v39, %v3626_v42  ;;  %v1163_v26 = vmul.f32 %v4145_v9, %v3633_v17  ;;  %v1353_v43 = vld [vmem:[#allocation2 + $0x102] sm:$0xff]  ;;  %v4197_v30 = vld [vmem:[#allocation72_spill] sm:$0xff] }
 0x383   :  { %v1895_v13 = vmul.f32 %v1879_v11, %v3605_v18  ;;  %v973_v2 = vadd.f32 %v957_v62, %v921_v33  ;;  %v922_v53 = vadd.f32 %v4196_v25, %v870_v40  ;;  %v1075_v60 = vadd.f32 %v1059_v19, %v1023_v5  ;;  %v1405_v49 = vld [vmem:[#allocation2 + $0x103] sm:$0xff]  ;;  %v4199_v19 = vld [vmem:[#allocation29_spill] sm:$0xff] }
 0x384   :  { %v1896_v37 = vmul.f32 %v1880_v54, %v1768_v0  ;;  %v1076_v46 = vadd.f32 %v1060_v36, %v1024_v44  ;;  %v1164_v57 = vmul.f32 %v4145_v9, %v3635_v16  ;;  %v1215_v18 = vmul.f32 %v4146_v63, %v3641_v52  ;;  %v1301_v0 = vld [vmem:[#allocation2 + $0x101] sm:$0xff]  ;;  %v1562_v44 = vld [vmem:[#allocation2 + $0x111] sm:$0xff] }
 0x385   :  { %v1918_v59 = vmul.f32 %v3483_v14, %v1895_v13  ;;  %v1025_v61 = vadd.f32 %v1009_v29, %v973_v2  ;;  %v1127_v24 = vadd.f32 %v1111_v55, %v1075_v60  ;;  %v1216_v17 = vmul.f32 %v4146_v63, %v3651_v48  ;;  %v1457_v6 = vld [vmem:[#allocation2 + $0x104] sm:$0xff]  ;;  %v4198_v29 = vld [vmem:[#allocation28_spill] sm:$0xff] }
 0x386   :  { %v1919_v39 = vmul.f32 %v3483_v14, %v1896_v37  ;;  %v1128_v22 = vadd.f32 %v1112_v21, %v1076_v46  ;;  %v1268_v4 = vmul.f32 %v4147_v47, %v3609_v58  ;;  %v1269_v3 = vmul.f32 %v4147_v47, %v1249_v28  ;;  %v1614_v55 = vld [vmem:[#allocation2 + $0x112] sm:$0xff] }
 0x387   :  { %v1941_v41 = vadd.f32 %v3492_v50, %v1918_v59  ;;  %v1320_v62 = vmul.f32 %v4148_v56, %v3618_v8  ;;  %v1077_v27 = vadd.f32 %v4197_v30, %v1025_v61  ;;  %v1179_v7 = vadd.f32 %v1163_v26, %v1127_v24  ;;  %v1666_v46 = vld [vmem:[#allocation2 + $0x113] sm:$0xff] }
 0x388   :  { %v1942_v52 = vadd.f32 %v3492_v50, %v1919_v39  ;;  %v1180_v40 = vadd.f32 %v1164_v57, %v1128_v22  ;;  %v1321_v11 = vmul.f32 %v4148_v56, %v1301_v0  ;;  %v1372_v58 = vmul.f32 %v4149_v15, %v3626_v42 }
 0x389   :  { %v1957_v1 = vadd.f32 %v1941_v41, %v4198_v29  ;;  %v1373_v33 = vmul.f32 %v4149_v15, %v1353_v43  ;;  %v1231_v36 = vadd.f32 %v1215_v18, %v1179_v7  ;;  %v1424_v5 = vmul.f32 %v4150_v38, %v3635_v16 }
 0x38a   :  { %v1958_v8 = vadd.f32 %v1942_v52, %v4199_v19  ;;  %v1232_v54 = vadd.f32 %v1216_v17, %v1180_v40  ;;  %v1425_v13 = vmul.f32 %v4150_v38, %v1405_v49  ;;  %v1476_v2 = vmul.f32 %v4151_v32, %v3651_v48  ;;  %v1718_v48 = vld [vmem:[#allocation2 + $0x114] sm:$0xff]  ;;  %v4200_v17 = vld [vmem:[#allocation67_spill] sm:$0xff]  ;;  %v1251_v40 = vld [vmem:[#allocation2 + $0x120] sm:$0xff] }
 0x38b   :  { %v1477_v21 = vmul.f32 %v4151_v32, %v1457_v6  ;;  %v1529_v42 = vmul.f32 %v4152_v10, %v1249_v28  ;;  %v1284_v37 = vadd.f32 %v1268_v4, %v1231_v36  ;;  %v1530_v60 = vmul.f32 %v4152_v10, %v1510_v12  ;;  %v2299_v4 = vld [vmem:[#allocation2 + $0x103] sm:$0xff] }
 0x38c   :  { %v1970_v26 = vpack.c.bf16 %v1958_v8, %v1957_v1  ;;  %v1285_v25 = vadd.f32 %v1269_v3, %v1232_v54  ;;  %v1581_v59 = vmul.f32 %v4153_v35, %v1301_v0  ;;  %v1582_v16 = vmul.f32 %v4153_v35, %v1562_v44  ;;  %v2300_v1 = vld [vmem:[#allocation2 + $0x113] sm:$0xff]  ;;  %v1303_v19 = vld [vmem:[#allocation2 + $0x121] sm:$0xff] }
 0x38d   :  { %v3739_v61 = vmul.f32 %v4155_v31, %v1353_v43  ;;  %v3742_v57 = vmul.f32 %v4155_v31, %v1614_v55  ;;  %v1336_v18 = vadd.f32 %v1320_v62, %v1284_v37  ;;  %v3747_v24 = vmul.f32 %v4156_v23, %v1405_v49  ;;  %v4201_v43 = vld [vmem:[#allocation16_spill] sm:$0xff]  ;;  %v1355_v54 = vld [vmem:[#allocation2 + $0x122] sm:$0xff] }
 0x38e   :  { %2229 = vmatprep.subr.msk.bf16.mxu0 %vm72_vm0, %v1970_v26  ;;  %v2021_v28 = vsel %vm72_vm0, %v1970_v26, 0  ;;  %v1337_v39 = vadd.f32 %v1321_v11, %v1285_v25  ;;  %v3750_v22 = vmul.f32 %v4156_v23, %v1666_v46  ;;  %v974_v0 = vadd.f32 %v4200_v17, %v922_v53  ;;  %v4202_v49 = vld [vmem:[#allocation68_spill] sm:$0xff]  ;;  %v4203_v26 = vld [vmem:[#allocation73_spill] sm:$0xff] }
 0x38f   :  { %2213 = vmatpush3.bf16.xpose.msra.mxu0 %v2021_v28  ;;  %v1129_v41 = vadd.f32 %v4201_v43, %v1077_v27  ;;  %v1165_v3 = vmul.f32 %v2299_v4, %v4145_v9  ;;  %v1388_v52 = vadd.f32 %v1372_v58, %v1336_v18  ;;  %v3756_v7 = vmul.f32 %v3336_v34, %v1457_v6  ;;  %v1407_v18 = vld [vmem:[#allocation2 + $0x123] sm:$0xff] }
 0x390   :  { %v1389_v30 = vadd.f32 %v1373_v33, %v1337_v39  ;;  %v3759_v62 = vmul.f32 %v3336_v34, %v1718_v48  ;;  %v1026_v29 = vadd.f32 %v4202_v49, %v974_v0  ;;  %v1166_v11 = vmul.f32 %v2300_v1, %v4145_v9  ;;  %v4204_v0 = vld [vmem:[#allocation79_spill] sm:$0xff] }
 0x391   :  { %v1181_v53 = vadd.f32 %v1165_v3, %v1129_v41  ;;  %v1217_v27 = vmul.f32 %v1457_v6, %v4146_v63  ;;  %v1440_v8 = vadd.f32 %v1424_v5, %v1388_v52  ;;  %v1218_v58 = vmul.f32 %v1718_v48, %v4146_v63  ;;  %v1512_v3 = vld [vmem:[#allocation2 + $0x130] sm:$0xff] }
 0x392   :  { %v1441_v36 = vadd.f32 %v1425_v13, %v1389_v30  ;;  %v1270_v33 = vmul.f32 %v1510_v12, %v4147_v47  ;;  %v1078_v34 = vadd.f32 %v4203_v26, %v1026_v29  ;;  %v1271_v25 = vmul.f32 %v4147_v47, %v1251_v40  ;;  %v1459_v13 = vld [vmem:[#allocation2 + $0x124] sm:$0xff] }
 0x393   :  { %v1233_v37 = vadd.f32 %v1217_v27, %v1181_v53  ;;  %v1322_v28 = vmul.f32 %v1562_v44, %v4148_v56  ;;  %v1492_v39 = vadd.f32 %v1476_v2, %v1440_v8  ;;  %v1323_v6 = vmul.f32 %v4148_v56, %v1303_v19  ;;  %v3778_v53 = vld [vmem:[#allocation2 + $0x132] sm:$0xff] }
 0x394   :  { %v1493_v17 = vadd.f32 %v1477_v21, %v1441_v36  ;;  %v1374_v5 = vmul.f32 %v1614_v55, %v4149_v15  ;;  %v1130_v43 = vadd.f32 %v4204_v0, %v1078_v34  ;;  %v1375_v12 = vmul.f32 %v4149_v15, %v1355_v54  ;;  %v1564_v21 = vld [vmem:[#allocation2 + $0x131] sm:$0xff] }
 0x395   :  { %v1286_v41 = vadd.f32 %v1270_v33, %v1233_v37  ;;  %v1426_v4 = vmul.f32 %v1666_v46, %v4150_v38  ;;  %v1545_v52 = vadd.f32 %v1529_v42, %v1492_v39  ;;  %v1427_v44 = vmul.f32 %v4150_v38, %v1407_v18  ;;  %v4206_v37 = vld [vmem:[#allocation75_spill] sm:$0xff]  ;;  %v4207_v39 = vld [vmem:[#allocation70_spill] sm:$0xff] }
 0x396   :  { %v1546_v30 = vadd.f32 %v1530_v60, %v1493_v17  ;;  %v1478_v2 = vmul.f32 %v1718_v48, %v4151_v32  ;;  %v1182_v49 = vadd.f32 %v1166_v11, %v1130_v43  ;;  %v1479_v55 = vmul.f32 %v4151_v32, %v1459_v13  ;;  %v4208_v17 = vld [vmem:[#allocation76_spill] sm:$0xff] }
 0x397   :  { %v1338_v29 = vadd.f32 %v1322_v28, %v1286_v41  ;;  %v1531_v1 = vmul.f32 %v4152_v10, %v1251_v40  ;;  %v1597_v27 = vadd.f32 %v1581_v59, %v1545_v52  ;;  %v1532_v46 = vmul.f32 %v4152_v10, %v1512_v3  ;;  %v2302_v43 = vld [vmem:[#allocation2 + $0x133] sm:$0xff] }
 0x398   :  { %v1598_v8 = vadd.f32 %v1582_v16, %v1546_v30  ;;  %v1583_v42 = vmul.f32 %v4153_v35, %v1303_v19  ;;  %v1234_v60 = vadd.f32 %v1218_v58, %v1182_v49  ;;  %v3783_v33 = vmul.f32 %v4153_v35, %v1564_v21  ;;  %v3793_v19 = vld [vmem:[#allocation2 + $0x134] sm:$0xff] }
 0x399   :  { %v1390_v36 = vadd.f32 %v1374_v5, %v1338_v29  ;;  %v1635_v48 = vmul.f32 %v4155_v31, %v1355_v54  ;;  %v1649_v11 = vadd.f32 %v3739_v61, %v1597_v27  ;;  %v3790_v40 = vmul.f32 %v4155_v31, %v3778_v53  ;;  %v4205_v58 = vld [vmem:[#allocation69_spill] sm:$0xff]  ;;  %v2301_v5 = vld [vmem:[#allocation2 + $0x123] sm:$0xff]  ;;  %v4209_v52 = vld [vmem:[#allocation80_spill] sm:$0xff] }
 0x39a   :  { %v1650_v26 = vadd.f32 %v3742_v57, %v1598_v8  ;;  %v1687_v59 = vmul.f32 %v4156_v23, %v1407_v18  ;;  %v1287_v16 = vadd.f32 %v1271_v25, %v1234_v60  ;;  %v1079_v28 = vadd.f32 %v4206_v37, %v4205_v58  ;;  %v4210_v49 = vld [vmem:[#allocation81_spill] sm:$0xff]  ;;  %v1305_v58 = vld [vmem:[#allocation2 + $0x141] sm:$0xff] }
 0x39b   :  { %v1442_v34 = vadd.f32 %v1426_v4, %v1390_v36  ;;  %v1080_v54 = vadd.f32 %v4208_v17, %v4207_v39  ;;  %v1701_v61 = vadd.f32 %v3747_v24, %v1649_v11  ;;  %v1167_v0 = vmul.f32 %v2301_v5, %v4145_v9  ;;  %v1668_v4 = vld [vmem:[#allocation2 + $0x133] sm:$0xff] }
 0x39c   :  { %v1702_v57 = vadd.f32 %v3750_v22, %v1650_v26  ;;  %v1168_v18 = vmul.f32 %v2302_v43, %v4145_v9  ;;  %v1339_v25 = vadd.f32 %v1323_v6, %v1287_v16  ;;  %v1131_v30 = vadd.f32 %v4209_v52, %v1079_v28 }
 0x39d   :  { %v1494_v41 = vadd.f32 %v1478_v2, %v1442_v34  ;;  %v1132_v29 = vadd.f32 %v4210_v49, %v1080_v54  ;;  %v1753_v27 = vadd.f32 %v3756_v7, %v1701_v61  ;;  %v1219_v24 = vmul.f32 %v1459_v13, %v4146_v63  ;;  %v1253_v2 = vld [vmem:[#allocation2 + $0x140] sm:$0xff]  ;;  %v3817_v7 = vld [vmem:[%s4000_s3 + $0x18] ss:$0 sm:$0xff] }
 0x39e   :  { %v3807_v8 = vadd.f32 %v3759_v62, %v1702_v57  ;;  %v1220_v22 = vmul.f32 %v3793_v19, %v4146_v63  ;;  %v1391_v60 = vadd.f32 %v1375_v12, %v1339_v25  ;;  %v1183_v11 = vadd.f32 %v1167_v0, %v1131_v30  ;;  %v1357_v57 = vld [vmem:[#allocation2 + $0x142] sm:$0xff] }
 0x39f   :  { %v1547_v36 = vadd.f32 %v1531_v1, %v1494_v41  ;;  %v1184_v6 = vadd.f32 %v1168_v18, %v1132_v29  ;;  %v1785_v26 = vmul.f32 0.044715, %v1753_v27  ;;  %v1688_v34 = vmul.f32 %v4156_v23, %v1668_v4  ;;  %v1409_v41 = vld [vmem:[#allocation2 + $0x143] sm:$0xff] }
 0x3a0   :  { %v1786_v16 = vmul.f32 0.044715, %v3807_v8  ;;  %v1739_v62 = vmul.f32 %v3817_v7, %v1459_v13  ;;  %v1443_v37 = vadd.f32 %v1427_v44, %v1391_v60  ;;  %v1235_v12 = vadd.f32 %v1219_v24, %v1183_v11 }
 0x3a1   :  { %v1599_v28 = vadd.f32 %v1583_v42, %v1547_v36  ;;  %v1236_v1 = vadd.f32 %v1220_v22, %v1184_v6  ;;  %v1801_v39 = vmul.f32 %v1785_v26, %v1753_v27  ;;  %v1272_v54 = vmul.f32 %v1512_v3, %v4147_v47 }
 0x3a2   :  { %v1802_v17 = vmul.f32 %v1786_v16, %v3807_v8  ;;  %v1273_v61 = vmul.f32 %v4147_v47, %v1253_v2  ;;  %v1495_v5 = vadd.f32 %v1479_v55, %v1443_v37  ;;  %v1324_v43 = vmul.f32 %v1564_v21, %v4148_v56 }
 0x3a3   :  { %v1651_v0 = vadd.f32 %v1635_v48, %v1599_v28  ;;  %v1325_v18 = vmul.f32 %v4148_v56, %v1305_v58  ;;  %v1817_v13 = vmul.f32 %v1801_v39, %v1753_v27  ;;  %v1288_v42 = vadd.f32 %v1272_v54, %v1235_v12  ;;  %v3847_v54 = vld [vmem:[#allocation2 + $0x152] sm:$0xff] }
 0x3a4   :  { %v1818_v44 = vmul.f32 %v1802_v17, %v3807_v8  ;;  %v1289_v25 = vadd.f32 %v1273_v61, %v1236_v1  ;;  %v1548_v52 = vadd.f32 %v1532_v46, %v1495_v5  ;;  %v1376_v3 = vmul.f32 %v3778_v53, %v4149_v15  ;;  %v1461_v46 = vld [vmem:[#allocation2 + $0x144] sm:$0xff]  ;;  %v3844_v1 = vld [vmem:[#allocation2 + $0x151] sm:$0xff] }
 0x3a5   :  { %v1703_v30 = vadd.f32 %v1687_v59, %v1651_v0  ;;  %v1377_v49 = vmul.f32 %v4149_v15, %v1357_v57  ;;  %v1833_v29 = vadd.f32 %v1817_v13, %v1753_v27  ;;  %v1340_v48 = vadd.f32 %v1324_v43, %v1288_v42  ;;  %v3852_v43 = vld [vmem:[#allocation2 + $0x153] sm:$0xff] }
 0x3a6   :  { %v1834_v55 = vadd.f32 %v1818_v44, %v3807_v8  ;;  %v1341_v21 = vadd.f32 %v1325_v18, %v1289_v25  ;;  %v1600_v24 = vadd.f32 %v3783_v33, %v1548_v52  ;;  %v1428_v60 = vmul.f32 %v1668_v4, %v4150_v38  ;;  %v3860_v44 = vld [vmem:[#allocation2 + $0x154] sm:$0xff] }
 0x3a7   :  { %v3831_v22 = vadd.f32 %v1739_v62, %v1703_v30  ;;  %v1429_v36 = vmul.f32 %v4150_v38, %v1409_v41  ;;  %v1849_v59 = vmul.f32 0.7978846, %v1833_v29  ;;  %v1392_v6 = vadd.f32 %v1376_v3, %v1340_v48  ;;  %v3841_v62 = vld [vmem:[#allocation2 + $0x150] sm:$0xff] }
 0x3a8   :  { %v1850_v11 = vmul.f32 0.7978846, %v1834_v55  ;;  %v1393_v53 = vadd.f32 %v1377_v49, %v1341_v21  ;;  %v1652_v26 = vadd.f32 %v3790_v40, %v1600_v24  ;;  %v1740_v16 = vmul.f32 %v3817_v7, %v3793_v19  ;;  %v1150_v30 = vld [vmem:[#allocation2 + $0x153] sm:$0xff] }
 0x3a9   :  { %v1787_v37 = vmul.f32 0.044715, %v3831_v22  ;;  %v1480_v33 = vmul.f32 %v3793_v19, %v4151_v32  ;;  %2273 = vtanh.f32 %v1849_v59  ;;  %v1444_v4 = vadd.f32 %v1428_v60, %v1392_v6  ;;  %v4212_v59 = vld [vmem:[#allocation77_spill] sm:$0xff]  ;;  %v4213_v6 = vld [vmem:[#allocation74_spill] sm:$0xff] }
 0x3aa   :  { %v1445_v28 = vadd.f32 %v1429_v36, %v1393_v53  ;;  %v1481_v12 = vmul.f32 %v4151_v32, %v1461_v46  ;;  %v1769_v39 = vmul.f32 0.5, %v1753_v27  ;;  %2275 = vtanh.f32 %v1850_v11  ;;  %v4211_v36 = vld [vmem:[#allocation71_spill] sm:$0xff]  ;;  %v4214_v53 = vld [vmem:[#allocation78_spill] sm:$0xff] }
 0x3ab   :  { %v1704_v40 = vadd.f32 %v1688_v34, %v1652_v26  ;;  %v1803_v17 = vmul.f32 %v1787_v37, %v3831_v22  ;;  %v1496_v61 = vadd.f32 %v1480_v33, %v1444_v4  ;;  %v1533_v19 = vmul.f32 %v4152_v10, %v1253_v2  ;;  %v2304_v37 = vld [vmem:[#allocation2 + $0x143] sm:$0xff] }
 0x3ac   :  { %v1497_v5 = vadd.f32 %v1481_v12, %v1445_v28  ;;  %v1534_v0 = vmul.f32 %v4152_v10, %v3841_v62  ;;  %v1585_v27 = vmul.f32 %v4153_v35, %v1305_v58  ;;  %v1586_v34 = vmul.f32 %v4153_v35, %v3844_v1  ;;  %v4215_v12 = vld [vmem:[#allocation82_spill] sm:$0xff] }
 0x3ad   :  { %v3854_v18 = vadd.f32 %v1740_v16, %v1704_v40  ;;  %v1819_v13 = vmul.f32 %v1803_v17, %v3831_v22  ;;  %v1549_v42 = vadd.f32 %v1533_v19, %v1496_v61  ;;  %v1637_v2 = vmul.f32 %v4155_v31, %v1357_v57 }
 0x3ae   :  { %v1550_v25 = vadd.f32 %v1534_v0, %v1497_v5  ;;  %v1638_v52 = vmul.f32 %v4155_v31, %v3847_v54  ;;  %v1689_v29 = vmul.f32 %v4156_v23, %v1409_v41  ;;  %v1690_v58 = vmul.f32 %v4156_v23, %v3852_v43 }
 0x3af   :  { %v1788_v3 = vmul.f32 0.044715, %v3854_v18  ;;  %v1835_v49 = vadd.f32 %v1819_v13, %v3831_v22  ;;  %v1601_v55 = vadd.f32 %v1585_v27, %v1549_v42  ;;  %v1741_v21 = vmul.f32 %v3817_v7, %v1461_v46 }
 0x3b0   :  { %v1602_v48 = vadd.f32 %v1586_v34, %v1550_v25  ;;  %v1742_v57 = vmul.f32 %v3817_v7, %v3860_v44  ;;  %v1081_v11 = vadd.f32 %v4212_v59, %v4211_v36  ;;  %v1082_v26 = vadd.f32 %v4214_v53, %v4213_v6 }
 0x3b1   :  { %v1804_v24 = vmul.f32 %v1788_v3, %v3854_v18  ;;  %v1851_v60 = vmul.f32 0.7978846, %v1835_v49  ;;  %v1653_v41 = vadd.f32 %v1637_v2, %v1601_v55  ;;  %v1169_v33 = vmul.f32 %v2304_v37, %v4145_v9  ;;  %v1255_v3 = vld [vmem:[#allocation2 + $0x160] sm:$0xff] }
 0x3b2   :  { %v1654_v16 = vadd.f32 %v1638_v52, %v1602_v48  ;;  %v1170_v4 = vmul.f32 %v4145_v9, %v1150_v30  ;;  %v1133_v40 = vadd.f32 %v4215_v12, %v1081_v11  ;;  %v1134_v17 = vadd.f32 %v3598_v20, %v1082_v26  ;;  %v1359_v11 = vld [vmem:[#allocation2 + $0x162] sm:$0xff] }
 0x3b3   :  { %v1820_v28 = vmul.f32 %v1804_v24, %v3854_v18  ;;  %2277 = vtanh.f32 %v1851_v60  ;;  %v2274_v61 = vpop.eup %2273  ;;  %v1705_v5 = vadd.f32 %v1689_v29, %v1653_v41  ;;  %v1221_v0 = vmul.f32 %v1461_v46, %v4146_v63  ;;  %v1307_v60 = vld [vmem:[#allocation2 + $0x161] sm:$0xff] }
 0x3b4   :  { %v1706_v19 = vadd.f32 %v1690_v58, %v1654_v16  ;;  %v1222_v13 = vmul.f32 %v3860_v44, %v4146_v63  ;;  %v2276_v27 = vpop.eup %2275  ;;  %v1881_v34 = vadd.f32 1.0, %v2274_v61  ;;  %v1185_v9 = vadd.f32 %v1169_v33, %v1133_v40  ;;  %v1411_v37 = vld [vmem:[#allocation2 + $0x163] sm:$0xff] }
 0x3b5   :  { %v1836_v42 = vadd.f32 %v1820_v28, %v3854_v18  ;;  %v1186_v25 = vadd.f32 %v1170_v4, %v1134_v17  ;;  %v1770_v2 = vmul.f32 0.5, %v3807_v8  ;;  %v1882_v52 = vadd.f32 1.0, %v2276_v27  ;;  %v1463_v61 = vld [vmem:[#allocation2 + $0x164] sm:$0xff] }
 0x3b6   :  { %v3888_v30 = vadd.f32 %v1741_v21, %v1705_v5  ;;  %v3890_v20 = vadd.f32 %v1742_v57, %v1706_v19  ;;  %v1897_v49 = vmul.f32 %v1881_v34, %v1769_v39  ;;  %v1237_v46 = vadd.f32 %v1221_v0, %v1185_v9 }
 0x3b7   :  { %v1852_v29 = vmul.f32 0.7978846, %v1836_v42  ;;  %v1238_v58 = vadd.f32 %v1222_v13, %v1186_v25  ;;  %v1898_v55 = vmul.f32 %v1882_v52, %v1770_v2  ;;  %v1771_v63 = vmul.f32 0.5, %v3831_v22  ;;  %v1568_v2 = vld [vmem:[#allocation2 + $0x171] sm:$0xff] }
 0x3b8   :  { %v1789_v48 = vmul.f32 0.044715, %v3888_v30  ;;  %v1274_v24 = vmul.f32 %v3841_v62, %v4147_v47  ;;  %v1920_v8 = vmul.f32 %v3483_v14, %v1897_v49  ;;  %v1790_v21 = vmul.f32 0.044715, %v3890_v20  ;;  %v1620_v49 = vld [vmem:[#allocation2 + $0x172] sm:$0xff] }
 0x3b9   :  { %2279 = vtanh.f32 %v1852_v29  ;;  %v1275_v57 = vmul.f32 %v4147_v47, %v1255_v3  ;;  %v1921_v39 = vmul.f32 %v3483_v14, %v1898_v55  ;;  %v1326_v22 = vmul.f32 %v3844_v1, %v4148_v56 }
 0x3ba   :  { %v1805_v36 = vmul.f32 %v1789_v48, %v3888_v30  ;;  %v1290_v59 = vadd.f32 %v1274_v24, %v1237_v46  ;;  %v1943_v6 = vadd.f32 %v3492_v50, %v1920_v8  ;;  %v1806_v62 = vmul.f32 %v1790_v21, %v3890_v20  ;;  %v1672_v8 = vld [vmem:[#allocation2 + $0x173] sm:$0xff] }
 0x3bb   :  { %v1291_v53 = vadd.f32 %v1275_v57, %v1238_v58  ;;  %v1327_v26 = vmul.f32 %v4148_v56, %v1307_v60  ;;  %v1944_v41 = vadd.f32 %v3492_v50, %v1921_v39  ;;  %v1378_v14 = vmul.f32 %v3847_v54, %v4149_v15 }
 0x3bc   :  { %v1821_v47 = vmul.f32 %v1805_v36, %v3888_v30  ;;  %v1342_v16 = vadd.f32 %v1326_v22, %v1290_v59  ;;  %v1959_v1 = vadd.f32 %v1943_v6, %v3560_v45  ;;  %v1822_v4 = vmul.f32 %v1806_v62, %v3890_v20  ;;  %v1975_v36 = vld [vmem:[%s4004_s7] sm:$0xff]  ;;  %v1724_v59 = vld [vmem:[#allocation2 + $0x174] sm:$0xff] }
 0x3bd   :  { %v2278_v33 = vpop.eup %2277  ;;  %v1343_v28 = vadd.f32 %v1327_v26, %v1291_v53  ;;  %v1379_v12 = vmul.f32 %v4149_v15, %v1359_v11  ;;  %v1960_v40 = vadd.f32 %v1944_v41, %v3564_v51  ;;  %v1430_v54 = vmul.f32 %v3852_v43, %v4150_v38  ;;  %v1516_v51 = vld [vmem:[#allocation2 + $0x170] sm:$0xff] }
 0x3be   :  { %v1883_v56 = vadd.f32 1.0, %v2278_v33  ;;  %v1837_v50 = vadd.f32 %v1821_v47, %v3888_v30  ;;  %v1394_v17 = vadd.f32 %v1378_v14, %v1342_v16  ;;  %v1838_v5 = vadd.f32 %v1822_v4, %v3890_v20  ;;  %v4216_v33 = vld [vmem:[#allocation30_spill] sm:$0xff] }
 0x3bf   :  { %v1395_v19 = vadd.f32 %v1379_v12, %v1343_v28  ;;  %v1431_v45 = vmul.f32 %v4150_v38, %v1411_v37  ;;  %v1971_v0 = vpack.c.bf16 %v1960_v40, %v1959_v1  ;;  %v1482_v15 = vmul.f32 %v3860_v44, %v4151_v32  ;;  %v3927_v38 = vld [vmem:[%s4002_s5] ss:$0 sm:$0xff]  ;;  %v4217_v12 = vld [vmem:[#allocation31_spill] sm:$0xff] }
 0x3c0   :  { %v1899_v13 = vmul.f32 %v1883_v56, %v1771_v63  ;;  %v1853_v27 = vmul.f32 0.7978846, %v1837_v50  ;;  %v1854_v34 = vmul.f32 0.7978846, %v1838_v5  ;;  %v1446_v42 = vadd.f32 %v1430_v54, %v1394_v17 }
 0x3c1   :  { %v1447_v9 = vadd.f32 %v1431_v45, %v1395_v19  ;;  %v1483_v25 = vmul.f32 %v4151_v32, %v1463_v61  ;;  %2230 = vmatprep.subr.msk.bf16.mxu0 %vm72_vm0, %v1971_v0  ;;  %v2024_v52 = vsel %vm72_vm0, %v1971_v0, 0  ;;  %v1535_v44 = vmul.f32 %v4152_v10, %v1255_v3 }
 0x3c2   :  { %v1922_v43 = vmul.f32 %v3927_v38, %v1899_v13  ;;  %2281 = vtanh.f32 %v1853_v27  ;;  %2215 = vmatpush3.bf16.xpose.msra.mxu0 %v2024_v52  ;;  %v1498_v32 = vadd.f32 %v1482_v15, %v1446_v42  ;;  %v1536_v58 = vmul.f32 %v4152_v10, %v1516_v51  ;;  %v1976_v10 = vld [vmem:[%s4004_s7 + $0x8] sm:$0xff] }
 0x3c3   :  { %v2280_v29 = vpop.eup %2279  ;;  %2283 = vtanh.f32 %v1854_v34  ;;  %v1499_v46 = vadd.f32 %v1483_v25, %v1447_v9  ;;  %v1772_v55 = vmul.f32 0.5, %v3854_v18  ;;  %v1587_v48 = vmul.f32 %v4153_v35, %v1307_v60 }
 0x3c4   :  { %v1884_v63 = vadd.f32 1.0, %v2280_v29  ;;  %v1588_v24 = vmul.f32 %v4153_v35, %v1568_v2  ;;  %v1551_v21 = vadd.f32 %v1535_v44, %v1498_v32  ;;  %v1639_v3 = vmul.f32 %v4155_v31, %v1359_v11  ;;  %v3946_v35 = vld [vmem:[%s4003_s6] ss:$0 sm:$0xff]  ;;  %v4218_v2 = vld [vmem:[#allocation32_spill] sm:$0xff]  ;;  %v4219_v44 = vld [vmem:[#allocation33_spill] sm:$0xff] }
 0x3c5   :  { %v1552_v57 = vadd.f32 %v1536_v58, %v1499_v46  ;;  %v1640_v39 = vmul.f32 %v4155_v31, %v1620_v49  ;;  %v1945_v60 = vadd.f32 %v3946_v35, %v1922_v43  ;;  %v1691_v31 = vmul.f32 %v4156_v23, %v1411_v37 }
 0x3c6   :  { %v1900_v18 = vmul.f32 %v1884_v63, %v1772_v55  ;;  %v1603_v22 = vadd.f32 %v1587_v48, %v1551_v21  ;;  %v1692_v6 = vmul.f32 %v4156_v23, %v1672_v8  ;;  %v1979_v53 = vpack.c.bf16 %v1976_v10, %v1975_v36 }
 0x3c7   :  { %v1604_v11 = vadd.f32 %v1588_v24, %v1552_v57  ;;  %v1743_v47 = vmul.f32 %v3817_v7, %v1463_v61  ;;  %v1744_v16 = vmul.f32 %v3817_v7, %v1724_v59  ;;  %v1961_v1 = vadd.f32 %v1945_v60, %v4216_v33  ;;  %v4220_v59 = vld [vmem:[#allocation34_spill] sm:$0xff] }
 0x3c8   :  { %v1923_v62 = vmul.f32 %v3927_v38, %v1900_v18  ;;  %v1655_v26 = vadd.f32 %v1639_v3, %v1603_v22  ;;  %2222 = vmatprep.mubr.msk.bf16.mxu0 %vm72_vm0, %v1979_v53  ;;  %v1773_v56 = vmul.f32 0.5, %v3888_v30  ;;  %v1774_v7 = vmul.f32 0.5, %v3890_v20  ;;  %v1977_v53 = vld [vmem:[%s4004_s7 + $0x10] sm:$0xff] }
 0x3c9   :  { %v1656_v41 = vadd.f32 %v1640_v39, %v1604_v11  ;;  %v4221_v11 = vld [vmem:[#allocation35_spill] sm:$0xff] }
 0x3ca   :  { %v1946_v14 = vadd.f32 %v3946_v35, %v1923_v62  ;;  %v1707_v4 = vadd.f32 %v1691_v31, %v1655_v26 }
 0x3cb   :  { %v1708_v28 = vadd.f32 %v1692_v6, %v1656_v41 }
 0x3cc   :  { %v2282_v37 = vpop.eup %2281  ;;  %v1962_v23 = vadd.f32 %v1946_v14, %v4217_v12  ;;  %v1759_v17 = vadd.f32 %v1743_v47, %v1707_v4  ;;  %v2003_v4 = vpop.permute.xlu1 %2002 }
 0x3cd   :  { %v2284_v40 = vpop.eup %2283  ;;  %v1885_v50 = vadd.f32 1.0, %v2282_v37  ;;  %v1760_v5 = vadd.f32 %v1744_v16, %v1708_v28 }
 0x3ce   :  { %v1972_v61 = vpack.c.bf16 %v1962_v23, %v1961_v1  ;;  %v1886_v19 = vadd.f32 1.0, %v2284_v40  ;;  %v1791_v45 = vmul.f32 0.044715, %v1759_v17  ;;  %v1775_v24 = vmul.f32 0.5, %v1759_v17 }
 0x3cf   :  { %v1901_v54 = vmul.f32 %v1885_v50, %v1773_v56  ;;  %v1792_v27 = vmul.f32 0.044715, %v1760_v5  ;;  %v1776_v21 = vmul.f32 0.5, %v1760_v5 }
 0x3d0   :  { %2231 = vmatprep.subr.msk.bf16.mxu0 %vm72_vm0, %v1972_v61  ;;  %v2027_v0 = vsel %vm72_vm0, %v1972_v61, 0  ;;  %v1902_v13 = vmul.f32 %v1886_v19, %v1774_v7  ;;  %v1807_v51 = vmul.f32 %v1791_v45, %v1759_v17 }
 0x3d1   :  { %2217 = vmatpush3.bf16.xpose.msra.mxu0 %v2027_v0  ;;  %v1924_v15 = vmul.f32 %v3927_v38, %v1901_v54  ;;  %v1808_v34 = vmul.f32 %v1792_v27, %v1760_v5 }
 0x3d2   :  { %v1925_v30 = vmul.f32 %v3927_v38, %v1902_v13  ;;  %v1823_v9 = vmul.f32 %v1807_v51, %v1759_v17 }
 0x3d3   :  { %v1947_v42 = vadd.f32 %v3946_v35, %v1924_v15  ;;  %v1824_v25 = vmul.f32 %v1808_v34, %v1760_v5 }
 0x3d4   :  { %v1948_v20 = vadd.f32 %v3946_v35, %v1925_v30  ;;  %v1839_v43 = vadd.f32 %v1823_v9, %v1759_v17 }
 0x3d5   :  { %v1963_v52 = vadd.f32 %v1947_v42, %v4218_v2  ;;  %v1840_v29 = vadd.f32 %v1824_v25, %v1760_v5 }
 0x3d6   :  { %v1964_v49 = vadd.f32 %v1948_v20, %v4219_v44  ;;  %v1855_v32 = vmul.f32 0.7978846, %v1839_v43 }
 0x3d7   :  { %v1856_v58 = vmul.f32 0.7978846, %v1840_v29 }
 0x3d8   :  { %v1973_v46 = vpack.c.bf16 %v1964_v49, %v1963_v52  ;;  %2285 = vtanh.f32 %v1855_v32  ;;  %v2155_v49 = vpop.permute.xlu1 %2154 }
 0x3d9   :  { %2287 = vtanh.f32 %v1856_v58 }
 0x3da   :  { %2232 = vmatprep.subr.msk.bf16.mxu0 %vm72_vm0, %v1973_v46  ;;  %v2030_v55 = vsel %vm72_vm0, %v1973_v46, 0 }
 0x3db   :  { %2219 = vmatpush3.bf16.xpose.msra.mxu0 %v2030_v55 }
 0x3e2   :  { %v2286_v63 = vpop.eup %2285 }
 0x3e3   :  { %v2288_v48 = vpop.eup %2287  ;;  %v1887_v8 = vadd.f32 1.0, %v2286_v63 }
 0x3e4   :  { %v1888_v57 = vadd.f32 1.0, %v2288_v48 }
 0x3e5   :  { %v1903_v3 = vmul.f32 %v1887_v8, %v1775_v24 }
 0x3e6   :  { %v1904_v39 = vmul.f32 %v1888_v57, %v1776_v21 }
 0x3e7   :  { %v1926_v36 = vmul.f32 %v3927_v38, %v1903_v3 }
 0x3e8   :  { %v1927_v10 = vmul.f32 %v3927_v38, %v1904_v39  ;;  %v1978_v38 = vld [vmem:[%s4004_s7 + $0x18] sm:$0xff] }
 0x3e9   :  { %v1949_v18 = vadd.f32 %v3946_v35, %v1926_v36  ;;  %v1980_v26 = vpack.c.bf16 %v1978_v38, %v1977_v53 }
 0x3ea   :  { %v1950_v60 = vadd.f32 %v3946_v35, %v1927_v10  ;;  %v1988_v35 = vpop.permute.xlu0 %1987 }
 0x3eb   :  { %v1965_v22 = vadd.f32 %v1949_v18, %v4220_v59 }
 0x3ec   :  { %v1966_v31 = vadd.f32 %v1950_v60, %v4221_v11  ;;  %v2165_v60 = vpop.permute.xlu1 %2164 }
 0x3ee   :  { %v1974_v6 = vpack.c.bf16 %v1966_v31, %v1965_v22  ;;  %v1993_v41 = vpop.permute.xlu0 %1992 }
 0x3f0   :  { %2233 = vmatprep.subr.msk.bf16.mxu0 %vm72_vm0, %v1974_v6  ;;  %v2033_v62 = vsel %vm72_vm0, %v1974_v6, 0 }
 0x3f1   :  { %2221 = vmatpush3.bf16.xpose.msra.mxu0 %v2033_v62 }
 0x3f2   :  { %v1998_v47 = vpop.permute.xlu0 %1997 }
 0x3f6   :  { %v2127_v14 = vpop.permute.xlu0 %2126 }
 0x3f8   :  { %2223 = vmatmul.mubr.msk.bf16.vlgmr.msra.gmra.mrb[0].mxu0 %vm72_vm0, %v1980_v26 }
 0x3fa   :  { %v2132_v19 = vpop.permute.xlu0 %2131 }
 0x3fe   :  { %v2137_v25 = vpop.permute.xlu0 %2136 }
 0x402   :  { %v2142_v43 = vpop.permute.xlu0 %2141 }
 0x406   :  { %v2160_v55 = vpop.permute.xlu0 %2159 }
 0x40a   :  { %v2170_v6 = vpop.permute.xlu0 %2169 }
 0x4cb   :  { %v2224_v16 = vpop.f32.mrb[0].mxu0 }
 0x4cc   :  { %v2078_v33 = vadd.f32 %v2224_v16, %v1998_v47  ;;  %v2069_v1 = vpop.f32.mrb[1].mxu0 }
 0x4cd   :  { %v2070_v28 = vadd.f32 %v2069_v1, %v1988_v35  ;;  %v2225_v37 = vpop.f32.mrb[2].mxu0 }
 0x4ce   :  { %v2090_v12 = vmul.f32 0.044715, %v2078_v33  ;;  %v2081_v23 = vadd.f32 %v2225_v37, %v2003_v4  ;;  %v2072_v40 = vpop.f32.mrb[3].mxu0  ;;  %v2086_v32 = vmul.f32 0.5, %v2078_v33 }
 0x4cf   :  { %v2088_v56 = vmul.f32 0.044715, %v2070_v28  ;;  %v2073_v50 = vadd.f32 %v2072_v40, %v1993_v41  ;;  %v2084_v63 = vmul.f32 0.5, %v2070_v28 }
 0x4d0   :  { %v2094_v17 = vmul.f32 %v2090_v12, %v2078_v33  ;;  %v2091_v5 = vmul.f32 0.044715, %v2081_v23  ;;  %v2087_v21 = vmul.f32 0.5, %v2081_v23 }
 0x4d1   :  { %v2092_v61 = vmul.f32 %v2088_v56, %v2070_v28  ;;  %v2089_v7 = vmul.f32 0.044715, %v2073_v50  ;;  %v2085_v39 = vmul.f32 0.5, %v2073_v50 }
 0x4d2   :  { %v2098_v54 = vmul.f32 %v2094_v17, %v2078_v33  ;;  %v2095_v45 = vmul.f32 %v2091_v5, %v2081_v23 }
 0x4d3   :  { %v2096_v0 = vmul.f32 %v2092_v61, %v2070_v28  ;;  %v2093_v13 = vmul.f32 %v2089_v7, %v2073_v50 }
 0x4d4   :  { %v2102_v27 = vadd.f32 %v2098_v54, %v2078_v33  ;;  %v2099_v15 = vmul.f32 %v2095_v45, %v2081_v23 }
 0x4d5   :  { %v2100_v51 = vadd.f32 %v2096_v0, %v2070_v28  ;;  %v2097_v30 = vmul.f32 %v2093_v13, %v2073_v50 }
 0x4d6   :  { %v2106_v34 = vmul.f32 0.7978846, %v2102_v27  ;;  %v2103_v42 = vadd.f32 %v2099_v15, %v2081_v23 }
 0x4d7   :  { %v2104_v9 = vmul.f32 0.7978846, %v2100_v51  ;;  %v2101_v20 = vadd.f32 %v2097_v30, %v2073_v50 }
 0x4d8   :  { %2289 = vtanh.f32 %v2106_v34  ;;  %v2107_v2 = vmul.f32 0.7978846, %v2103_v42 }
 0x4d9   :  { %2291 = vtanh.f32 %v2104_v9  ;;  %v2105_v52 = vmul.f32 0.7978846, %v2101_v20 }
 0x4da   :  { %2293 = vtanh.f32 %v2107_v2 }
 0x4db   :  { %2295 = vtanh.f32 %v2105_v52 }
 0x4e2   :  { %v2290_v44 = vpop.eup %2289 }
 0x4e3   :  { %v2292_v29 = vpop.eup %2291  ;;  %v2114_v46 = vadd.f32 1.0, %v2290_v44 }
 0x4e4   :  { %v2294_v58 = vpop.eup %2293  ;;  %v2112_v48 = vadd.f32 1.0, %v2292_v29 }
 0x4e5   :  { %v2296_v24 = vpop.eup %2295  ;;  %v2118_v8 = vmul.f32 %v2114_v46, %v2086_v32  ;;  %v2115_v57 = vadd.f32 1.0, %v2294_v58 }
 0x4e6   :  { %v2116_v3 = vmul.f32 %v2112_v48, %v2084_v63  ;;  %v2113_v36 = vadd.f32 1.0, %v2296_v24 }
 0x4e7   :  { %v2146_v10 = vmul.f32 %v2137_v25, %v2118_v8  ;;  %v2119_v18 = vmul.f32 %v2115_v57, %v2087_v21 }
 0x4e8   :  { %v2144_v59 = vmul.f32 %v2127_v14, %v2116_v3  ;;  %v2117_v22 = vmul.f32 %v2113_v36, %v2085_v39 }
 0x4e9   :  { %v2174_v11 = vadd.f32 %v2165_v60, %v2146_v10  ;;  %v2147_v31 = vmul.f32 %v2142_v43, %v2119_v18 }
 0x4ea   :  { %v2172_v62 = vadd.f32 %v2155_v49, %v2144_v59  ;;  %v2145_v53 = vmul.f32 %v2132_v19, %v2117_v22 }
 0x4eb   :  { %2178 = vst [vmem:[%s4008_s11 + $0x10] sm:$0xff] %v2174_v11  ;;  %v2175_v38 = vadd.f32 %v2170_v6, %v2147_v31 }
 0x4ec   :  { %2176 = vst [vmem:[%s4008_s11] sm:$0xff] %v2172_v62  ;;  %v2173_v26 = vadd.f32 %v2160_v55, %v2145_v53 }
 0x4ed   :  { %2179 = vst [vmem:[%s4008_s11 + $0x18] sm:$0xff] %v2175_v38 }
 0x4ee   :  { %2177 = vst [vmem:[%s4008_s11 + $0x8] sm:$0xff] %v2173_v26 }
 0x4ef   :  { %2188 = vsyncpa [#allocation4], 1 }

</bundles_post_ra>
